<compile_context>
chip_gen: v6e
topology: v6e:2x2x1
jax: 0.10.0
libtpu: 0.0.40
codegen_flags: <defaults>
</compile_context>

<pallas_src>
import functools

import jax
import jax.numpy as jnp
from jax.experimental import pallas as pl
from jax.experimental.pallas import tpu as pltpu

# concatenated-bias static offsets: [256 | 512 | 512 | 1024 | 128(pad of 1)]
_B_OFF = (0, 256, 768, 1280, 2304, 2432)


def _mlp_kernel(x_ref, b_ref, w1_ref, w2_ref, w3_ref, w4_ref, w5_ref, o_ref):
    f32 = jnp.float32
    x = x_ref[...]

    h = jnp.dot(x, w1_ref[...].astype(f32), preferred_element_type=f32)
    h = jnp.maximum(h + b_ref[:, _B_OFF[0]:_B_OFF[1]], 0.0)

    h = jnp.dot(h, w2_ref[...].astype(f32), preferred_element_type=f32)
    h = jnp.maximum(h + b_ref[:, _B_OFF[1]:_B_OFF[2]], 0.0)

    h = jnp.dot(h, w3_ref[...].astype(f32), preferred_element_type=f32)
    h = jnp.maximum(h + b_ref[:, _B_OFF[2]:_B_OFF[3]], 0.0)

    h = jnp.dot(h, w4_ref[...].astype(f32), preferred_element_type=f32)
    h = jnp.maximum(h + b_ref[:, _B_OFF[3]:_B_OFF[4]], 0.0)

    out = jnp.dot(h, w5_ref[...].astype(f32), preferred_element_type=f32)
    o_ref[...] = (out + b_ref[:, _B_OFF[4]:_B_OFF[5]]).astype(o_ref.dtype)


def neural_network_forward(x, prep, *, tile_b=128):
    """x: (batch, features) f32.  prep: output of prepare_inference_params()."""
    batch, features = x.shape

    # round tile to a sublane multiple, never larger than the (padded) batch
    tile_b = -(-tile_b // 8) * 8
    tile_b = min(tile_b, -(-batch // 8) * 8)
    pb = pl.cdiv(batch, tile_b) * tile_b
    if pb != batch:
        x = jnp.pad(x, ((0, pb - batch), (0, 0)))

    bias = prep["bias"]
    w1, w2, w3, w4, w5p = prep["w1"], prep["w2"], prep["w3"], prep["w4"], prep["w5p"]

    def resident(arr):  # same block every grid step -> DMA'd once, stays in VMEM
        return pl.BlockSpec(arr.shape, lambda i: (0, 0))

    grid_spec = pltpu.PrefetchScalarGridSpec(
        num_scalar_prefetch=0,
        grid=(pb // tile_b,),
        in_specs=[
            pl.BlockSpec((tile_b, features), lambda i: (i, 0)),   # x tiles pipeline
            resident(bias),
            resident(w1), resident(w2), resident(w3), resident(w4), resident(w5p),
        ],
        out_specs=pl.BlockSpec((tile_b, 128), lambda i: (i, 0)),  # lane-dense output
    )

    out = pl.pallas_call(
        _mlp_kernel,
        out_shape=jax.ShapeDtypeStruct((pb, 128), jnp.float32),
        grid_spec=grid_spec,
        compiler_params=pltpu.CompilerParams(
            dimension_semantics=("parallel",),   # v7x: shard batch tiles over 2 TCs
            vmem_limit_bytes=16 << 20,           # ~4 MB footprint; safe on 64 MiB v7x
        ),
    )(x, bias, w1, w2, w3, w4, w5p)

    return out[:batch, :1]


def init_params(features, key):
    """Deterministic init mirroring nn.Linear shapes (W stored as (in, out))."""
    dims = [(features, 256), (256, 512), (512, 512), (512, 1024), (1024, 1)]
    params = {}
    for i, (fan_in, fan_out) in enumerate(dims, start=1):
        key, kw, kb = jax.random.split(key, 3)
        bound = 1.0 / jnp.sqrt(jnp.float32(fan_in))  # torch default U(-1/sqrt(in), 1/sqrt(in))
        params[f"w{i}"] = jax.random.uniform(
            kw, (fan_in, fan_out), jnp.float32, minval=-bound, maxval=bound)
        params[f"b{i}"] = jax.random.uniform(
            kb, (1, fan_out), jnp.float32, minval=-bound, maxval=bound)
    return params


def prepare_inference_params(params):
    """Cast weights to bf16, pad the 1-wide last layer to 128 lanes, merge biases."""
    prep = {f"w{i}": params[f"w{i}"].astype(jnp.bfloat16) for i in range(1, 5)}
    prep["w5p"] = jnp.pad(params["w5"].astype(jnp.bfloat16), ((0, 0), (0, 127)))
    b5p = jnp.pad(params["b5"], ((0, 0), (0, 127)))                      # (1, 128)
    prep["bias"] = jnp.concatenate(
        [params["b1"], params["b2"], params["b3"], params["b4"], b5p], axis=1
    ).astype(jnp.float32)                                                # (1, 2432)
    return prep


def reference_forward(x, params):
    """Pure-JAX reference using the same bf16-quantized weights, f32 math."""
    h = x
    for i in range(1, 5):
        w = params[f"w{i}"].astype(jnp.bfloat16).astype(jnp.float32)
        h = jnp.maximum(h @ w + params[f"b{i}"], 0.0)
    w5 = params["w5"].astype(jnp.bfloat16).astype(jnp.float32)
    return h @ w5 + params["b5"]


if __name__ == "__main__":
    key = jax.random.PRNGKey(0)
    features = 32
    batch = 64          # small demo; grid of 2 batch tiles exercises the pipeline

    key, kx = jax.random.split(key)
    x = jax.random.normal(kx, (batch, features), jnp.float32)
    params = init_params(features, key)
    prep = prepare_inference_params(params)

    fwd = jax.jit(functools.partial(neural_network_forward, prep=prep, tile_b=32))
    y = fwd(x)
    jax.block_until_ready(y)

    y_ref = reference_forward(x, params)
    assert y.shape == (batch, 1), y.shape
    max_err = float(jnp.max(jnp.abs(y - y_ref)))
    assert jnp.allclose(y, y_ref, atol=2e-2, rtol=2e-2), f"mismatch vs reference (max abs err {max_err})"

    print("KERNEL_OK")
</pallas_src>

<mosaic_0001>
module attributes {stable_mosaic.version = 11 : i64} {
  func.func @_mlp_kernel(%arg0: i32, %arg1: memref<32x32xf32, #tpu.memory_space<vmem>>, %arg2: memref<1x2432xf32, #tpu.memory_space<vmem>>, %arg3: memref<32x256xbf16, #tpu.memory_space<vmem>>, %arg4: memref<256x512xbf16, #tpu.memory_space<vmem>>, %arg5: memref<512x512xbf16, #tpu.memory_space<vmem>>, %arg6: memref<512x1024xbf16, #tpu.memory_space<vmem>>, %arg7: memref<1024x128xbf16, #tpu.memory_space<vmem>>, %arg8: memref<32x128xf32, #tpu.memory_space<vmem>>) attributes {dimension_semantics = [#tpu.dimension_semantics<parallel>], iteration_bounds = array<i64: 2>, scalar_prefetch = 0 : i64, scratch_operands = 0 : i64, tpu.core_type = #tpu.core_type<tc>, window_params = [{transform_indices = @transform_0, window_bounds = array<i64: 32, 32>}, {pipeline_mode = #tpu.pipeline_mode<synchronous>, transform_indices = @transform_1, window_bounds = array<i64: 1, 2432>}, {pipeline_mode = #tpu.pipeline_mode<synchronous>, transform_indices = @transform_2, window_bounds = array<i64: 32, 256>}, {pipeline_mode = #tpu.pipeline_mode<synchronous>, transform_indices = @transform_3, window_bounds = array<i64: 256, 512>}, {pipeline_mode = #tpu.pipeline_mode<synchronous>, transform_indices = @transform_4, window_bounds = array<i64: 512, 512>}, {pipeline_mode = #tpu.pipeline_mode<synchronous>, transform_indices = @transform_5, window_bounds = array<i64: 512, 1024>}, {pipeline_mode = #tpu.pipeline_mode<synchronous>, transform_indices = @transform_6, window_bounds = array<i64: 1024, 128>}, {transform_indices = @transform_7, window_bounds = array<i64: 32, 128>}]} {
    %c0 = arith.constant 0 : index
    %c0_0 = arith.constant 0 : index
    %0 = vector.load %arg1[%c0, %c0_0] : memref<32x32xf32, #tpu.memory_space<vmem>>, vector<32x32xf32>
    %c0_1 = arith.constant 0 : index
    %c0_2 = arith.constant 0 : index
    %1 = vector.load %arg3[%c0_1, %c0_2] : memref<32x256xbf16, #tpu.memory_space<vmem>>, vector<32x256xbf16>
    %2 = arith.extf %1 : vector<32x256xbf16> to vector<32x256xf32>
    %cst = arith.constant dense<0.000000e+00> : vector<32x256xf32>
    %3 = tpu.matmul %0, %2, %cst {dimension_numbers = #tpu.dot_dimension_numbers<[1], [0], [0], [1], [0, 0, 1, 1], [], []>} : vector<32x32xf32>, vector<32x256xf32>, vector<32x256xf32> -> vector<32x256xf32>
    %c0_3 = arith.constant 0 : index
    %c0_4 = arith.constant 0 : index
    %4 = vector.load %arg2[%c0_3, %c0_4] : memref<1x2432xf32, #tpu.memory_space<vmem>>, vector<1x256xf32>
    %5 = vector.broadcast %4 : vector<1x256xf32> to vector<32x256xf32>
    %6 = arith.addf %3, %5 : vector<32x256xf32>
    %cst_5 = arith.constant 0.000000e+00 : f32
    %7 = vector.broadcast %cst_5 : f32 to vector<32x256xf32>
    %8 = arith.maximumf %6, %7 : vector<32x256xf32>
    %c0_6 = arith.constant 0 : index
    %c0_7 = arith.constant 0 : index
    %9 = vector.load %arg4[%c0_6, %c0_7] : memref<256x512xbf16, #tpu.memory_space<vmem>>, vector<256x512xbf16>
    %10 = arith.extf %9 : vector<256x512xbf16> to vector<256x512xf32>
    %cst_8 = arith.constant dense<0.000000e+00> : vector<32x512xf32>
    %11 = tpu.matmul %8, %10, %cst_8 {dimension_numbers = #tpu.dot_dimension_numbers<[1], [0], [0], [1], [0, 0, 1, 1], [], []>} : vector<32x256xf32>, vector<256x512xf32>, vector<32x512xf32> -> vector<32x512xf32>
    %c0_9 = arith.constant 0 : index
    %c256 = arith.constant 256 : index
    %12 = vector.load %arg2[%c0_9, %c256] : memref<1x2432xf32, #tpu.memory_space<vmem>>, vector<1x512xf32>
    %13 = vector.broadcast %12 : vector<1x512xf32> to vector<32x512xf32>
    %14 = arith.addf %11, %13 : vector<32x512xf32>
    %cst_10 = arith.constant 0.000000e+00 : f32
    %15 = vector.broadcast %cst_10 : f32 to vector<32x512xf32>
    %16 = arith.maximumf %14, %15 : vector<32x512xf32>
    %c0_11 = arith.constant 0 : index
    %c0_12 = arith.constant 0 : index
    %17 = vector.load %arg5[%c0_11, %c0_12] : memref<512x512xbf16, #tpu.memory_space<vmem>>, vector<512x512xbf16>
    %18 = arith.extf %17 : vector<512x512xbf16> to vector<512x512xf32>
    %cst_13 = arith.constant dense<0.000000e+00> : vector<32x512xf32>
    %19 = tpu.matmul %16, %18, %cst_13 {dimension_numbers = #tpu.dot_dimension_numbers<[1], [0], [0], [1], [0, 0, 1, 1], [], []>} : vector<32x512xf32>, vector<512x512xf32>, vector<32x512xf32> -> vector<32x512xf32>
    %c0_14 = arith.constant 0 : index
    %c768 = arith.constant 768 : index
    %20 = vector.load %arg2[%c0_14, %c768] : memref<1x2432xf32, #tpu.memory_space<vmem>>, vector<1x512xf32>
    %21 = vector.broadcast %20 : vector<1x512xf32> to vector<32x512xf32>
    %22 = arith.addf %19, %21 : vector<32x512xf32>
    %cst_15 = arith.constant 0.000000e+00 : f32
    %23 = vector.broadcast %cst_15 : f32 to vector<32x512xf32>
    %24 = arith.maximumf %22, %23 : vector<32x512xf32>
    %c0_16 = arith.constant 0 : index
    %c0_17 = arith.constant 0 : index
    %25 = vector.load %arg6[%c0_16, %c0_17] : memref<512x1024xbf16, #tpu.memory_space<vmem>>, vector<512x1024xbf16>
    %26 = arith.extf %25 : vector<512x1024xbf16> to vector<512x1024xf32>
    %cst_18 = arith.constant dense<0.000000e+00> : vector<32x1024xf32>
    %27 = tpu.matmul %24, %26, %cst_18 {dimension_numbers = #tpu.dot_dimension_numbers<[1], [0], [0], [1], [0, 0, 1, 1], [], []>} : vector<32x512xf32>, vector<512x1024xf32>, vector<32x1024xf32> -> vector<32x1024xf32>
    %c0_19 = arith.constant 0 : index
    %c1280 = arith.constant 1280 : index
    %28 = vector.load %arg2[%c0_19, %c1280] : memref<1x2432xf32, #tpu.memory_space<vmem>>, vector<1x1024xf32>
    %29 = vector.broadcast %28 : vector<1x1024xf32> to vector<32x1024xf32>
    %30 = arith.addf %27, %29 : vector<32x1024xf32>
    %cst_20 = arith.constant 0.000000e+00 : f32
    %31 = vector.broadcast %cst_20 : f32 to vector<32x1024xf32>
    %32 = arith.maximumf %30, %31 : vector<32x1024xf32>
    %c0_21 = arith.constant 0 : index
    %c0_22 = arith.constant 0 : index
    %33 = vector.load %arg7[%c0_21, %c0_22] : memref<1024x128xbf16, #tpu.memory_space<vmem>>, vector<1024x128xbf16>
    %34 = arith.extf %33 : vector<1024x128xbf16> to vector<1024x128xf32>
    %cst_23 = arith.constant dense<0.000000e+00> : vector<32x128xf32>
    %35 = tpu.matmul %32, %34, %cst_23 {dimension_numbers = #tpu.dot_dimension_numbers<[1], [0], [0], [1], [0, 0, 1, 1], [], []>} : vector<32x1024xf32>, vector<1024x128xf32>, vector<32x128xf32> -> vector<32x128xf32>
    %c0_24 = arith.constant 0 : index
    %c2304 = arith.constant 2304 : index
    %36 = vector.load %arg2[%c0_24, %c2304] : memref<1x2432xf32, #tpu.memory_space<vmem>>, vector<1x128xf32>
    %37 = vector.broadcast %36 : vector<1x128xf32> to vector<32x128xf32>
    %38 = arith.addf %35, %37 : vector<32x128xf32>
    %c0_25 = arith.constant 0 : index
    %c0_26 = arith.constant 0 : index
    %39 = vector.load %arg8[%c0_25, %c0_26] : memref<32x128xf32, #tpu.memory_space<vmem>>, vector<32x128xf32>
    tpu.vector_store %arg8[%c0_25, %c0_26], %38 {strides = array<i32>} : memref<32x128xf32, #tpu.memory_space<vmem>>, vector<32x128xf32>,
    return
  }
  func.func @transform_0(%arg0: i32) -> (i32, i32) {
    %c0_i32 = arith.constant 0 : i32
    %c0_i32_0 = arith.constant 0 : i32
    return %arg0, %c0_i32 : i32, i32
  }
  func.func @transform_1(%arg0: i32) -> (i32, i32) {
    %c0_i32 = arith.constant 0 : i32
    %c0_i32_0 = arith.constant 0 : i32
    %c0_i32_1 = arith.constant 0 : i32
    return %c0_i32, %c0_i32_0 : i32, i32
  }
  func.func @transform_2(%arg0: i32) -> (i32, i32) {
    %c0_i32 = arith.constant 0 : i32
    %c0_i32_0 = arith.constant 0 : i32
    %c0_i32_1 = arith.constant 0 : i32
    return %c0_i32, %c0_i32_0 : i32, i32
  }
  func.func @transform_3(%arg0: i32) -> (i32, i32) {
    %c0_i32 = arith.constant 0 : i32
    %c0_i32_0 = arith.constant 0 : i32
    %c0_i32_1 = arith.constant 0 : i32
    return %c0_i32, %c0_i32_0 : i32, i32
  }
  func.func @transform_4(%arg0: i32) -> (i32, i32) {
    %c0_i32 = arith.constant 0 : i32
    %c0_i32_0 = arith.constant 0 : i32
    %c0_i32_1 = arith.constant 0 : i32
    return %c0_i32, %c0_i32_0 : i32, i32
  }
  func.func @transform_5(%arg0: i32) -> (i32, i32) {
    %c0_i32 = arith.constant 0 : i32
    %c0_i32_0 = arith.constant 0 : i32
    %c0_i32_1 = arith.constant 0 : i32
    return %c0_i32, %c0_i32_0 : i32, i32
  }
  func.func @transform_6(%arg0: i32) -> (i32, i32) {
    %c0_i32 = arith.constant 0 : i32
    %c0_i32_0 = arith.constant 0 : i32
    %c0_i32_1 = arith.constant 0 : i32
    return %c0_i32, %c0_i32_0 : i32, i32
  }
  func.func @transform_7(%arg0: i32) -> (i32, i32) {
    %c0_i32 = arith.constant 0 : i32
    %c0_i32_0 = arith.constant 0 : i32
    return %arg0, %c0_i32 : i32, i32
  }
}

</mosaic_0001>

<bundles_post_ra>
// kernel: neural_network_forward.1
= control target key start
LH: loop header
LB: loop body
LE: loop exit
PB: predicated region body
PF: predicated region fallthrough
CT: control target
= control target key end

     0   :  { %12 = vsyncpa [#allocation3], 0  ;;  %s5173_s0 = inlined_call_operand.vmem [shape: f32[64,32], index: 0, kind: input, shape index: {}]   ;;  %s5174_s1 = inlined_call_operand.vmem [shape: f32[1,2432], index: 1, kind: input, shape index: {}]   ;;  %s5175_s2 = inlined_call_operand.vmem [shape: bf16[32,256], index: 2, kind: input, shape index: {}]   ;;  %s5176_s3 = inlined_call_operand.hbm [shape: bf16[256,512], index: 3, kind: input, shape index: {}]   ;;  %s5177_s4 = inlined_call_operand.hbm [shape: bf16[512,512], index: 4, kind: input, shape index: {}]   ;;  %s5178_s5 = inlined_call_operand.hbm [shape: bf16[512,1024], index: 5, kind: input, shape index: {}]   ;;  %s5179_s6 = inlined_call_operand.hbm [shape: bf16[1024,128], index: 6, kind: input, shape index: {}]   ;;  %s5180_s7 = inlined_call_operand.vmem [shape: f32[64,128], index: 7, kind: output, shape index: {}]  }
   0x1   :  { %13 = vsyncpa [#allocation5], 0 }
   0x2   :  { %14 = vsyncpa [#allocation8], 0  ;;  %s4673_s24 = smov 0  }
   0x3 LB: > { %s3923_s25 = sadd.s32 4294967295, %s4620_s24   ;;  %p3925_p0 = scmp.ge.s32.totalorder %s4620_s24, 1  ;;  %s4620_s24 = sphi %s4673_s24, %s20_s24  }
   0x4   : > { %p203_p1 = scmp.lt.s32.totalorder %s4620_s24, 3  ;;  %p4683_p2 = scmp.eq.s32.totalorder %s3923_s25, 0 }
   0x5   : > { %s4622_s28 = smov [#allocation4]   ;;  %s4623_s30 = smov [#allocation2]  }
   0x6   : > { %p4687_p3 = pnand %p3925_p0, %p203_p1  ;;  %s234_s29 = sshll.u32 %s4622_s28, 4  ;;  %s235_s29 = int_to_ptr.vmem [resolvable:$true] %s234_s29 }
   0x7   : > { %s221_s8 = sshll.u32 %s4623_s30, 4  ;;  %s4624_s10 = smov [#allocation6]   ;;  %s4693_s8 = int_to_ptr.vmem [resolvable:$true] %s221_s8 }
   0x8   : > { %p4458_p4 = pneg %p4687_p3  ;;  %s247_s11 = sshll.u32 %s4624_s10, 4  ;;  %s4701_s11 = int_to_ptr.vmem [resolvable:$true] %s247_s11 }
   0x9   : > { %s4509_s12 = scalar_lea.vmem %s235_s29, 16384  ;;  %p4517_p10 = scmp.lt.s32.totalorder %s235_s29, %s235_s29 }
   0xa   : > { %p4697_p5 = pnand %p4683_p2, %p4458_p4  ;;  %p4510_p7 = scmp.ne.s32.totalorder %s235_s29, %s4509_s12 }
   0xb   : > { %p4518_p11 = scmp.lt.s32.totalorder %s4509_s12, %s4509_s12 }
   0xc   : > { %p4500_p6 = pneg %p4697_p5 }
   0xd   : > { %p4519_p12 = por %p4518_p11, %p4517_p10 }
   0xe   : > { %p4512_p8 = pnand %p4510_p7, %p4500_p6 }
  0x10   : > { %p4513_p9 = pneg %p4512_p8 }
  0x12   : > { %p4520_p13 = pnand %p4519_p12, %p4513_p9 }
  0x14   : > { %4523 = shalt.err (!%p4520_p13)
}
  0x15   : > { %s4625_s13 = smov 256   ;;  %s4626_s14 = smov 16  }
  0x16   : > { %4464 = dma.hbm_to_vmem [thread:$0]  (!%p4697_p5), %s5177_s4, 16384, %s235_s29, [#allocation5], %s4625_s13, %s4625_s13, %s4626_s14  }
  0x17   : > { %s4535_s17 = scalar_lea.vmem %s4693_s8, 8192  ;;  %p4543_p7 = scmp.lt.s32.totalorder %s4693_s8, %s4693_s8 }
  0x18   : > { %p4536_p0 = scmp.ne.s32.totalorder %s4693_s8, %s4535_s17  ;;  %p4544_p8 = scmp.lt.s32.totalorder %s4535_s17, %s4535_s17 }
  0x1a   : > { %p4538_p1 = pnand %p4536_p0, %p4500_p6  ;;  %p4545_p9 = por %p4544_p8, %p4543_p7 }
  0x1c   : > { %p4539_p4 = pneg %p4538_p1 }
  0x1e   : > { %p4546_p10 = pnand %p4545_p9, %p4539_p4 }
  0x20   : > { %4549 = shalt.err (!%p4546_p10)
}
  0x21   : > { %4461 = dma.hbm_to_vmem [thread:$0]  (!%p4697_p5), %s5176_s3, 8192, %s4693_s8, [#allocation3], %s4625_s13, %s4625_s13, %s4626_s14  }
  0x22   : > { %s4561_s20 = scalar_lea.vmem %s4701_s11, 32768  ;;  %p4569_p0 = scmp.lt.s32.totalorder %s4701_s11, %s4701_s11 }
  0x23   : > { %p4562_p11 = scmp.ne.s32.totalorder %s4701_s11, %s4561_s20  ;;  %p4570_p1 = scmp.lt.s32.totalorder %s4561_s20, %s4561_s20 }
  0x25   : > { %p4564_p12 = pnand %p4562_p11, %p4500_p6  ;;  %p4571_p4 = por %p4570_p1, %p4569_p0 }
  0x27   : > { %p4565_p13 = pneg %p4564_p12 }
  0x29   : > { %p4572_p7 = pnand %p4571_p4, %p4565_p13 }
  0x2b   : > { %4575 = shalt.err (!%p4572_p7)
}
  0x2c   : > { %s4627_s21 = smov 512   ;;  %s4628_s22 = smov 32  }
  0x2d   : > { %4467 = dma.hbm_to_vmem [thread:$0]  (!%p4697_p5), %s5178_s5, 32768, %s4701_s11, [#allocation5], %s4627_s21, %s4627_s21, %s4628_s22  }
  0x2e   : > { %s4629_s29 = smov [#allocation7]  }
  0x2f   : > { %s260_s30 = sshll.u32 %s4629_s29, 4  ;;  %s261_s30 = int_to_ptr.vmem [resolvable:$true] %s260_s30 }
  0x30   : > { %s4587_s8 = scalar_lea.vmem %s261_s30, 8192  ;;  %p4595_p11 = scmp.lt.s32.totalorder %s261_s30, %s261_s30 }
  0x31   : > { %p4588_p8 = scmp.ne.s32.totalorder %s261_s30, %s4587_s8  ;;  %p4596_p12 = scmp.lt.s32.totalorder %s4587_s8, %s4587_s8 }
  0x33   : > { %p4590_p9 = pnand %p4588_p8, %p4500_p6  ;;  %p4597_p13 = por %p4596_p12, %p4595_p11 }
  0x35   : > { %p4591_p10 = pneg %p4590_p9 }
  0x37   : > { %p4598_p0 = pnand %p4597_p13, %p4591_p10 }
  0x39   : > { %4601 = shalt.err (!%p4598_p0)
}
  0x3a   : > { %s4630_s10 = smov 64   ;;  %s4631_s12 = smov 4  }
  0x3b   : > { %4470 = dma.hbm_to_vmem [thread:$0]  (!%p4697_p5), %s5179_s6, 8192, %s261_s30, [#allocation8], %s4630_s10, %s4630_s10, %s4631_s12  }
  0x3c   : > { %285 = sbr.rel (%p4687_p3) target bundleno = 1369 (0x559), region = 48 }
  0x41   : > { %4607 = dma.done.wait (%p4683_p2), [#allocation3], 8192  }
  0x42   : > { %4609 = vsyncadd (%p4683_p2), [#allocation3], 4294959104 }
  0x43   : > { %4611 = dma.done.wait (%p4683_p2), [#allocation5], 49152  }
  0x44   : > { %4613 = vsyncadd (%p4683_p2), [#allocation5], 4294918144 }
  0x45   : > { %4615 = dma.done.wait (%p4683_p2), [#allocation8], 8192  }
  0x46   : > { %4617 = vsyncadd (%p4683_p2), [#allocation8], 4294959104  ;;  %s3936_s27 = sshll.u32 %s3923_s25, 2  ;;  %v4632_v0 = vmov 0.0   ;;  %v348_v1 = vld [vmem:[%s5175_s2 + $0x18] sm:$0xff]  ;;  %v347_v2 = vld [vmem:[%s5175_s2 + $0x10] sm:$0xff] }
  0x47   : > { %446 = vmatprep.mubr.f32.mxu0 %v4632_v0  ;;  %p330_p3 = scmp.lt.s32.totalorder %s3936_s27, 7  ;;  %v346_v3 = vld [vmem:[%s5175_s2 + $0x8] sm:$0xff]  ;;  %v356_v4 = vunpack.c.h.bf16 %v348_v1  ;;  %v355_v5 = vunpack.c.l.bf16 %v348_v1  ;;  %v354_v6 = vunpack.c.h.bf16 %v347_v2  ;;  %v353_v7 = vunpack.c.l.bf16 %v347_v2  ;;  %v345_v8 = vld [vmem:[%s5175_s2] sm:$0xff]  ;;  %v509_v9 = vld [vmem:[#allocation2 + $0xf0] sm:$0xff] }
  0x48   : > { %v352_v10 = vunpack.c.h.bf16 %v346_v3  ;;  %v604_v11 = vunpack.c.h.bf16 %v509_v9  ;;  %v603_v12 = vunpack.c.l.bf16 %v509_v9  ;;  %v507_v13 = vld [vmem:[#allocation2 + $0xe0] sm:$0xff]  ;;  %v351_v14 = vunpack.c.l.bf16 %v346_v3  ;;  %v510_v15 = vld [vmem:[#allocation2 + $0xf8] sm:$0xff]  ;;  %v505_v17 = vld [vmem:[#allocation2 + $0xd0] sm:$0xff] }
  0x49   : > { %s5185_s27 = smov (!%p330_p3, %s3936_s27), 7  ;;  %406 = vmatprep.subr.mxu0 %v356_v4  ;;  %v600_v16 = vunpack.c.h.bf16 %v507_v13  ;;  %v350_v18 = vunpack.c.h.bf16 %v345_v8  ;;  %v599_v19 = vunpack.c.l.bf16 %v507_v13  ;;  %v596_v20 = vunpack.c.h.bf16 %v505_v17  ;;  %v508_v22 = vld [vmem:[#allocation2 + $0xe8] sm:$0xff]  ;;  %v503_v24 = vld [vmem:[#allocation2 + $0xc0] sm:$0xff]  ;;  %v506_v28 = vld [vmem:[#allocation2 + $0xd8] sm:$0xff] }
  0x4a   : > { %s3937_s19 = sshll.u32 %s5185_s27, 3  ;;  %407 = vmatpush1.msra.mxu0 %v355_v5  ;;  %693 = vmatprep.subr.mxu1 %v604_v11  ;;  %v349_v21 = vunpack.c.l.bf16 %v345_v8  ;;  %v595_v23 = vunpack.c.l.bf16 %v505_v17  ;;  %v606_v25 = vunpack.c.h.bf16 %v510_v15  ;;  %vm369_vm0 = vcmask 261120   ;;  %v504_v32 = vld [vmem:[#allocation2 + $0xc8] sm:$0xff]  ;;  %v501_v34 = vld [vmem:[#allocation2 + $0xb0] sm:$0xff]  ;;  %v502_v38 = vld [vmem:[#allocation2 + $0xb8] sm:$0xff] }
  0x4b   : > { %408 = vmatprep.subr.mxu0 %v354_v6  ;;  %s4784_s22 = scalar_lea.vmem %s5173_s0, %s3937_s19  ;;  %694 = vmatpush1.msra.mxu1 %v603_v12  ;;  %v605_v27 = vunpack.c.l.bf16 %v510_v15  ;;  %v602_v29 = vunpack.c.h.bf16 %v508_v22  ;;  %v592_v30 = vunpack.c.h.bf16 %v503_v24  ;;  %v601_v31 = vunpack.c.l.bf16 %v508_v22  ;;  %v499_v43 = vld [vmem:[#allocation2 + $0xa0] sm:$0xff]  ;;  %v500_v44 = vld [vmem:[#allocation2 + $0xa8] sm:$0xff]  ;;  %v497_v48 = vld [vmem:[#allocation2 + $0x90] sm:$0xff]  ;;  %s5164_s16 = scalar_lea.vmem %s5180_s7, %s3937_s19 }
  0x4c   : > { %409 = vmatpush1.msra.mxu0 %v353_v7  ;;  %695 = vmatprep.subr.mxu1 %v600_v16  ;;  %v341_v26 = vld [vmem:[%s4784_s22] sm:$0xff]  ;;  %v591_v33 = vunpack.c.l.bf16 %v503_v24  ;;  %v598_v35 = vunpack.c.h.bf16 %v506_v28  ;;  %v342_v36 = vld [vmem:[%s4784_s22 + $0x8] sm:$0xff]  ;;  %v597_v37 = vunpack.c.l.bf16 %v506_v28  ;;  %v594_v39 = vunpack.c.h.bf16 %v504_v32  ;;  %v343_v46 = vld [vmem:[%s4784_s22 + $0x10] sm:$0xff] }
  0x4d   : > { %410 = vmatprep.subr.mxu0 %v352_v10  ;;  %696 = vmatpush1.msra.mxu1 %v599_v19  ;;  %v588_v40 = vunpack.c.h.bf16 %v501_v34  ;;  %v593_v41 = vunpack.c.l.bf16 %v504_v32  ;;  %v587_v42 = vunpack.c.l.bf16 %v501_v34  ;;  %v590_v45 = vunpack.c.h.bf16 %v502_v38  ;;  %v498_v51 = vld [vmem:[#allocation2 + $0x98] sm:$0xff]  ;;  %v495_v54 = vld [vmem:[#allocation2 + $0x80] sm:$0xff]  ;;  %v496_v56 = vld [vmem:[#allocation2 + $0x88] sm:$0xff] }
  0x4e   : > { %411 = vmatpush1.msra.mxu0 %v351_v14  ;;  %697 = vmatprep.subr.mxu1 %v596_v20  ;;  %v589_v47 = vunpack.c.l.bf16 %v502_v38  ;;  %v584_v49 = vunpack.c.h.bf16 %v499_v43  ;;  %v586_v50 = vunpack.c.h.bf16 %v500_v44  ;;  %v585_v52 = vunpack.c.l.bf16 %v500_v44  ;;  %v344_v57 = vld [vmem:[%s4784_s22 + $0x18] sm:$0xff]  ;;  %v493_v60 = vld [vmem:[#allocation2 + $0x70] sm:$0xff]  ;;  %v491_v3 = vld [vmem:[#allocation2 + $0x60] sm:$0xff] }
  0x4f   : > { %412 = vmatprep.subr.mxu0 %v350_v18  ;;  %698 = vmatpush1.msra.mxu1 %v595_v23  ;;  %v583_v53 = vunpack.c.l.bf16 %v499_v43  ;;  %v580_v55 = vunpack.c.h.bf16 %v497_v48  ;;  %v582_v58 = vunpack.c.h.bf16 %v498_v51  ;;  %v579_v59 = vunpack.c.l.bf16 %v497_v48  ;;  %v494_v63 = vld [vmem:[#allocation2 + $0x78] sm:$0xff]  ;;  %v492_v5 = vld [vmem:[#allocation2 + $0x68] sm:$0xff]  ;;  %v489_v8 = vld [vmem:[#allocation2 + $0x50] sm:$0xff] }
  0x50   : > { %413 = vmatpush1.msra.mxu0 %v349_v21  ;;  %699 = vmatprep.subr.mxu1 %v592_v30  ;;  %v581_v61 = vunpack.c.l.bf16 %v498_v51  ;;  %v576_v62 = vunpack.c.h.bf16 %v495_v54  ;;  %v578_v1 = vunpack.c.h.bf16 %v496_v56  ;;  %v575_v2 = vunpack.c.l.bf16 %v495_v54  ;;  %v490_v11 = vld [vmem:[#allocation2 + $0x58] sm:$0xff]  ;;  %v487_v14 = vld [vmem:[#allocation2 + $0x40] sm:$0xff]  ;;  %v488_v17 = vld [vmem:[#allocation2 + $0x48] sm:$0xff] }
  0x51   : > { %3940 = vmatmul.mubr.msk.f32.vlgmr.msra.gmra.mxu0 %vm369_vm0, %v341_v26  ;;  %782 = vmatprep.subr.mxu0 %v606_v25  ;;  %v577_v4 = vunpack.c.l.bf16 %v496_v56  ;;  %v574_v6 = vunpack.c.h.bf16 %v494_v63  ;;  %v571_v7 = vunpack.c.l.bf16 %v493_v60  ;;  %v573_v9 = vunpack.c.l.bf16 %v494_v63  ;;  %v485_v20 = vld [vmem:[#allocation2 + $0x30] sm:$0xff]  ;;  %v486_v23 = vld [vmem:[#allocation2 + $0x38] sm:$0xff]  ;;  %v483_v26 = vld [vmem:[#allocation2 + $0x20] sm:$0xff] }
  0x52   : > { %452 = vmatprep.mubr.f32.mxu0 %v4632_v0  ;;  %783 = vmatpush1.msra.mxu0 %v605_v27  ;;  %v568_v10 = vunpack.c.h.bf16 %v491_v3  ;;  %v570_v12 = vunpack.c.h.bf16 %v492_v5  ;;  %v567_v13 = vunpack.c.l.bf16 %v491_v3  ;;  %v569_v15 = vunpack.c.l.bf16 %v492_v5  ;;  %v481_v32 = vld [vmem:[#allocation2 + $0x10] sm:$0xff]  ;;  %v479_v38 = vld [vmem:[#allocation2] sm:$0xff] }
  0x53   : > { %784 = vmatprep.subr.mxu0 %v602_v29  ;;  %700 = vmatpush1.msra.mxu1 %v591_v33  ;;  %v564_v16 = vunpack.c.h.bf16 %v489_v8  ;;  %v566_v18 = vunpack.c.h.bf16 %v490_v11  ;;  %v563_v19 = vunpack.c.l.bf16 %v489_v8  ;;  %v565_v21 = vunpack.c.l.bf16 %v490_v11  ;;  %v484_v29 = vld [vmem:[#allocation2 + $0x28] sm:$0xff]  ;;  %v541_v44 = vld [vmem:[#allocation2 + $0x1f0] sm:$0xff] }
  0x54   : > { %785 = vmatpush1.msra.mxu0 %v601_v31  ;;  %701 = vmatprep.subr.mxu1 %v588_v40  ;;  %v560_v22 = vunpack.c.h.bf16 %v487_v14  ;;  %v562_v24 = vunpack.c.h.bf16 %v488_v17  ;;  %v559_v25 = vunpack.c.l.bf16 %v487_v14  ;;  %v561_v27 = vunpack.c.l.bf16 %v488_v17  ;;  %v537_v56 = vld [vmem:[#allocation2 + $0x1d0] sm:$0xff] }
  0x55   : > { %3941 = vmatmul.mubr.msk.f32.gmra.mxu0 %vm369_vm0, %v342_v36  ;;  %786 = vmatprep.subr.mxu0 %v598_v35  ;;  %v556_v28 = vunpack.c.h.bf16 %v485_v20  ;;  %v558_v30 = vunpack.c.h.bf16 %v486_v23  ;;  %v555_v31 = vunpack.c.l.bf16 %v485_v20  ;;  %v557_v33 = vunpack.c.l.bf16 %v486_v23  ;;  %v482_v35 = vld [vmem:[#allocation2 + $0x18] sm:$0xff] }
  0x56   : > { %458 = vmatprep.mubr.f32.mxu0 %v4632_v0  ;;  %787 = vmatpush1.msra.mxu0 %v597_v37  ;;  %v552_v34 = vunpack.c.h.bf16 %v483_v26  ;;  %v554_v36 = vunpack.c.h.bf16 %v484_v29  ;;  %v551_v37 = vunpack.c.l.bf16 %v483_v26  ;;  %v548_v40 = vunpack.c.h.bf16 %v481_v32 }
  0x57   : > { %788 = vmatprep.subr.mxu0 %v594_v39  ;;  %702 = vmatpush1.msra.mxu1 %v587_v42  ;;  %v553_v39 = vunpack.c.l.bf16 %v484_v29  ;;  %v550_v42 = vunpack.c.h.bf16 %v482_v35  ;;  %v547_v43 = vunpack.c.l.bf16 %v481_v32 }
  0x58   : > { %789 = vmatpush1.msra.mxu0 %v593_v41  ;;  %703 = vmatprep.subr.mxu1 %v584_v49  ;;  %v480_v41 = vld [vmem:[#allocation2 + $0x8] sm:$0xff]  ;;  %v543_v49 = vunpack.c.l.bf16 %v479_v38 }
  0x59   : > { %3942 = vmatmul.mubr.msk.f32.gmra.mxu0 %vm369_vm0, %v343_v46  ;;  %790 = vmatprep.subr.mxu0 %v590_v45  ;;  %v549_v45 = vunpack.c.l.bf16 %v482_v35  ;;  %v544_v46 = vunpack.c.h.bf16 %v479_v38  ;;  %v546_v48 = vunpack.c.h.bf16 %v480_v41  ;;  %v545_v51 = vunpack.c.l.bf16 %v480_v41 }
  0x5a   : > { %464 = vmatprep.mubr.f32.mxu0 %v4632_v0  ;;  %791 = vmatpush1.msra.mxu0 %v589_v47  ;;  %v572_v0 = vunpack.c.h.bf16 %v493_v60  ;;  %v542_v47 = vld [vmem:[#allocation2 + $0x1f8] sm:$0xff] }
  0x5b   : > { %792 = vmatprep.subr.mxu0 %v586_v50  ;;  %704 = vmatpush1.msra.mxu1 %v583_v53  ;;  %v539_v50 = vld [vmem:[#allocation2 + $0x1e0] sm:$0xff]  ;;  %v540_v53 = vld [vmem:[#allocation2 + $0x1e8] sm:$0xff]  ;;  %v670_v54 = vunpack.c.h.bf16 %v542_v47 }
  0x5c   : > { %793 = vmatpush1.msra.mxu0 %v585_v52  ;;  %705 = vmatprep.subr.mxu1 %v580_v55  ;;  %v668_v52 = vunpack.c.h.bf16 %v541_v44  ;;  %v667_v55 = vunpack.c.l.bf16 %v541_v44  ;;  %v666_v60 = vunpack.c.h.bf16 %v540_v53  ;;  %v665_v63 = vunpack.c.l.bf16 %v540_v53 }
  0x5d   : > { %3943 = vmatmul.mubr.msk.f32.gmra.mxu0 %vm369_vm0, %v344_v57  ;;  %794 = vmatprep.subr.mxu0 %v582_v58  ;;  %v669_v57 = vunpack.c.l.bf16 %v542_v47  ;;  %v664_v58 = vunpack.c.h.bf16 %v539_v50 }
  0x5e   : > { %706 = vmatpush1.msra.mxu1 %v579_v59  ;;  %795 = vmatpush1.msra.mxu0 %v581_v61  ;;  %v538_v59 = vld [vmem:[#allocation2 + $0x1d8] sm:$0xff]  ;;  %v663_v61 = vunpack.c.l.bf16 %v539_v50 }
  0x5f   : > { %707 = vmatprep.subr.mxu1 %v576_v62  ;;  %796 = vmatprep.subr.mxu0 %v578_v1  ;;  %v535_v62 = vld [vmem:[#allocation2 + $0x1c0] sm:$0xff]  ;;  %v660_v1 = vunpack.c.h.bf16 %v537_v56  ;;  %v662_v3 = vunpack.c.h.bf16 %v538_v59  ;;  %v661_v5 = vunpack.c.l.bf16 %v538_v59 }
  0x60   : > { %708 = vmatpush1.msra.mxu1 %v575_v2  ;;  %797 = vmatpush1.msra.mxu0 %v577_v4  ;;  %v536_v2 = vld [vmem:[#allocation2 + $0x1c8] sm:$0xff]  ;;  %v659_v4 = vunpack.c.l.bf16 %v537_v56 }
  0x61   : > { %709 = vmatprep.subr.mxu1 %v572_v0  ;;  %798 = vmatprep.subr.mxu0 %v574_v6  ;;  %v533_v0 = vld [vmem:[#allocation2 + $0x1b0] sm:$0xff]  ;;  %v656_v6 = vunpack.c.h.bf16 %v535_v62  ;;  %v658_v8 = vunpack.c.h.bf16 %v536_v2  ;;  %v657_v11 = vunpack.c.l.bf16 %v536_v2 }
  0x62   : > { %710 = vmatpush1.msra.mxu1 %v571_v7  ;;  %799 = vmatpush1.msra.mxu0 %v573_v9  ;;  %v534_v7 = vld [vmem:[#allocation2 + $0x1b8] sm:$0xff]  ;;  %v655_v9 = vunpack.c.l.bf16 %v535_v62 }
  0x63   : > { %711 = vmatprep.subr.mxu1 %v568_v10  ;;  %800 = vmatprep.subr.mxu0 %v570_v12  ;;  %v531_v10 = vld [vmem:[#allocation2 + $0x1a0] sm:$0xff]  ;;  %v652_v12 = vunpack.c.h.bf16 %v533_v0  ;;  %v654_v14 = vunpack.c.h.bf16 %v534_v7  ;;  %v653_v17 = vunpack.c.l.bf16 %v534_v7 }
  0x64   : > { %712 = vmatpush1.msra.mxu1 %v567_v13  ;;  %801 = vmatpush1.msra.mxu0 %v569_v15  ;;  %v532_v13 = vld [vmem:[#allocation2 + $0x1a8] sm:$0xff]  ;;  %v651_v15 = vunpack.c.l.bf16 %v533_v0 }
  0x65   : > { %713 = vmatprep.subr.mxu1 %v564_v16  ;;  %802 = vmatprep.subr.mxu0 %v566_v18  ;;  %v529_v16 = vld [vmem:[#allocation2 + $0x190] sm:$0xff]  ;;  %v648_v18 = vunpack.c.h.bf16 %v531_v10  ;;  %v650_v20 = vunpack.c.h.bf16 %v532_v13  ;;  %v649_v23 = vunpack.c.l.bf16 %v532_v13 }
  0x66   : > { %714 = vmatpush1.msra.mxu1 %v563_v19  ;;  %803 = vmatpush1.msra.mxu0 %v565_v21  ;;  %v530_v19 = vld [vmem:[#allocation2 + $0x198] sm:$0xff]  ;;  %v647_v21 = vunpack.c.l.bf16 %v531_v10 }
  0x67   : > { %715 = vmatprep.subr.mxu1 %v560_v22  ;;  %804 = vmatprep.subr.mxu0 %v562_v24  ;;  %v527_v22 = vld [vmem:[#allocation2 + $0x180] sm:$0xff]  ;;  %v644_v24 = vunpack.c.h.bf16 %v529_v16  ;;  %v646_v26 = vunpack.c.h.bf16 %v530_v19  ;;  %v645_v29 = vunpack.c.l.bf16 %v530_v19 }
  0x68   : > { %716 = vmatpush1.msra.mxu1 %v559_v25  ;;  %805 = vmatpush1.msra.mxu0 %v561_v27  ;;  %v528_v25 = vld [vmem:[#allocation2 + $0x188] sm:$0xff]  ;;  %v643_v27 = vunpack.c.l.bf16 %v529_v16 }
  0x69   : > { %717 = vmatprep.subr.mxu1 %v556_v28  ;;  %806 = vmatprep.subr.mxu0 %v558_v30  ;;  %v525_v28 = vld [vmem:[#allocation2 + $0x170] sm:$0xff]  ;;  %v640_v30 = vunpack.c.h.bf16 %v527_v22  ;;  %v642_v32 = vunpack.c.h.bf16 %v528_v25  ;;  %v641_v35 = vunpack.c.l.bf16 %v528_v25 }
  0x6a   : > { %718 = vmatpush1.msra.mxu1 %v555_v31  ;;  %807 = vmatpush1.msra.mxu0 %v557_v33  ;;  %v526_v31 = vld [vmem:[#allocation2 + $0x178] sm:$0xff]  ;;  %v639_v33 = vunpack.c.l.bf16 %v527_v22 }
  0x6b   : > { %719 = vmatprep.subr.mxu1 %v552_v34  ;;  %808 = vmatprep.subr.mxu0 %v554_v36  ;;  %v523_v34 = vld [vmem:[#allocation2 + $0x160] sm:$0xff]  ;;  %v636_v36 = vunpack.c.h.bf16 %v525_v28  ;;  %v638_v38 = vunpack.c.h.bf16 %v526_v31  ;;  %v637_v41 = vunpack.c.l.bf16 %v526_v31 }
  0x6c   : > { %720 = vmatpush1.msra.mxu1 %v551_v37  ;;  %809 = vmatpush1.msra.mxu0 %v553_v39  ;;  %v524_v37 = vld [vmem:[#allocation2 + $0x168] sm:$0xff]  ;;  %v635_v39 = vunpack.c.l.bf16 %v525_v28 }
  0x6d   : > { %721 = vmatprep.subr.mxu1 %v548_v40  ;;  %810 = vmatprep.subr.mxu0 %v550_v42  ;;  %v521_v40 = vld [vmem:[#allocation2 + $0x150] sm:$0xff]  ;;  %v632_v42 = vunpack.c.h.bf16 %v523_v34  ;;  %v634_v44 = vunpack.c.h.bf16 %v524_v37  ;;  %v633_v47 = vunpack.c.l.bf16 %v524_v37 }
  0x6e   : > { %722 = vmatpush1.msra.mxu1 %v547_v43  ;;  %811 = vmatpush1.msra.mxu0 %v549_v45  ;;  %v522_v43 = vld [vmem:[#allocation2 + $0x158] sm:$0xff]  ;;  %v631_v45 = vunpack.c.l.bf16 %v523_v34 }
  0x6f   : > { %723 = vmatprep.subr.mxu1 %v544_v46  ;;  %812 = vmatprep.subr.mxu0 %v546_v48  ;;  %v519_v46 = vld [vmem:[#allocation2 + $0x140] sm:$0xff]  ;;  %v628_v48 = vunpack.c.h.bf16 %v521_v40  ;;  %v630_v50 = vunpack.c.h.bf16 %v522_v43 }
  0x70   : > { %724 = vmatpush1.msra.mxu1 %v543_v49  ;;  %813 = vmatpush1.msra.mxu0 %v545_v51  ;;  %v520_v49 = vld [vmem:[#allocation2 + $0x148] sm:$0xff]  ;;  %v627_v51 = vunpack.c.l.bf16 %v521_v40  ;;  %v624_v53 = vunpack.c.h.bf16 %v519_v46 }
  0x71   : > { %725 = vmatprep.subr.mxu1 %v668_v52  ;;  %814 = vmatprep.subr.mxu0 %v670_v54  ;;  %v629_v52 = vunpack.c.l.bf16 %v522_v43  ;;  %v626_v54 = vunpack.c.h.bf16 %v520_v49  ;;  %v625_v56 = vunpack.c.l.bf16 %v520_v49 }
  0x72   : > { %726 = vmatpush2.msra.mxu1 %v667_v55  ;;  %815 = vmatpush2.msra.mxu0 %v669_v57  ;;  %v623_v55 = vunpack.c.l.bf16 %v519_v46  ;;  %v517_v57 = vld [vmem:[#allocation2 + $0x130] sm:$0xff] }
  0x73   : > { %727 = vmatprep.subr.mxu1 %v664_v58  ;;  %816 = vmatprep.subr.mxu0 %v666_v60  ;;  %v518_v58 = vld [vmem:[#allocation2 + $0x138] sm:$0xff]  ;;  %v620_v59 = vunpack.c.h.bf16 %v517_v57  ;;  %v619_v62 = vunpack.c.l.bf16 %v517_v57  ;;  %v975_v57 = vld [vmem:[#allocation4 + $0x2c0] sm:$0xff] }
  0x74   : > { %728 = vmatpush2.msra.mxu1 %v663_v61  ;;  %817 = vmatpush2.msra.mxu0 %v665_v63  ;;  %v622_v60 = vunpack.c.h.bf16 %v518_v58  ;;  %v621_v61 = vunpack.c.l.bf16 %v518_v58  ;;  %v515_v63 = vld [vmem:[#allocation2 + $0x120] sm:$0xff] }
  0x75   : > { %729 = vmatprep.subr.mxu1 %v660_v1  ;;  %818 = vmatprep.subr.mxu0 %v662_v3  ;;  %v516_v1 = vld [vmem:[#allocation2 + $0x128] sm:$0xff]  ;;  %v616_v2 = vunpack.c.h.bf16 %v515_v63  ;;  %v615_v0 = vunpack.c.l.bf16 %v515_v63 }
  0x76   : > { %730 = vmatpush2.msra.mxu1 %v659_v4  ;;  %819 = vmatpush2.msra.mxu0 %v661_v5  ;;  %v618_v3 = vunpack.c.h.bf16 %v516_v1  ;;  %v617_v4 = vunpack.c.l.bf16 %v516_v1  ;;  %v513_v5 = vld [vmem:[#allocation2 + $0x110] sm:$0xff] }
  0x77   : > { %731 = vmatprep.subr.mxu1 %v656_v6  ;;  %820 = vmatprep.subr.mxu0 %v658_v8  ;;  %v514_v6 = vld [vmem:[#allocation2 + $0x118] sm:$0xff]  ;;  %v612_v7 = vunpack.c.h.bf16 %v513_v5  ;;  %v611_v10 = vunpack.c.l.bf16 %v513_v5  ;;  %v973_v5 = vld [vmem:[#allocation4 + $0x2b0] sm:$0xff] }
  0x78   : > { %732 = vmatpush2.msra.mxu1 %v655_v9  ;;  %821 = vmatpush2.msra.mxu0 %v657_v11  ;;  %v614_v8 = vunpack.c.h.bf16 %v514_v6  ;;  %v613_v9 = vunpack.c.l.bf16 %v514_v6  ;;  %v511_v11 = vld [vmem:[#allocation2 + $0x100] sm:$0xff] }
  0x79   : > { %733 = vmatprep.subr.mxu1 %v652_v12  ;;  %822 = vmatprep.subr.mxu0 %v654_v14  ;;  %v512_v12 = vld [vmem:[#allocation2 + $0x108] sm:$0xff]  ;;  %v608_v13 = vunpack.c.h.bf16 %v511_v11  ;;  %v607_v16 = vunpack.c.l.bf16 %v511_v11  ;;  %v971_v11 = vld [vmem:[#allocation4 + $0x2a0] sm:$0xff] }
  0x7a   : > { %734 = vmatpush2.msra.mxu1 %v651_v15  ;;  %823 = vmatpush2.msra.mxu0 %v653_v17  ;;  %v610_v14 = vunpack.c.h.bf16 %v512_v12  ;;  %v609_v15 = vunpack.c.l.bf16 %v512_v12  ;;  %v917_v17 = vld [vmem:[#allocation4 + $0xf0] sm:$0xff] }
  0x7b   : > { %735 = vmatprep.subr.mxu1 %v648_v18  ;;  %824 = vmatprep.subr.mxu0 %v650_v20  ;;  %v981_v18 = vld [vmem:[#allocation4 + $0x2f0] sm:$0xff]  ;;  %v1076_v19 = vunpack.c.h.bf16 %v917_v17  ;;  %v1075_v37 = vunpack.c.l.bf16 %v917_v17 }
  0x7c   : > { %736 = vmatpush2.msra.mxu1 %v647_v21  ;;  %825 = vmatpush2.msra.mxu0 %v649_v23  ;;  %v1204_v20 = vunpack.c.h.bf16 %v981_v18  ;;  %v359_v21 = vlaneseq  ;;  %v969_v17 = vld [vmem:[#allocation4 + $0x290] sm:$0xff] }
  0x7d   : > { %737 = vmatprep.subr.mxu1 %v644_v24  ;;  %826 = vmatprep.subr.mxu0 %v646_v26  ;;  %v357_v24 = vld [vmem:[%s5174_s1] sm:$0x3] }
  0x7e   : > { %738 = vmatpush2.msra.mxu1 %v643_v27  ;;  %827 = vmatpush2.msra.mxu0 %v645_v29  ;;  %v4797_v22 = vshrl.u32 %v359_v21, 7  ;;  %v1183_v21 = vunpack.c.l.bf16 %v971_v11 }
  0x7f   : > { %739 = vmatprep.subr.mxu1 %v640_v30  ;;  %828 = vmatprep.subr.mxu0 %v642_v32  ;;  %v915_v32 = vld [vmem:[#allocation4 + $0xe0] sm:$0xff] }
  0x80   : > { %740 = vmatpush2.msra.mxu1 %v639_v33  ;;  %829 = vmatpush2.msra.mxu0 %v641_v35  ;;  %v4800_v23 = vsub.s32 0, %v4797_v22  ;;  %v4806_v25 = vsub.s32 1, %v4797_v22  ;;  %v979_v33 = vld [vmem:[#allocation4 + $0x2e0] sm:$0xff] }
  0x81   : > { %741 = vmatprep.subr.mxu1 %v636_v36  ;;  %830 = vmatprep.subr.mxu0 %v638_v38  ;;  %v1203_v38 = vunpack.c.l.bf16 %v981_v18 }
  0x82   : > { %742 = vmatpush2.msra.mxu1 %v635_v39  ;;  %831 = vmatpush2.msra.mxu0 %v637_v41  ;;  %v362_v26 = vrot.slane %v357_v24, %v4800_v23  ;;  %v366_v27 = vrot.slane %v357_v24, %v4806_v25  ;;  %v1072_v41 = vunpack.c.h.bf16 %v915_v32  ;;  %v903_v24 = vld [vmem:[#allocation4 + $0x80] sm:$0xff] }
  0x83   : > { %743 = vmatprep.subr.mxu1 %v632_v42  ;;  %832 = vmatprep.subr.mxu0 %v634_v44  ;;  %v1200_v42 = vunpack.c.h.bf16 %v979_v33  ;;  %v913_v44 = vld [vmem:[#allocation4 + $0xd0] sm:$0xff] }
  0x84   : > { %744 = vmatpush2.msra.mxu1 %v631_v45  ;;  %833 = vmatpush2.msra.mxu0 %v633_v47  ;;  %v977_v45 = vld [vmem:[#allocation4 + $0x2d0] sm:$0xff] }
  0x85   : > { %745 = vmatprep.subr.mxu1 %v628_v48  ;;  %834 = vmatprep.subr.mxu0 %v630_v50  ;;  %v1071_v50 = vunpack.c.l.bf16 %v915_v32  ;;  %v1195_v63 = vunpack.c.l.bf16 %v977_v45  ;;  %v965_v32 = vld [vmem:[#allocation4 + $0x270] sm:$0xff] }
  0x86   : > { %746 = vmatpush2.msra.mxu1 %v627_v51  ;;  %835 = vmatpush2.msra.mxu0 %v629_v52  ;;  %v1199_v51 = vunpack.c.l.bf16 %v979_v33  ;;  %v1048_v33 = vunpack.c.h.bf16 %v903_v24 }
  0x87   : > { %747 = vmatprep.subr.mxu1 %v624_v53  ;;  %836 = vmatprep.subr.mxu0 %v626_v54  ;;  %v1068_v53 = vunpack.c.h.bf16 %v913_v44  ;;  %v1196_v54 = vunpack.c.h.bf16 %v977_v45 }
  0x88   : > { %748 = vmatpush2.msra.mxu1 %v623_v55  ;;  %837 = vmatpush2.msra.mxu0 %v625_v56  ;;  %v911_v56 = vld [vmem:[#allocation4 + $0xc0] sm:$0xff] }
  0x89   : > { %749 = vmatprep.subr.mxu1 %v620_v59  ;;  %838 = vmatprep.subr.mxu0 %v622_v60 }
  0x8a   : > { %750 = vmatpush2.msra.mxu1 %v619_v62  ;;  %839 = vmatpush2.msra.mxu0 %v621_v61  ;;  %v1067_v62 = vunpack.c.l.bf16 %v913_v44  ;;  %v961_v44 = vld [vmem:[#allocation4 + $0x250] sm:$0xff] }
  0x8b   : > { %751 = vmatprep.subr.mxu1 %v616_v2  ;;  %840 = vmatprep.subr.mxu0 %v618_v3  ;;  %v1064_v2 = vunpack.c.h.bf16 %v911_v56  ;;  %v1192_v3 = vunpack.c.h.bf16 %v975_v57 }
  0x8c   : > { %752 = vmatpush2.msra.mxu1 %v615_v0  ;;  %841 = vmatpush2.msra.mxu0 %v617_v4  ;;  %v909_v0 = vld [vmem:[#allocation4 + $0xb0] sm:$0xff] }
  0x8d   : > { %753 = vmatprep.subr.mxu1 %v612_v7  ;;  %842 = vmatprep.subr.mxu0 %v614_v8  ;;  %v1063_v8 = vunpack.c.l.bf16 %v911_v56  ;;  %v1060_v12 = vunpack.c.h.bf16 %v909_v0  ;;  %v957_v56 = vld [vmem:[#allocation4 + $0x230] sm:$0xff] }
  0x8e   : > { %754 = vmatpush2.msra.mxu1 %v611_v10  ;;  %843 = vmatpush2.msra.mxu0 %v613_v9  ;;  %v1191_v9 = vunpack.c.l.bf16 %v975_v57  ;;  %v907_v10 = vld [vmem:[#allocation4 + $0xa0] sm:$0xff] }
  0x8f   : > { %755 = vmatprep.subr.mxu1 %v608_v13  ;;  %844 = vmatprep.subr.mxu0 %v610_v14  ;;  %v1188_v13 = vunpack.c.h.bf16 %v973_v5  ;;  %v1059_v14 = vunpack.c.l.bf16 %v909_v0  ;;  %v1056_v18 = vunpack.c.h.bf16 %v907_v10  ;;  %v953_v0 = vld [vmem:[#allocation4 + $0x210] sm:$0xff] }
  0x90   : > { %756 = vmatpush2.msra.mxu1 %v607_v16  ;;  %845 = vmatpush2.msra.mxu0 %v609_v15  ;;  %v1187_v15 = vunpack.c.l.bf16 %v973_v5  ;;  %v905_v16 = vld [vmem:[#allocation4 + $0x90] sm:$0xff] }
  0x91   : > { %1293 = vmatprep.subr.mxu1 %v1076_v19  ;;  %1382 = vmatprep.subr.mxu0 %v1204_v20  ;;  %v1184_v19 = vunpack.c.h.bf16 %v971_v11  ;;  %v1055_v20 = vunpack.c.l.bf16 %v907_v10  ;;  %v951_v10 = vld [vmem:[#allocation4 + $0x200] sm:$0xff] }
 0x111   : > { %v448_v28 = vpop.f32.mrf.mxu0 }
 0x112   : > { %v449_v29 = vadd.f32 %v448_v28, %v362_v26  ;;  %v1180_v28 = vunpack.c.h.bf16 %v969_v17 }
 0x113   : > { %v450_v30 = vpop.f32.mrf.mxu0 }
 0x114   : > { %v451_v31 = vadd.f32 %v450_v30, %v366_v27  ;;  %v471_v39 = vmax.f32 %v449_v29, 0.0  ;;  %v1051_v29 = vunpack.c.l.bf16 %v905_v16  ;;  %v1179_v30 = vunpack.c.l.bf16 %v969_v17 }
 0x115   : > { %v454_v34 = vpop.f32.mrf.mxu0 }
 0x116   : > { %v472_v35 = vmax.f32 %v451_v31, 0.0  ;;  %v455_v36 = vadd.f32 %v454_v34, %v362_v26  ;;  %v901_v31 = vld [vmem:[#allocation4 + $0x70] sm:$0xff] }
 0x117   : > { %v456_v40 = vpop.f32.mrf.mxu0 }
 0x118   : > { %v457_v43 = vadd.f32 %v456_v40, %v366_v27  ;;  %757 = vmatprep.mubr.f32.mxu1 %v472_v35  ;;  %846 = vmatprep.mubr.f32.mxu0 %v472_v35  ;;  %v473_v46 = vmax.f32 %v455_v36, 0.0  ;;  %v1047_v35 = vunpack.c.l.bf16 %v903_v24  ;;  %v1172_v40 = vunpack.c.h.bf16 %v965_v32  ;;  %v1011_v24 = vld [vmem:[#allocation4 + $0x3e0] sm:$0xff] }
 0x119   : > { %v460_v47 = vpop.f32.mrf.mxu0  ;;  %758 = vmatmul.mubr.f32.vlgmr.msra.gmra.mxu1 %v471_v39  ;;  %847 = vmatmul.mubr.f32.vlgmr.msra.gmra.mxu0 %v471_v39  ;;  %v1044_v39 = vunpack.c.h.bf16 %v901_v31 }
 0x11a   : > { %v474_v48 = vmax.f32 %v457_v43, 0.0  ;;  %v461_v49 = vadd.f32 %v460_v47, %v362_v26  ;;  %1294 = vmatpush1.msra.mxu1 %v1075_v37  ;;  %1383 = vmatpush1.msra.mxu0 %v1203_v38  ;;  %v899_v37 = vld [vmem:[#allocation4 + $0x60] sm:$0xff]  ;;  %v897_v43 = vld [vmem:[#allocation4 + $0x50] sm:$0xff] }
 0x11b   : > { %v462_v52 = vpop.f32.mrf.mxu0  ;;  %1295 = vmatprep.subr.mxu1 %v1072_v41  ;;  %1384 = vmatprep.subr.mxu0 %v1200_v42  ;;  %v963_v38 = vld [vmem:[#allocation4 + $0x260] sm:$0xff]  ;;  %v1043_v41 = vunpack.c.l.bf16 %v901_v31  ;;  %v1171_v42 = vunpack.c.l.bf16 %v965_v32  ;;  %v1040_v45 = vunpack.c.h.bf16 %v899_v37  ;;  %v1039_v47 = vunpack.c.l.bf16 %v899_v37  ;;  %v1009_v31 = vld [vmem:[#allocation4 + $0x3d0] sm:$0xff] }
 0x11c   : > { %v463_v55 = vadd.f32 %v462_v52, %v366_v27  ;;  %763 = vmatprep.mubr.f32.mxu1 %v474_v48  ;;  %852 = vmatprep.mubr.f32.mxu0 %v474_v48  ;;  %v475_v58 = vmax.f32 %v461_v49, 0.0  ;;  %v1167_v48 = vunpack.c.l.bf16 %v963_v38  ;;  %v895_v49 = vld [vmem:[#allocation4 + $0x40] sm:$0xff]  ;;  %v1164_v52 = vunpack.c.h.bf16 %v961_v44 }
 0x11d   : > { %v466_v59 = vpop.f32.mrf.mxu0  ;;  %764 = vmatmul.mubr.f32.gmra.mxu1 %v473_v46  ;;  %853 = vmatmul.mubr.f32.gmra.mxu0 %v473_v46  ;;  %v1168_v46 = vunpack.c.h.bf16 %v963_v38  ;;  %v1032_v57 = vunpack.c.h.bf16 %v895_v49  ;;  %v1007_v37 = vld [vmem:[#allocation4 + $0x3c0] sm:$0xff] }
 0x11e   : > { %v476_v60 = vmax.f32 %v463_v55, 0.0  ;;  %v467_v61 = vadd.f32 %v466_v59, %v362_v26  ;;  %1296 = vmatpush1.msra.mxu1 %v1071_v50  ;;  %1385 = vmatpush1.msra.mxu0 %v1199_v51  ;;  %v967_v26 = vld [vmem:[#allocation4 + $0x280] sm:$0xff]  ;;  %v1036_v51 = vunpack.c.h.bf16 %v897_v43  ;;  %v893_v55 = vld [vmem:[#allocation4 + $0x30] sm:$0xff]  ;;  %v1031_v59 = vunpack.c.l.bf16 %v895_v49 }
 0x11f   : > { %v468_v1 = vpop.f32.mrf.mxu0  ;;  %1297 = vmatprep.subr.mxu1 %v1068_v53  ;;  %1386 = vmatprep.subr.mxu0 %v1196_v54  ;;  %v1176_v34 = vunpack.c.h.bf16 %v967_v26  ;;  %v1175_v36 = vunpack.c.l.bf16 %v967_v26  ;;  %v959_v50 = vld [vmem:[#allocation4 + $0x240] sm:$0xff]  ;;  %v1035_v53 = vunpack.c.l.bf16 %v897_v43  ;;  %v1163_v54 = vunpack.c.l.bf16 %v961_v44  ;;  %v1005_v43 = vld [vmem:[#allocation4 + $0x3b0] sm:$0xff] }
 0x120   : > { %v469_v4 = vadd.f32 %v468_v1, %v366_v27  ;;  %769 = vmatprep.mubr.f32.mxu1 %v476_v60  ;;  %858 = vmatprep.mubr.f32.mxu0 %v476_v60  ;;  %v477_v6 = vmax.f32 %v467_v61, 0.0  ;;  %v1052_v27 = vunpack.c.h.bf16 %v905_v16  ;;  %v1159_v60 = vunpack.c.l.bf16 %v959_v50  ;;  %v891_v61 = vld [vmem:[#allocation4 + $0x20] sm:$0xff]  ;;  %v1013_v16 = vld [vmem:[#allocation4 + $0x3f0] sm:$0xff] }
 0x121   : > { %770 = vmatmul.mubr.f32.gmra.mxu1 %v475_v58  ;;  %859 = vmatmul.mubr.f32.gmra.mxu0 %v475_v58  ;;  %v1160_v58 = vunpack.c.h.bf16 %v959_v50  ;;  %v1156_v1 = vunpack.c.h.bf16 %v957_v56  ;;  %v1024_v5 = vunpack.c.h.bf16 %v891_v61  ;;  %v1003_v49 = vld [vmem:[#allocation4 + $0x3a0] sm:$0xff] }
 0x122   : > { %v478_v7 = vmax.f32 %v469_v4, 0.0  ;;  %1298 = vmatpush1.msra.mxu1 %v1067_v62  ;;  %1387 = vmatpush1.msra.mxu0 %v1195_v63  ;;  %v955_v62 = vld [vmem:[#allocation4 + $0x220] sm:$0xff]  ;;  %v1028_v63 = vunpack.c.h.bf16 %v893_v55  ;;  %v889_v4 = vld [vmem:[#allocation4 + $0x10] sm:$0xff] }
 0x123   : > { %1299 = vmatprep.subr.mxu1 %v1064_v2  ;;  %1388 = vmatprep.subr.mxu0 %v1192_v3  ;;  %v1027_v2 = vunpack.c.l.bf16 %v893_v55  ;;  %v1155_v3 = vunpack.c.l.bf16 %v957_v56  ;;  %v1020_v11 = vunpack.c.h.bf16 %v889_v4  ;;  %v1001_v55 = vld [vmem:[#allocation4 + $0x390] sm:$0xff] }
 0x124   : > { %775 = vmatprep.mubr.f32.mxu1 %v478_v7  ;;  %864 = vmatprep.mubr.f32.mxu0 %v478_v7  ;;  %v1023_v7 = vunpack.c.l.bf16 %v891_v61  ;;  %v999_v61 = vld [vmem:[#allocation4 + $0x380] sm:$0xff] }
 0x125   : > { %776 = vmatmul.mubr.f32.gmra.mxu1 %v477_v6  ;;  %865 = vmatmul.mubr.f32.gmra.mxu0 %v477_v6  ;;  %v1152_v6 = vunpack.c.h.bf16 %v955_v62 }
 0x126   : > { %1300 = vmatpush1.msra.mxu1 %v1063_v8  ;;  %1389 = vmatpush1.msra.mxu0 %v1191_v9  ;;  %v1151_v8 = vunpack.c.l.bf16 %v955_v62  ;;  %v887_v9 = vld [vmem:[#allocation4] sm:$0xff] }
 0x127   : > { %1301 = vmatprep.subr.mxu1 %v1060_v12  ;;  %1390 = vmatprep.subr.mxu0 %v1188_v13  ;;  %v1148_v12 = vunpack.c.h.bf16 %v953_v0  ;;  %v1019_v13 = vunpack.c.l.bf16 %v889_v4  ;;  %v1016_v17 = vunpack.c.h.bf16 %v887_v9  ;;  %v997_v4 = vld [vmem:[#allocation4 + $0x370] sm:$0xff] }
 0x128   : > { %1302 = vmatpush1.msra.mxu1 %v1059_v14  ;;  %1391 = vmatpush1.msra.mxu0 %v1187_v15  ;;  %v1147_v14 = vunpack.c.l.bf16 %v953_v0  ;;  %v949_v15 = vld [vmem:[#allocation4 + $0x1f0] sm:$0xff] }
 0x129   : > { %1303 = vmatprep.subr.mxu1 %v1056_v18  ;;  %1392 = vmatprep.subr.mxu0 %v1184_v19  ;;  %v1144_v18 = vunpack.c.h.bf16 %v951_v10  ;;  %v1015_v19 = vunpack.c.l.bf16 %v887_v9  ;;  %v1140_v26 = vunpack.c.h.bf16 %v949_v15  ;;  %v995_v9 = vld [vmem:[#allocation4 + $0x360] sm:$0xff] }
 0x12a   : > { %1304 = vmatpush1.msra.mxu1 %v1055_v20  ;;  %1393 = vmatpush1.msra.mxu0 %v1183_v21  ;;  %v1143_v20 = vunpack.c.l.bf16 %v951_v10  ;;  %v947_v21 = vld [vmem:[#allocation4 + $0x1e0] sm:$0xff] }
 0x12b   : > { %1305 = vmatprep.subr.mxu1 %v1052_v27  ;;  %1394 = vmatprep.subr.mxu0 %v1180_v28  ;;  %v1268_v27 = vunpack.c.h.bf16 %v1013_v16  ;;  %v1139_v28 = vunpack.c.l.bf16 %v949_v15  ;;  %v1136_v32 = vunpack.c.h.bf16 %v947_v21  ;;  %v993_v15 = vld [vmem:[#allocation4 + $0x350] sm:$0xff] }
 0x12c   : > { %1306 = vmatpush1.msra.mxu1 %v1051_v29  ;;  %1395 = vmatpush1.msra.mxu0 %v1179_v30  ;;  %v1267_v29 = vunpack.c.l.bf16 %v1013_v16  ;;  %v945_v30 = vld [vmem:[#allocation4 + $0x1d0] sm:$0xff] }
 0x12d   : > { %1307 = vmatprep.subr.mxu1 %v1048_v33  ;;  %1396 = vmatprep.subr.mxu0 %v1176_v34  ;;  %v1264_v33 = vunpack.c.h.bf16 %v1011_v24  ;;  %v1135_v34 = vunpack.c.l.bf16 %v947_v21  ;;  %v1132_v38 = vunpack.c.h.bf16 %v945_v30  ;;  %v991_v21 = vld [vmem:[#allocation4 + $0x340] sm:$0xff] }
 0x12e   : > { %1308 = vmatpush1.msra.mxu1 %v1047_v35  ;;  %1397 = vmatpush1.msra.mxu0 %v1175_v36  ;;  %v1263_v35 = vunpack.c.l.bf16 %v1011_v24  ;;  %v943_v36 = vld [vmem:[#allocation4 + $0x1c0] sm:$0xff] }
 0x12f   : > { %1309 = vmatprep.subr.mxu1 %v1044_v39  ;;  %1398 = vmatprep.subr.mxu0 %v1172_v40  ;;  %v1260_v39 = vunpack.c.h.bf16 %v1009_v31  ;;  %v1131_v40 = vunpack.c.l.bf16 %v945_v30  ;;  %v1128_v44 = vunpack.c.h.bf16 %v943_v36  ;;  %v989_v30 = vld [vmem:[#allocation4 + $0x330] sm:$0xff] }
 0x130   : > { %1310 = vmatpush1.msra.mxu1 %v1043_v41  ;;  %1399 = vmatpush1.msra.mxu0 %v1171_v42  ;;  %v1259_v41 = vunpack.c.l.bf16 %v1009_v31  ;;  %v941_v42 = vld [vmem:[#allocation4 + $0x1b0] sm:$0xff] }
 0x131   : > { %1311 = vmatprep.subr.mxu1 %v1040_v45  ;;  %1400 = vmatprep.subr.mxu0 %v1168_v46  ;;  %v1256_v45 = vunpack.c.h.bf16 %v1007_v37  ;;  %v1127_v46 = vunpack.c.l.bf16 %v943_v36  ;;  %v1124_v50 = vunpack.c.h.bf16 %v941_v42  ;;  %v1220_v36 = vunpack.c.h.bf16 %v989_v30 }
 0x132   : > { %1312 = vmatpush1.msra.mxu1 %v1039_v47  ;;  %1401 = vmatpush1.msra.mxu0 %v1167_v48  ;;  %v1255_v47 = vunpack.c.l.bf16 %v1007_v37  ;;  %v939_v48 = vld [vmem:[#allocation4 + $0x1a0] sm:$0xff] }
 0x133   : > { %1313 = vmatprep.subr.mxu1 %v1036_v51  ;;  %1402 = vmatprep.subr.mxu0 %v1164_v52  ;;  %v1252_v51 = vunpack.c.h.bf16 %v1005_v43  ;;  %v1123_v52 = vunpack.c.l.bf16 %v941_v42  ;;  %v1120_v56 = vunpack.c.h.bf16 %v939_v48 }
 0x134   : > { %1314 = vmatpush1.msra.mxu1 %v1035_v53  ;;  %1403 = vmatpush1.msra.mxu0 %v1163_v54  ;;  %v1251_v53 = vunpack.c.l.bf16 %v1005_v43  ;;  %v937_v54 = vld [vmem:[#allocation4 + $0x190] sm:$0xff] }
 0x135   : > { %1315 = vmatprep.subr.mxu1 %v1032_v57  ;;  %1404 = vmatprep.subr.mxu0 %v1160_v58  ;;  %v1248_v57 = vunpack.c.h.bf16 %v1003_v49  ;;  %v1119_v58 = vunpack.c.l.bf16 %v939_v48  ;;  %v1116_v62 = vunpack.c.h.bf16 %v937_v54 }
 0x136   : > { %1316 = vmatpush1.msra.mxu1 %v1031_v59  ;;  %1405 = vmatpush1.msra.mxu0 %v1159_v60  ;;  %v1247_v59 = vunpack.c.l.bf16 %v1003_v49  ;;  %v935_v60 = vld [vmem:[#allocation4 + $0x180] sm:$0xff] }
 0x137   : > { %1317 = vmatprep.subr.mxu1 %v1028_v63  ;;  %1406 = vmatprep.subr.mxu0 %v1156_v1  ;;  %v1244_v63 = vunpack.c.h.bf16 %v1001_v55  ;;  %v1115_v1 = vunpack.c.l.bf16 %v937_v54  ;;  %v1112_v0 = vunpack.c.h.bf16 %v935_v60 }
 0x138   : > { %1318 = vmatpush1.msra.mxu1 %v1027_v2  ;;  %1407 = vmatpush1.msra.mxu0 %v1155_v3  ;;  %v1243_v2 = vunpack.c.l.bf16 %v1001_v55  ;;  %v933_v3 = vld [vmem:[#allocation4 + $0x170] sm:$0xff] }
 0x139   : > { %1319 = vmatprep.subr.mxu1 %v1024_v5  ;;  %1408 = vmatprep.subr.mxu0 %v1152_v6  ;;  %v1240_v5 = vunpack.c.h.bf16 %v999_v61  ;;  %v1111_v6 = vunpack.c.l.bf16 %v935_v60  ;;  %v1108_v10 = vunpack.c.h.bf16 %v933_v3 }
 0x13a   : > { %1320 = vmatpush1.msra.mxu1 %v1023_v7  ;;  %1409 = vmatpush1.msra.mxu0 %v1151_v8  ;;  %v1239_v7 = vunpack.c.l.bf16 %v999_v61  ;;  %v931_v8 = vld [vmem:[#allocation4 + $0x160] sm:$0xff]  ;;  %v4811_v61 = vsub.s32 2, %v4797_v22 }
 0x13b   : > { %1321 = vmatprep.subr.mxu1 %v1020_v11  ;;  %1410 = vmatprep.subr.mxu0 %v1148_v12  ;;  %v1236_v11 = vunpack.c.h.bf16 %v997_v4  ;;  %v1107_v12 = vunpack.c.l.bf16 %v933_v3  ;;  %v1104_v16 = vunpack.c.h.bf16 %v931_v8 }
 0x13c   : > { %1322 = vmatpush1.msra.mxu1 %v1019_v13  ;;  %1411 = vmatpush1.msra.mxu0 %v1147_v14  ;;  %v1235_v13 = vunpack.c.l.bf16 %v997_v4  ;;  %v929_v14 = vld [vmem:[#allocation4 + $0x150] sm:$0xff] }
 0x13d   : > { %1323 = vmatprep.subr.mxu1 %v1016_v17  ;;  %1412 = vmatprep.subr.mxu0 %v1144_v18  ;;  %v1232_v17 = vunpack.c.h.bf16 %v995_v9  ;;  %v1103_v18 = vunpack.c.l.bf16 %v931_v8  ;;  %v1100_v24 = vunpack.c.h.bf16 %v929_v14 }
 0x13e   : > { %1324 = vmatpush1.msra.mxu1 %v1015_v19  ;;  %1413 = vmatpush1.msra.mxu0 %v1143_v20  ;;  %v1231_v19 = vunpack.c.l.bf16 %v995_v9  ;;  %v927_v20 = vld [vmem:[#allocation4 + $0x140] sm:$0xff] }
 0x13f   : > { %1325 = vmatprep.subr.mxu1 %v1140_v26  ;;  %1414 = vmatprep.subr.mxu0 %v1268_v27  ;;  %v1228_v26 = vunpack.c.h.bf16 %v993_v15  ;;  %v1099_v27 = vunpack.c.l.bf16 %v929_v14  ;;  %v1096_v31 = vunpack.c.h.bf16 %v927_v20 }
 0x140   : > { %1326 = vmatpush2.msra.mxu1 %v1139_v28  ;;  %1415 = vmatpush2.msra.mxu0 %v1267_v29  ;;  %v1227_v28 = vunpack.c.l.bf16 %v993_v15  ;;  %v925_v29 = vld [vmem:[#allocation4 + $0x130] sm:$0xff] }
 0x141   : > { %1327 = vmatprep.subr.mxu1 %v1136_v32  ;;  %1416 = vmatprep.subr.mxu0 %v1264_v33  ;;  %v1224_v32 = vunpack.c.h.bf16 %v991_v21  ;;  %v1095_v33 = vunpack.c.l.bf16 %v927_v20  ;;  %v1091_v37 = vunpack.c.l.bf16 %v925_v29 }
 0x142   : > { %1328 = vmatpush2.msra.mxu1 %v1135_v34  ;;  %1417 = vmatpush2.msra.mxu0 %v1263_v35  ;;  %v1223_v34 = vunpack.c.l.bf16 %v991_v21  ;;  %v1092_v35 = vunpack.c.h.bf16 %v925_v29 }
 0x143   : > { %1329 = vmatprep.subr.mxu1 %v1132_v38  ;;  %1418 = vmatprep.subr.mxu0 %v1260_v39  ;;  %v1219_v38 = vunpack.c.l.bf16 %v989_v30  ;;  %v923_v39 = vld [vmem:[#allocation4 + $0x120] sm:$0xff] }
 0x144   : > { %1330 = vmatpush2.msra.mxu1 %v1131_v40  ;;  %1419 = vmatpush2.msra.mxu0 %v1259_v41  ;;  %v987_v40 = vld [vmem:[#allocation4 + $0x320] sm:$0xff]  ;;  %v1088_v41 = vunpack.c.h.bf16 %v923_v39  ;;  %v1087_v43 = vunpack.c.l.bf16 %v923_v39 }
 0x145   : > { %1331 = vmatprep.subr.mxu1 %v1128_v44  ;;  %1420 = vmatprep.subr.mxu0 %v1256_v45  ;;  %v1216_v42 = vunpack.c.h.bf16 %v987_v40  ;;  %v1215_v44 = vunpack.c.l.bf16 %v987_v40  ;;  %v921_v45 = vld [vmem:[#allocation4 + $0x110] sm:$0xff] }
 0x146   : > { %1332 = vmatpush2.msra.mxu1 %v1127_v46  ;;  %1421 = vmatpush2.msra.mxu0 %v1255_v47  ;;  %v985_v46 = vld [vmem:[#allocation4 + $0x310] sm:$0xff]  ;;  %v1084_v47 = vunpack.c.h.bf16 %v921_v45  ;;  %v1083_v49 = vunpack.c.l.bf16 %v921_v45 }
 0x147   : > { %1333 = vmatprep.subr.mxu1 %v1124_v50  ;;  %1422 = vmatprep.subr.mxu0 %v1252_v51  ;;  %v1212_v48 = vunpack.c.h.bf16 %v985_v46  ;;  %v1211_v50 = vunpack.c.l.bf16 %v985_v46  ;;  %v919_v51 = vld [vmem:[#allocation4 + $0x100] sm:$0xff] }
 0x148   : > { %1334 = vmatpush2.msra.mxu1 %v1123_v52  ;;  %1423 = vmatpush2.msra.mxu0 %v1251_v53  ;;  %v983_v52 = vld [vmem:[#allocation4 + $0x300] sm:$0xff]  ;;  %v1080_v53 = vunpack.c.h.bf16 %v919_v51  ;;  %v1079_v55 = vunpack.c.l.bf16 %v919_v51 }
 0x149   : > { %1335 = vmatprep.subr.mxu1 %v1120_v56  ;;  %1424 = vmatprep.subr.mxu0 %v1248_v57  ;;  %v1208_v54 = vunpack.c.h.bf16 %v983_v52  ;;  %v1207_v56 = vunpack.c.l.bf16 %v983_v52  ;;  %v918_v57 = vld [vmem:[#allocation4 + $0xf8] sm:$0xff] }
 0x14a   : > { %1336 = vmatpush2.msra.mxu1 %v1119_v58  ;;  %1425 = vmatpush2.msra.mxu0 %v1247_v59  ;;  %v982_v58 = vld [vmem:[#allocation4 + $0x2f8] sm:$0xff]  ;;  %v1078_v59 = vunpack.c.h.bf16 %v918_v57 }
 0x14b   : > { %1337 = vmatprep.subr.mxu1 %v1116_v62  ;;  %1426 = vmatprep.subr.mxu0 %v1244_v63  ;;  %v1206_v60 = vunpack.c.h.bf16 %v982_v58  ;;  %v671_v62 = vld [vmem:[%s5174_s1 + $0x2] sm:$0xf]  ;;  %v4817_v63 = vsub.s32 3, %v4797_v22 }
 0x14c   : > { %1338 = vmatpush2.msra.mxu1 %v1115_v1  ;;  %1427 = vmatpush2.msra.mxu0 %v1243_v2  ;;  %v4820_v1 = vrot.slane %v671_v62, %v4800_v23  ;;  %v4823_v2 = vrot.slane %v671_v62, %v4811_v61  ;;  %v4826_v3 = vrot.slane %v671_v62, %v4806_v25 }
 0x14d   : > { %1339 = vmatprep.subr.mxu1 %v1112_v0  ;;  %1428 = vmatprep.subr.mxu0 %v1240_v5  ;;  %v4829_v4 = vrot.slane %v671_v62, %v4817_v63 }
 0x14e   : > { %1340 = vmatpush2.msra.mxu1 %v1111_v6  ;;  %1429 = vmatpush2.msra.mxu0 %v1239_v7 }
 0x14f   : > { %1341 = vmatprep.subr.mxu1 %v1108_v10  ;;  %1430 = vmatprep.subr.mxu0 %v1236_v11  ;;  %v916_v10 = vld [vmem:[#allocation4 + $0xe8] sm:$0xff] }
 0x150   : > { %1342 = vmatpush2.msra.mxu1 %v1107_v12  ;;  %1431 = vmatpush2.msra.mxu0 %v1235_v13  ;;  %v980_v11 = vld [vmem:[#allocation4 + $0x2e8] sm:$0xff]  ;;  %v1074_v20 = vunpack.c.h.bf16 %v916_v10 }
 0x151   : > { %1343 = vmatprep.subr.mxu1 %v1104_v16  ;;  %1432 = vmatprep.subr.mxu0 %v1232_v17  ;;  %v1077_v16 = vunpack.c.l.bf16 %v918_v57  ;;  %v1205_v17 = vunpack.c.l.bf16 %v982_v58  ;;  %v1202_v21 = vunpack.c.h.bf16 %v980_v11 }
 0x152   : > { %1344 = vmatpush2.msra.mxu1 %v1103_v18  ;;  %1433 = vmatpush2.msra.mxu0 %v1231_v19 }
 0x153   : > { %1345 = vmatprep.subr.mxu1 %v1100_v24  ;;  %1434 = vmatprep.subr.mxu0 %v1228_v26 }
 0x154   : > { %1346 = vmatpush2.msra.mxu1 %v1099_v27  ;;  %1435 = vmatpush2.msra.mxu0 %v1227_v28 }
 0x155   : > { %1347 = vmatprep.subr.mxu1 %v1096_v31  ;;  %1436 = vmatprep.subr.mxu0 %v1224_v32  ;;  %v914_v31 = vld [vmem:[#allocation4 + $0xd8] sm:$0xff] }
 0x156   : > { %1348 = vmatpush2.msra.mxu1 %v1095_v33  ;;  %1437 = vmatpush2.msra.mxu0 %v1223_v34  ;;  %v978_v32 = vld [vmem:[#allocation4 + $0x2d8] sm:$0xff]  ;;  %v1069_v51 = vunpack.c.l.bf16 %v914_v31 }
 0x157   : > { %1349 = vmatprep.subr.mxu1 %v1092_v35  ;;  %1438 = vmatprep.subr.mxu0 %v1220_v36  ;;  %v1073_v35 = vunpack.c.l.bf16 %v916_v10  ;;  %v1201_v36 = vunpack.c.l.bf16 %v980_v11  ;;  %v1197_v52 = vunpack.c.l.bf16 %v978_v32 }
 0x158   : > { %1350 = vmatpush2.msra.mxu1 %v1091_v37  ;;  %1439 = vmatpush2.msra.mxu0 %v1219_v38 }
 0x159   : > { %1351 = vmatprep.subr.mxu1 %v1088_v41  ;;  %1440 = vmatprep.subr.mxu0 %v1216_v42  ;;  %v1070_v41 = vunpack.c.h.bf16 %v914_v31  ;;  %v1198_v42 = vunpack.c.h.bf16 %v978_v32 }
 0x15a   : > { %1352 = vmatpush2.msra.mxu1 %v1087_v43  ;;  %1441 = vmatpush2.msra.mxu0 %v1215_v44  ;;  %v912_v43 = vld [vmem:[#allocation4 + $0xc8] sm:$0xff] }
 0x15b   : > { %1353 = vmatprep.subr.mxu1 %v1084_v47  ;;  %1442 = vmatprep.subr.mxu0 %v1212_v48  ;;  %v976_v44 = vld [vmem:[#allocation4 + $0x2c8] sm:$0xff]  ;;  %v1066_v57 = vunpack.c.h.bf16 %v912_v43  ;;  %v1065_v62 = vunpack.c.l.bf16 %v912_v43 }
 0x15c   : > { %1354 = vmatpush2.msra.mxu1 %v1083_v49  ;;  %1443 = vmatpush2.msra.mxu0 %v1211_v50  ;;  %v1194_v58 = vunpack.c.h.bf16 %v976_v44 }
 0x15d   : > { %1355 = vmatprep.subr.mxu1 %v1080_v53  ;;  %1444 = vmatprep.subr.mxu0 %v1208_v54 }
 0x15e   : > { %1356 = vmatpush2.msra.mxu1 %v1079_v55  ;;  %1445 = vmatpush2.msra.mxu0 %v1207_v56 }
 0x15f   : > { %1471 = vmatprep.subr.mxu1 %v1078_v59  ;;  %1560 = vmatprep.subr.mxu0 %v1206_v60  ;;  %v910_v59 = vld [vmem:[#allocation4 + $0xb8] sm:$0xff] }
 0x160   : > { %v974_v60 = vld [vmem:[#allocation4 + $0x2b8] sm:$0xff]  ;;  %v1062_v11 = vunpack.c.h.bf16 %v910_v59 }
 0x161   : > { %v1189_v31 = vunpack.c.l.bf16 %v974_v60 }
 0x1d9   : > { %v759_v0 = vpop.f32.mrf.mxu1  ;;  %v848_v5 = vpop.f32.mrf.mxu0 }
 0x1da   : > { %v4832_v6 = vadd.f32 %v759_v0, %v4820_v1  ;;  %v4835_v7 = vadd.f32 %v848_v5, %v4823_v2  ;;  %v1193_v0 = vunpack.c.l.bf16 %v976_v44  ;;  %v904_v44 = vld [vmem:[#allocation4 + $0x88] sm:$0xff] }
 0x1db   : > { %v761_v8 = vpop.f32.mrf.mxu1  ;;  %v850_v9 = vpop.f32.mrf.mxu0 }
 0x1dc   : > { %v4838_v12 = vadd.f32 %v761_v8, %v4826_v3  ;;  %v4841_v13 = vadd.f32 %v850_v9, %v4829_v4  ;;  %v871_v24 = vmax.f32 %v4832_v6, 0.0  ;;  %v873_v26 = vmax.f32 %v4835_v7, 0.0  ;;  %v1713_v7 = vld [vmem:[#allocation6 + $0x180] sm:$0xff] }
 0x1dd   : > { %v765_v14 = vpop.f32.mrf.mxu1  ;;  %v854_v15 = vpop.f32.mrf.mxu0 }
 0x1de   : > { %v872_v18 = vmax.f32 %v4838_v12, 0.0  ;;  %v874_v19 = vmax.f32 %v4841_v13, 0.0  ;;  %v4848_v27 = vadd.f32 %v765_v14, %v4820_v1  ;;  %v4851_v28 = vadd.f32 %v854_v15, %v4823_v2  ;;  %v908_v15 = vld [vmem:[#allocation4 + $0xa8] sm:$0xff] }
 0x1df   : > { %v767_v29 = vpop.f32.mrf.mxu1  ;;  %v856_v30 = vpop.f32.mrf.mxu0  ;;  %v1190_v14 = vunpack.c.h.bf16 %v974_v60  ;;  %v1049_v60 = vunpack.c.l.bf16 %v904_v44 }
 0x1e0   : > { %v4854_v33 = vadd.f32 %v767_v29, %v4826_v3  ;;  %v4857_v34 = vadd.f32 %v856_v30, %v4829_v4  ;;  %1357 = vmatprep.mubr.f32.mxu1 %v872_v18  ;;  %1446 = vmatprep.mubr.f32.mxu0 %v874_v19  ;;  %v875_v45 = vmax.f32 %v4848_v27, 0.0  ;;  %v877_v46 = vmax.f32 %v4851_v28, 0.0  ;;  %v1709_v27 = vld [vmem:[#allocation6 + $0x160] sm:$0xff] }
 0x1e1   : > { %v771_v37 = vpop.f32.mrf.mxu1  ;;  %v860_v38 = vpop.f32.mrf.mxu0  ;;  %1358 = vmatmul.mubr.f32.vlgmr.msra.gmra.mxu1 %v871_v24  ;;  %1447 = vmatmul.mubr.f32.vlgmr.msra.gmra.mxu0 %v873_v26  ;;  %v1061_v30 = vunpack.c.l.bf16 %v910_v59  ;;  %v1849_v28 = vld [vmem:[#allocation6 + $0x5c0] sm:$0xff] }
 0x1e2   : > { %v876_v39 = vmax.f32 %v4854_v33, 0.0  ;;  %v878_v40 = vmax.f32 %v4857_v34, 0.0  ;;  %1472 = vmatpush1.msra.mxu1 %v1077_v16  ;;  %1561 = vmatpush1.msra.mxu0 %v1205_v17  ;;  %v4878_v53 = vadd.f32 %v771_v37, %v4820_v1  ;;  %v4881_v54 = vadd.f32 %v860_v38, %v4823_v2  ;;  %v972_v16 = vld [vmem:[#allocation4 + $0x2a8] sm:$0xff]  ;;  %v970_v37 = vld [vmem:[#allocation4 + $0x298] sm:$0xff] }
 0x1e3   : > { %1473 = vmatprep.subr.mxu1 %v1074_v20  ;;  %1562 = vmatprep.subr.mxu0 %v1202_v21  ;;  %v773_v47 = vpop.f32.mrf.mxu1  ;;  %v862_v48 = vpop.f32.mrf.mxu0  ;;  %v1057_v38 = vunpack.c.l.bf16 %v908_v15  ;;  %v1182_v43 = vunpack.c.h.bf16 %v970_v37 }
 0x1e4   : > { %v4872_v49 = vadd.f32 %v773_v47, %v4826_v3  ;;  %v4875_v50 = vadd.f32 %v862_v48, %v4829_v4  ;;  %1474 = vmatpush1.msra.mxu1 %v1073_v35  ;;  %1563 = vmatpush1.msra.mxu0 %v1201_v36  ;;  %v879_v17 = vmax.f32 %v4878_v53, 0.0  ;;  %v881_v20 = vmax.f32 %v4881_v54, 0.0 }
 0x1e5   : > { %1363 = vmatprep.mubr.f32.mxu1 %v876_v39  ;;  %1452 = vmatprep.mubr.f32.mxu0 %v878_v40  ;;  %v777_v55 = vpop.f32.mrf.mxu1  ;;  %v866_v56 = vpop.f32.mrf.mxu0  ;;  %v1186_v36 = vunpack.c.h.bf16 %v972_v16  ;;  %v2010_v53 = vunpack.c.h.bf16 %v1709_v27 }
 0x1e6   : > { %1475 = vmatprep.subr.mxu1 %v1070_v41  ;;  %1564 = vmatprep.subr.mxu0 %v1198_v42  ;;  %v880_v5 = vmax.f32 %v4872_v49, 0.0  ;;  %v882_v8 = vmax.f32 %v4875_v50, 0.0  ;;  %v4902_v32 = vadd.f32 %v777_v55, %v4820_v1  ;;  %v4905_v35 = vadd.f32 %v866_v56, %v4823_v2  ;;  %v1845_v50 = vld [vmem:[#allocation6 + $0x5a0] sm:$0xff] }
 0x1e7   : > { %1364 = vmatmul.mubr.f32.gmra.mxu1 %v875_v45  ;;  %1453 = vmatmul.mubr.f32.gmra.mxu0 %v877_v46  ;;  %v779_v9 = vpop.f32.mrf.mxu1  ;;  %v868_v10 = vpop.f32.mrf.mxu0  ;;  %v1185_v41 = vunpack.c.l.bf16 %v972_v16  ;;  %v1181_v55 = vunpack.c.l.bf16 %v970_v37  ;;  %v1050_v56 = vunpack.c.h.bf16 %v904_v44  ;;  %v898_v16 = vld [vmem:[#allocation4 + $0x58] sm:$0xff]  ;;  %v896_v37 = vld [vmem:[#allocation4 + $0x48] sm:$0xff]  ;;  %v2289_v49 = vunpack.c.l.bf16 %v1849_v28 }
 0x1e8   : > { %1476 = vmatpush1.msra.mxu1 %v1069_v51  ;;  %1565 = vmatpush1.msra.mxu0 %v1197_v52  ;;  %v4896_v21 = vadd.f32 %v779_v9, %v4826_v3  ;;  %v4899_v29 = vadd.f32 %v868_v10, %v4829_v4  ;;  %v1058_v3 = vunpack.c.h.bf16 %v908_v15  ;;  %v906_v4 = vld [vmem:[#allocation4 + $0x98] sm:$0xff]  ;;  %v883_v47 = vmax.f32 %v4902_v32, 0.0  ;;  %v968_v51 = vld [vmem:[#allocation4 + $0x288] sm:$0xff] }
 0x1e9   : > { %1477 = vmatprep.subr.mxu1 %v1066_v57  ;;  %1566 = vmatprep.subr.mxu0 %v1194_v58  ;;  %v1054_v2 = vunpack.c.h.bf16 %v906_v4  ;;  %v885_v48 = vmax.f32 %v4905_v35, 0.0  ;;  %v1053_v52 = vunpack.c.l.bf16 %v906_v4  ;;  %v902_v57 = vld [vmem:[#allocation4 + $0x78] sm:$0xff]  ;;  %v1178_v59 = vunpack.c.h.bf16 %v968_v51  ;;  %v964_v9 = vld [vmem:[#allocation4 + $0x268] sm:$0xff] }
 0x1ea   : > { %1478 = vmatpush1.msra.mxu1 %v1065_v62  ;;  %1567 = vmatpush1.msra.mxu0 %v1193_v0  ;;  %v884_v1 = vmax.f32 %v4896_v21, 0.0  ;;  %v886_v42 = vmax.f32 %v4899_v29, 0.0  ;;  %v966_v58 = vld [vmem:[#allocation4 + $0x278] sm:$0xff]  ;;  %v1177_v62 = vunpack.c.l.bf16 %v968_v51  ;;  %v900_v0 = vld [vmem:[#allocation4 + $0x68] sm:$0xff]  ;;  %v1046_v10 = vunpack.c.h.bf16 %v902_v57 }
 0x1eb   : > { %1369 = vmatprep.mubr.f32.mxu1 %v880_v5  ;;  %1458 = vmatprep.mubr.f32.mxu0 %v882_v8  ;;  %v1173_v15 = vunpack.c.l.bf16 %v966_v58  ;;  %v1169_v4 = vunpack.c.l.bf16 %v964_v9  ;;  %v1038_v12 = vunpack.c.h.bf16 %v898_v16  ;;  %v958_v44 = vld [vmem:[#allocation4 + $0x238] sm:$0xff]  ;;  %v1034_v13 = vunpack.c.h.bf16 %v896_v37 }
 0x1ec   : > { %1479 = vmatprep.subr.mxu1 %v1062_v11  ;;  %1568 = vmatprep.subr.mxu0 %v1190_v14  ;;  %v1174_v11 = vunpack.c.h.bf16 %v966_v58  ;;  %v1045_v14 = vunpack.c.l.bf16 %v902_v57  ;;  %v1033_v51 = vunpack.c.l.bf16 %v896_v37  ;;  %v1158_v58 = vunpack.c.h.bf16 %v958_v44  ;;  %v1014_v37 = vld [vmem:[#allocation4 + $0x3f8] sm:$0xff] }
 0x1ed   : > { %1370 = vmatmul.mubr.f32.gmra.mxu1 %v879_v17  ;;  %1459 = vmatmul.mubr.f32.gmra.mxu0 %v881_v20  ;;  %v2282_v54 = vunpack.c.h.bf16 %v1845_v50 }
 0x1ee   : > { %1480 = vmatpush1.msra.mxu1 %v1061_v30  ;;  %1569 = vmatpush1.msra.mxu0 %v1189_v31  ;;  %v962_v30 = vld [vmem:[#allocation4 + $0x258] sm:$0xff]  ;;  %v1042_v31 = vunpack.c.h.bf16 %v900_v0 }
 0x1ef   : > { %1481 = vmatprep.subr.mxu1 %v1058_v3  ;;  %1570 = vmatprep.subr.mxu0 %v1186_v36  ;;  %v1170_v3 = vunpack.c.h.bf16 %v964_v9  ;;  %v1041_v36 = vunpack.c.l.bf16 %v900_v0  ;;  %v954_v0 = vld [vmem:[#allocation4 + $0x218] sm:$0xff] }
 0x1f0   : > { %1482 = vmatpush1.msra.mxu1 %v1057_v38  ;;  %1571 = vmatpush1.msra.mxu0 %v1185_v41  ;;  %v960_v38 = vld [vmem:[#allocation4 + $0x248] sm:$0xff]  ;;  %v1037_v41 = vunpack.c.l.bf16 %v898_v16 }
 0x1f1   : > { %1375 = vmatprep.mubr.f32.mxu1 %v884_v1  ;;  %1464 = vmatprep.mubr.f32.mxu0 %v886_v42  ;;  %v952_v16 = vld [vmem:[#allocation4 + $0x208] sm:$0xff] }
 0x1f2   : > { %1483 = vmatprep.subr.mxu1 %v1054_v2  ;;  %1572 = vmatprep.subr.mxu0 %v1182_v43  ;;  %v1165_v2 = vunpack.c.l.bf16 %v962_v30  ;;  %v894_v43 = vld [vmem:[#allocation4 + $0x38] sm:$0xff] }
 0x1f3   : > { %1376 = vmatmul.mubr.f32.gmra.mxu1 %v883_v47  ;;  %1465 = vmatmul.mubr.f32.gmra.mxu0 %v885_v48  ;;  %v1030_v57 = vunpack.c.h.bf16 %v894_v43 }
 0x1f4   : > { %1484 = vmatpush1.msra.mxu1 %v1053_v52  ;;  %1573 = vmatpush1.msra.mxu0 %v1181_v55  ;;  %v1161_v52 = vunpack.c.l.bf16 %v960_v38  ;;  %v892_v55 = vld [vmem:[#allocation4 + $0x28] sm:$0xff] }
 0x1f5   : > { %1485 = vmatprep.subr.mxu1 %v1050_v56  ;;  %1535 = vmatprep.mubr.f32.mxu1 %v872_v18  ;;  %v1166_v18 = vunpack.c.h.bf16 %v962_v30  ;;  %v956_v56 = vld [vmem:[#allocation4 + $0x228] sm:$0xff]  ;;  %v1026_v9 = vunpack.c.h.bf16 %v892_v55 }
 0x1f6   : > { %1574 = vmatprep.subr.mxu0 %v1178_v59  ;;  %1624 = vmatprep.mubr.f32.mxu0 %v874_v19  ;;  %v1162_v19 = vunpack.c.h.bf16 %v960_v38  ;;  %v1029_v59 = vunpack.c.l.bf16 %v894_v43  ;;  %v1012_v43 = vld [vmem:[#allocation4 + $0x3e8] sm:$0xff] }
 0x1f7   : > { %1486 = vmatpush1.msra.mxu1 %v1049_v60  ;;  %1575 = vmatpush1.msra.mxu0 %v1177_v62  ;;  %v1157_v60 = vunpack.c.l.bf16 %v958_v44  ;;  %v890_v62 = vld [vmem:[#allocation4 + $0x18] sm:$0xff] }
 0x1f8   : > { %1487 = vmatprep.subr.mxu1 %v1046_v10  ;;  %1576 = vmatprep.subr.mxu0 %v1174_v11  ;;  %v1154_v10 = vunpack.c.h.bf16 %v956_v56  ;;  %v1025_v11 = vunpack.c.l.bf16 %v892_v55  ;;  %v1022_v30 = vunpack.c.h.bf16 %v890_v62  ;;  %v1010_v55 = vld [vmem:[#allocation4 + $0x3d8] sm:$0xff] }
 0x1f9   : > { %1488 = vmatpush1.msra.mxu1 %v1045_v14  ;;  %1577 = vmatpush1.msra.mxu0 %v1173_v15  ;;  %v1153_v14 = vunpack.c.l.bf16 %v956_v56  ;;  %v888_v15 = vld [vmem:[#allocation4 + $0x8] sm:$0xff] }
 0x1fa   : > { %1489 = vmatprep.subr.mxu1 %v1042_v31  ;;  %1578 = vmatprep.subr.mxu0 %v1170_v3  ;;  %v1150_v31 = vunpack.c.h.bf16 %v954_v0  ;;  %v1021_v3 = vunpack.c.l.bf16 %v890_v62  ;;  %v1018_v38 = vunpack.c.h.bf16 %v888_v15  ;;  %v1008_v62 = vld [vmem:[#allocation4 + $0x3c8] sm:$0xff] }
 0x1fb   : > { %1490 = vmatpush1.msra.mxu1 %v1041_v36  ;;  %1579 = vmatpush1.msra.mxu0 %v1169_v4  ;;  %v1149_v36 = vunpack.c.l.bf16 %v954_v0  ;;  %v950_v4 = vld [vmem:[#allocation4 + $0x1f8] sm:$0xff] }
 0x1fc   : > { %1491 = vmatprep.subr.mxu1 %v1038_v12  ;;  %1580 = vmatprep.subr.mxu0 %v1166_v18  ;;  %v1146_v12 = vunpack.c.h.bf16 %v952_v16  ;;  %v1017_v18 = vunpack.c.l.bf16 %v888_v15  ;;  %v1142_v44 = vunpack.c.h.bf16 %v950_v4  ;;  %v1006_v15 = vld [vmem:[#allocation4 + $0x3b8] sm:$0xff] }
 0x1fd   : > { %1492 = vmatpush1.msra.mxu1 %v1037_v41  ;;  %1581 = vmatpush1.msra.mxu0 %v1165_v2  ;;  %v1145_v41 = vunpack.c.l.bf16 %v952_v16  ;;  %v948_v2 = vld [vmem:[#allocation4 + $0x1e8] sm:$0xff] }
 0x1fe   : > { %1493 = vmatprep.subr.mxu1 %v1034_v13  ;;  %1582 = vmatprep.subr.mxu0 %v1162_v19  ;;  %v1270_v13 = vunpack.c.h.bf16 %v1014_v37  ;;  %v1141_v19 = vunpack.c.l.bf16 %v950_v4  ;;  %v1138_v56 = vunpack.c.h.bf16 %v948_v2  ;;  %v1004_v4 = vld [vmem:[#allocation4 + $0x3a8] sm:$0xff] }
 0x1ff   : > { %1494 = vmatpush1.msra.mxu1 %v1033_v51  ;;  %1583 = vmatpush1.msra.mxu0 %v1161_v52  ;;  %v1269_v51 = vunpack.c.l.bf16 %v1014_v37  ;;  %v946_v52 = vld [vmem:[#allocation4 + $0x1d8] sm:$0xff] }
 0x200   : > { %1495 = vmatprep.subr.mxu1 %v1030_v57  ;;  %1584 = vmatprep.subr.mxu0 %v1158_v58  ;;  %v1266_v57 = vunpack.c.h.bf16 %v1012_v43  ;;  %v1137_v58 = vunpack.c.l.bf16 %v948_v2  ;;  %v1134_v0 = vunpack.c.h.bf16 %v946_v52  ;;  %v1002_v2 = vld [vmem:[#allocation4 + $0x398] sm:$0xff] }
 0x201   : > { %1496 = vmatpush1.msra.mxu1 %v1029_v59  ;;  %1585 = vmatpush1.msra.mxu0 %v1157_v60  ;;  %v1265_v59 = vunpack.c.l.bf16 %v1012_v43  ;;  %v944_v60 = vld [vmem:[#allocation4 + $0x1c8] sm:$0xff] }
 0x202   : > { %1497 = vmatprep.subr.mxu1 %v1026_v9  ;;  %1586 = vmatprep.subr.mxu0 %v1154_v10  ;;  %v1262_v9 = vunpack.c.h.bf16 %v1010_v55  ;;  %v1133_v10 = vunpack.c.l.bf16 %v946_v52  ;;  %v1130_v16 = vunpack.c.h.bf16 %v944_v60  ;;  %v1000_v52 = vld [vmem:[#allocation4 + $0x388] sm:$0xff] }
 0x203   : > { %1498 = vmatpush1.msra.mxu1 %v1025_v11  ;;  %1587 = vmatpush1.msra.mxu0 %v1153_v14  ;;  %v1261_v11 = vunpack.c.l.bf16 %v1010_v55  ;;  %v942_v14 = vld [vmem:[#allocation4 + $0x1b8] sm:$0xff] }
 0x204   : > { %1499 = vmatprep.subr.mxu1 %v1022_v30  ;;  %1588 = vmatprep.subr.mxu0 %v1150_v31  ;;  %v1258_v30 = vunpack.c.h.bf16 %v1008_v62  ;;  %v1129_v31 = vunpack.c.l.bf16 %v944_v60  ;;  %v1126_v37 = vunpack.c.h.bf16 %v942_v14  ;;  %v998_v60 = vld [vmem:[#allocation4 + $0x378] sm:$0xff] }
 0x205   : > { %1500 = vmatpush1.msra.mxu1 %v1021_v3  ;;  %1589 = vmatpush1.msra.mxu0 %v1149_v36  ;;  %v1257_v3 = vunpack.c.l.bf16 %v1008_v62  ;;  %v940_v36 = vld [vmem:[#allocation4 + $0x1a8] sm:$0xff] }
 0x206   : > { %1501 = vmatprep.subr.mxu1 %v1018_v38  ;;  %1590 = vmatprep.subr.mxu0 %v1146_v12  ;;  %v1254_v38 = vunpack.c.h.bf16 %v1006_v15  ;;  %v1125_v12 = vunpack.c.l.bf16 %v942_v14  ;;  %v1122_v43 = vunpack.c.h.bf16 %v940_v36  ;;  %v996_v14 = vld [vmem:[#allocation4 + $0x368] sm:$0xff] }
 0x207   : > { %1502 = vmatpush1.msra.mxu1 %v1017_v18  ;;  %1591 = vmatpush1.msra.mxu0 %v1145_v41  ;;  %v1253_v18 = vunpack.c.l.bf16 %v1006_v15  ;;  %v938_v41 = vld [vmem:[#allocation4 + $0x198] sm:$0xff] }
 0x208   : > { %1503 = vmatprep.subr.mxu1 %v1142_v44  ;;  %1592 = vmatprep.subr.mxu0 %v1270_v13  ;;  %v1250_v44 = vunpack.c.h.bf16 %v1004_v4  ;;  %v1121_v13 = vunpack.c.l.bf16 %v940_v36  ;;  %v1118_v55 = vunpack.c.h.bf16 %v938_v41  ;;  %v994_v36 = vld [vmem:[#allocation4 + $0x358] sm:$0xff] }
 0x209   : > { %1504 = vmatpush2.msra.mxu1 %v1141_v19  ;;  %1593 = vmatpush2.msra.mxu0 %v1269_v51  ;;  %v1249_v19 = vunpack.c.l.bf16 %v1004_v4  ;;  %v936_v51 = vld [vmem:[#allocation4 + $0x188] sm:$0xff] }
 0x20a   : > { %1505 = vmatprep.subr.mxu1 %v1138_v56  ;;  %1594 = vmatprep.subr.mxu0 %v1266_v57  ;;  %v1246_v56 = vunpack.c.h.bf16 %v1002_v2  ;;  %v1117_v57 = vunpack.c.l.bf16 %v938_v41  ;;  %v1114_v62 = vunpack.c.h.bf16 %v936_v51  ;;  %v992_v41 = vld [vmem:[#allocation4 + $0x348] sm:$0xff] }
 0x20b   : > { %1506 = vmatpush2.msra.mxu1 %v1137_v58  ;;  %1595 = vmatpush2.msra.mxu0 %v1265_v59  ;;  %v1245_v58 = vunpack.c.l.bf16 %v1002_v2  ;;  %v934_v59 = vld [vmem:[#allocation4 + $0x178] sm:$0xff] }
 0x20c   : > { %1507 = vmatprep.subr.mxu1 %v1134_v0  ;;  %1596 = vmatprep.subr.mxu0 %v1262_v9  ;;  %v1242_v0 = vunpack.c.h.bf16 %v1000_v52  ;;  %v1113_v9 = vunpack.c.l.bf16 %v936_v51  ;;  %v1110_v15 = vunpack.c.h.bf16 %v934_v59  ;;  %v990_v51 = vld [vmem:[#allocation4 + $0x338] sm:$0xff] }
 0x20d   : > { %1508 = vmatpush2.msra.mxu1 %v1133_v10  ;;  %1597 = vmatpush2.msra.mxu0 %v1261_v11  ;;  %v1241_v10 = vunpack.c.l.bf16 %v1000_v52  ;;  %v932_v11 = vld [vmem:[#allocation4 + $0x168] sm:$0xff] }
 0x20e   : > { %1509 = vmatprep.subr.mxu1 %v1130_v16  ;;  %1598 = vmatprep.subr.mxu0 %v1258_v30  ;;  %v1238_v16 = vunpack.c.h.bf16 %v998_v60  ;;  %v1109_v30 = vunpack.c.l.bf16 %v934_v59  ;;  %v1106_v4 = vunpack.c.h.bf16 %v932_v11  ;;  %v988_v59 = vld [vmem:[#allocation4 + $0x328] sm:$0xff] }
 0x20f   : > { %1510 = vmatpush2.msra.mxu1 %v1129_v31  ;;  %1599 = vmatpush2.msra.mxu0 %v1257_v3  ;;  %v1237_v31 = vunpack.c.l.bf16 %v998_v60  ;;  %v930_v3 = vld [vmem:[#allocation4 + $0x158] sm:$0xff] }
 0x210   : > { %1511 = vmatprep.subr.mxu1 %v1126_v37  ;;  %1600 = vmatprep.subr.mxu0 %v1254_v38  ;;  %v1234_v37 = vunpack.c.h.bf16 %v996_v14  ;;  %v1105_v38 = vunpack.c.l.bf16 %v932_v11  ;;  %v1102_v2 = vunpack.c.h.bf16 %v930_v3  ;;  %v986_v11 = vld [vmem:[#allocation4 + $0x318] sm:$0xff] }
 0x211   : > { %1512 = vmatpush2.msra.mxu1 %v1125_v12  ;;  %1601 = vmatpush2.msra.mxu0 %v1253_v18  ;;  %v1233_v12 = vunpack.c.l.bf16 %v996_v14  ;;  %v928_v18 = vld [vmem:[#allocation4 + $0x148] sm:$0xff] }
 0x212   : > { %1513 = vmatprep.subr.mxu1 %v1122_v43  ;;  %1602 = vmatprep.subr.mxu0 %v1250_v44  ;;  %v1230_v43 = vunpack.c.h.bf16 %v994_v36  ;;  %v1101_v44 = vunpack.c.l.bf16 %v930_v3  ;;  %v1098_v52 = vunpack.c.h.bf16 %v928_v18  ;;  %v984_v3 = vld [vmem:[#allocation4 + $0x308] sm:$0xff] }
 0x213   : > { %1514 = vmatpush2.msra.mxu1 %v1121_v13  ;;  %1603 = vmatpush2.msra.mxu0 %v1249_v19  ;;  %v1229_v13 = vunpack.c.l.bf16 %v994_v36  ;;  %v926_v19 = vld [vmem:[#allocation4 + $0x138] sm:$0xff] }
 0x214   : > { %1515 = vmatprep.subr.mxu1 %v1118_v55  ;;  %1604 = vmatprep.subr.mxu0 %v1246_v56  ;;  %v1226_v55 = vunpack.c.h.bf16 %v992_v41  ;;  %v1097_v56 = vunpack.c.l.bf16 %v928_v18  ;;  %v1094_v60 = vunpack.c.h.bf16 %v926_v19  ;;  %v1210_v18 = vunpack.c.h.bf16 %v984_v3 }
 0x215   : > { %1516 = vmatpush2.msra.mxu1 %v1117_v57  ;;  %1605 = vmatpush2.msra.mxu0 %v1245_v58  ;;  %v1225_v57 = vunpack.c.l.bf16 %v992_v41  ;;  %v924_v58 = vld [vmem:[#allocation4 + $0x128] sm:$0xff] }
 0x216   : > { %1517 = vmatprep.subr.mxu1 %v1114_v62  ;;  %1606 = vmatprep.subr.mxu0 %v1242_v0  ;;  %v1222_v62 = vunpack.c.h.bf16 %v990_v51  ;;  %v1093_v0 = vunpack.c.l.bf16 %v926_v19  ;;  %v1090_v14 = vunpack.c.h.bf16 %v924_v58  ;;  %v1721_v19 = vld [vmem:[#allocation6 + $0x1c0] sm:$0xff] }
 0x217   : > { %1518 = vmatpush2.msra.mxu1 %v1113_v9  ;;  %1607 = vmatpush2.msra.mxu0 %v1241_v10  ;;  %v1221_v9 = vunpack.c.l.bf16 %v990_v51  ;;  %v922_v10 = vld [vmem:[#allocation4 + $0x118] sm:$0xff]  ;;  %v2034_v51 = vunpack.c.h.bf16 %v1721_v19 }
 0x218   : > { %1519 = vmatprep.subr.mxu1 %v1110_v15  ;;  %1608 = vmatprep.subr.mxu0 %v1238_v16  ;;  %v1218_v15 = vunpack.c.h.bf16 %v988_v59  ;;  %v1089_v16 = vunpack.c.l.bf16 %v924_v58  ;;  %v1086_v36 = vunpack.c.h.bf16 %v922_v10 }
 0x219   : > { %1520 = vmatpush2.msra.mxu1 %v1109_v30  ;;  %1609 = vmatpush2.msra.mxu0 %v1237_v31  ;;  %v1217_v30 = vunpack.c.l.bf16 %v988_v59  ;;  %v920_v31 = vld [vmem:[#allocation4 + $0x108] sm:$0xff]  ;;  %v1833_v59 = vld [vmem:[#allocation6 + $0x540] sm:$0xff] }
 0x21a   : > { %1521 = vmatprep.subr.mxu1 %v1106_v4  ;;  %1610 = vmatprep.subr.mxu0 %v1234_v37  ;;  %v1214_v4 = vunpack.c.h.bf16 %v986_v11  ;;  %v1085_v37 = vunpack.c.l.bf16 %v922_v10  ;;  %v1081_v41 = vunpack.c.l.bf16 %v920_v31  ;;  %v2257_v10 = vunpack.c.l.bf16 %v1833_v59 }
 0x21b   : > { %1522 = vmatpush2.msra.mxu1 %v1105_v38  ;;  %1611 = vmatpush2.msra.mxu0 %v1233_v12  ;;  %v1213_v38 = vunpack.c.l.bf16 %v986_v11  ;;  %v1082_v12 = vunpack.c.h.bf16 %v920_v31  ;;  %v1829_v11 = vld [vmem:[#allocation6 + $0x520] sm:$0xff] }
 0x21c   : > { %1523 = vmatprep.subr.mxu1 %v1102_v2  ;;  %1612 = vmatprep.subr.mxu0 %v1230_v43  ;;  %v1209_v2 = vunpack.c.l.bf16 %v984_v3  ;;  %v1725_v43 = vld [vmem:[#allocation6 + $0x1e0] sm:$0xff]  ;;  %v2249_v31 = vunpack.c.l.bf16 %v1829_v11 }
 0x21d   : > { %1524 = vmatpush2.msra.mxu1 %v1101_v44  ;;  %1613 = vmatpush2.msra.mxu0 %v1229_v13  ;;  %v2042_v44 = vunpack.c.h.bf16 %v1725_v43  ;;  %v2041_v13 = vunpack.c.l.bf16 %v1725_v43  ;;  %v1825_v3 = vld [vmem:[#allocation6 + $0x500] sm:$0xff] }
 0x21e   : > { %1525 = vmatprep.subr.mxu1 %v1098_v52  ;;  %1614 = vmatprep.subr.mxu0 %v1226_v55  ;;  %v2033_v52 = vunpack.c.l.bf16 %v1721_v19  ;;  %v1717_v55 = vld [vmem:[#allocation6 + $0x1a0] sm:$0xff] }
 0x21f   : > { %1526 = vmatpush2.msra.mxu1 %v1097_v56  ;;  %1615 = vmatpush2.msra.mxu0 %v1225_v57  ;;  %v2026_v6 = vunpack.c.h.bf16 %v1717_v55  ;;  %v1837_v57 = vld [vmem:[#allocation6 + $0x560] sm:$0xff] }
 0x220   : > { %1527 = vmatprep.subr.mxu1 %v1094_v60  ;;  %1616 = vmatprep.subr.mxu0 %v1222_v62  ;;  %v2265_v58 = vunpack.c.l.bf16 %v1837_v57  ;;  %v2258_v62 = vunpack.c.h.bf16 %v1833_v59  ;;  %v1781_v59 = vld [vmem:[#allocation6 + $0x3a0] sm:$0xff] }
 0x221   : > { %1528 = vmatpush2.msra.mxu1 %v1093_v0  ;;  %1617 = vmatpush2.msra.mxu0 %v1221_v9  ;;  %v1689_v9 = vld [vmem:[#allocation6 + $0xc0] sm:$0xff] }
 0x222   : > { %1529 = vmatprep.subr.mxu1 %v1090_v14  ;;  %1618 = vmatprep.subr.mxu0 %v1218_v15  ;;  %v2250_v15 = vunpack.c.h.bf16 %v1829_v11  ;;  %v1777_v11 = vld [vmem:[#allocation6 + $0x380] sm:$0xff] }
 0x223   : > { %1530 = vmatpush2.msra.mxu1 %v1089_v16  ;;  %1619 = vmatpush2.msra.mxu0 %v1217_v30  ;;  %v1685_v30 = vld [vmem:[#allocation6 + $0xa0] sm:$0xff] }
 0x224   : > { %1531 = vmatprep.subr.mxu1 %v1086_v36  ;;  %1620 = vmatprep.subr.mxu0 %v1214_v4  ;;  %v1970_v36 = vunpack.c.h.bf16 %v1689_v9  ;;  %v2242_v4 = vunpack.c.h.bf16 %v1825_v3 }
 0x225   : > { %1532 = vmatpush2.msra.mxu1 %v1085_v37  ;;  %1621 = vmatpush2.msra.mxu0 %v1213_v38  ;;  %v1969_v37 = vunpack.c.l.bf16 %v1689_v9  ;;  %v1681_v38 = vld [vmem:[#allocation6 + $0x80] sm:$0xff] }
 0x226   : > { %1533 = vmatprep.subr.mxu1 %v1082_v12  ;;  %1622 = vmatprep.subr.mxu0 %v1210_v18  ;;  %v2241_v12 = vunpack.c.l.bf16 %v1825_v3  ;;  %v1821_v18 = vld [vmem:[#allocation6 + $0x4e0] sm:$0xff] }
 0x227   : > { %1534 = vmatpush2.msra.mxu1 %v1081_v41  ;;  %1623 = vmatpush2.msra.mxu0 %v1209_v2  ;;  %v1817_v41 = vld [vmem:[#allocation6 + $0x4c0] sm:$0xff]  ;;  %v1962_v2 = vunpack.c.h.bf16 %v1685_v30  ;;  %v2234_v43 = vunpack.c.h.bf16 %v1821_v18  ;;  %v2233_v19 = vunpack.c.l.bf16 %v1821_v18 }
 0x228   : > { %1536 = vmatmul.mubr.f32.vlgmr.msra.gmra.mxu1 %v871_v24  ;;  %1625 = vmatmul.mubr.f32.vlgmr.msra.gmra.mxu0 %v873_v26  ;;  %v1853_v24 = vld [vmem:[#allocation6 + $0x5e0] sm:$0xff]  ;;  %v2025_v26 = vunpack.c.l.bf16 %v1717_v55  ;;  %v2226_v55 = vunpack.c.h.bf16 %v1817_v41 }
 0x229   : > { %1541 = vmatprep.mubr.f32.mxu1 %v876_v39  ;;  %1630 = vmatprep.mubr.f32.mxu0 %v878_v40  ;;  %v2297_v33 = vunpack.c.l.bf16 %v1853_v24  ;;  %v2298_v34 = vunpack.c.h.bf16 %v1853_v24  ;;  %v2018_v39 = vunpack.c.h.bf16 %v1713_v7  ;;  %v2290_v40 = vunpack.c.h.bf16 %v1849_v28  ;;  %v1669_v28 = vld [vmem:[#allocation6 + $0x20] sm:$0xff] }
 0x22a   : > { %2475 = vmatprep.subr.mxu1 %v2042_v44  ;;  %v1961_v44 = vunpack.c.l.bf16 %v1685_v30  ;;  %v2225_v24 = vunpack.c.l.bf16 %v1817_v41  ;;  %v1773_v3 = vld [vmem:[#allocation6 + $0x360] sm:$0xff] }
 0x22b   : > { %2476 = vmatpush1.msra.mxu1 %v2041_v13  ;;  %2564 = vmatprep.subr.mxu0 %v2298_v34  ;;  %v1677_v13 = vld [vmem:[#allocation6 + $0x60] sm:$0xff] }
 0x22c   : > { %1542 = vmatmul.mubr.f32.gmra.mxu1 %v875_v45  ;;  %1631 = vmatmul.mubr.f32.gmra.mxu0 %v877_v46  ;;  %v2017_v45 = vunpack.c.l.bf16 %v1713_v7  ;;  %v1705_v46 = vld [vmem:[#allocation6 + $0x140] sm:$0xff] }
 0x22d   : > { %1547 = vmatprep.mubr.f32.mxu1 %v880_v5  ;;  %1636 = vmatprep.mubr.f32.mxu0 %v882_v8  ;;  %v2009_v5 = vunpack.c.l.bf16 %v1709_v27  ;;  %v1701_v8 = vld [vmem:[#allocation6 + $0x120] sm:$0xff]  ;;  %v2002_v21 = vunpack.c.h.bf16 %v1705_v46  ;;  %v1945_v27 = vunpack.c.l.bf16 %v1677_v13 }
 0x22e   : > { %2477 = vmatprep.subr.mxu1 %v2034_v51  ;;  %2565 = vmatpush1.msra.mxu0 %v2297_v33  ;;  %v1994_v32 = vunpack.c.h.bf16 %v1701_v8  ;;  %v1993_v35 = vunpack.c.l.bf16 %v1701_v8  ;;  %v1813_v51 = vld [vmem:[#allocation6 + $0x4a0] sm:$0xff]  ;;  %v1946_v33 = vunpack.c.h.bf16 %v1677_v13  ;;  %v2137_v13 = vunpack.c.l.bf16 %v1773_v3 }
 0x22f   : > { %2478 = vmatpush1.msra.mxu1 %v2033_v52  ;;  %2566 = vmatprep.subr.mxu0 %v2290_v40  ;;  %v1954_v52 = vunpack.c.h.bf16 %v1681_v38  ;;  %v1673_v7 = vld [vmem:[#allocation6 + $0x40] sm:$0xff]  ;;  %v2218_v34 = vunpack.c.h.bf16 %v1813_v51 }
 0x230   : > { %1548 = vmatmul.mubr.f32.gmra.mxu1 %v879_v17  ;;  %1637 = vmatmul.mubr.f32.gmra.mxu0 %v881_v20  ;;  %v2281_v17 = vunpack.c.l.bf16 %v1845_v50  ;;  %v1841_v20 = vld [vmem:[#allocation6 + $0x580] sm:$0xff] }
 0x231   : > { %1553 = vmatprep.mubr.f32.mxu1 %v884_v1  ;;  %1642 = vmatprep.mubr.f32.mxu0 %v886_v42  ;;  %v2274_v29 = vunpack.c.h.bf16 %v1841_v20  ;;  %v2001_v1 = vunpack.c.l.bf16 %v1705_v46  ;;  %v1697_v42 = vld [vmem:[#allocation6 + $0x100] sm:$0xff]  ;;  %v2273_v56 = vunpack.c.l.bf16 %v1841_v20 }
 0x232   : > { %2479 = vmatprep.subr.mxu1 %v2026_v6  ;;  %2567 = vmatpush1.msra.mxu0 %v2289_v49  ;;  %v1986_v60 = vunpack.c.h.bf16 %v1697_v42  ;;  %v1985_v0 = vunpack.c.l.bf16 %v1697_v42  ;;  %v1953_v6 = vunpack.c.l.bf16 %v1681_v38  ;;  %v1805_v40 = vld [vmem:[#allocation6 + $0x460] sm:$0xff]  ;;  %v1937_v49 = vunpack.c.l.bf16 %v1673_v7 }
 0x233   : > { %2480 = vmatpush1.msra.mxu1 %v2025_v26  ;;  %2568 = vmatprep.subr.mxu0 %v2282_v54  ;;  %v1809_v26 = vld [vmem:[#allocation6 + $0x480] sm:$0xff]  ;;  %v2202_v8 = vunpack.c.h.bf16 %v1805_v40 }
 0x234   : > { %1554 = vmatmul.mubr.f32.gmra.mxu1 %v883_v47  ;;  %1643 = vmatmul.mubr.f32.gmra.mxu0 %v885_v48  ;;  %v2266_v47 = vunpack.c.h.bf16 %v1837_v57  ;;  %v1693_v48 = vld [vmem:[#allocation6 + $0xe0] sm:$0xff]  ;;  %v2210_v46 = vunpack.c.h.bf16 %v1809_v26 }
 0x235   : > { %2481 = vmatprep.subr.mxu1 %v2018_v39  ;;  %2569 = vmatpush1.msra.mxu0 %v2281_v17  ;;  %v1978_v14 = vunpack.c.h.bf16 %v1693_v48  ;;  %v1977_v16 = vunpack.c.l.bf16 %v1693_v48  ;;  %v2217_v39 = vunpack.c.l.bf16 %v1813_v51  ;;  %v1665_v50 = vld [vmem:[#allocation6] sm:$0xff]  ;;  %v1929_v17 = vunpack.c.l.bf16 %v1669_v28 }
 0x236   : > { %2482 = vmatpush1.msra.mxu1 %v2017_v45  ;;  %2570 = vmatprep.subr.mxu0 %v2274_v29  ;;  %v1938_v45 = vunpack.c.h.bf16 %v1673_v7  ;;  %v1801_v54 = vld [vmem:[#allocation6 + $0x440] sm:$0xff] }
 0x237   : > { %2483 = vmatprep.subr.mxu1 %v2010_v53  ;;  %2571 = vmatpush1.msra.mxu0 %v2273_v56  ;;  %v2209_v53 = vunpack.c.l.bf16 %v1809_v26  ;;  %v1789_v20 = vld [vmem:[#allocation6 + $0x3e0] sm:$0xff]  ;;  %v2194_v42 = vunpack.c.h.bf16 %v1801_v54  ;;  %v1921_v56 = vunpack.c.l.bf16 %v1665_v50 }
 0x238   : > { %2484 = vmatpush1.msra.mxu1 %v2009_v5  ;;  %2572 = vmatprep.subr.mxu0 %v2266_v47  ;;  %v1930_v5 = vunpack.c.h.bf16 %v1669_v28  ;;  %v1797_v29 = vld [vmem:[#allocation6 + $0x420] sm:$0xff] }
 0x239   : > { %2485 = vmatprep.subr.mxu1 %v2002_v21  ;;  %2573 = vmatpush1.msra.mxu0 %v2265_v58  ;;  %v2201_v21 = vunpack.c.l.bf16 %v1805_v40  ;;  %v1785_v57 = vld [vmem:[#allocation6 + $0x3c0] sm:$0xff]  ;;  %v2186_v48 = vunpack.c.h.bf16 %v1797_v29  ;;  %v2169_v58 = vunpack.c.l.bf16 %v1789_v20 }
 0x23a   : > { %2486 = vmatpush1.msra.mxu1 %v2001_v1  ;;  %2574 = vmatprep.subr.mxu0 %v2258_v62  ;;  %v1922_v1 = vunpack.c.h.bf16 %v1665_v50  ;;  %v1793_v47 = vld [vmem:[#allocation6 + $0x400] sm:$0xff] }
 0x23b   : > { %2487 = vmatprep.subr.mxu1 %v1994_v32  ;;  %2575 = vmatpush1.msra.mxu0 %v2257_v10  ;;  %v2193_v32 = vunpack.c.l.bf16 %v1801_v54  ;;  %v1917_v62 = vld [vmem:[#allocation6 + $0x7e0] sm:$0xff]  ;;  %v2178_v9 = vunpack.c.h.bf16 %v1793_v47  ;;  %v2161_v10 = vunpack.c.l.bf16 %v1785_v57 }
 0x23c   : > { %2488 = vmatpush1.msra.mxu1 %v1993_v35  ;;  %2576 = vmatprep.subr.mxu0 %v2250_v15  ;;  %v2170_v35 = vunpack.c.h.bf16 %v1789_v20  ;;  %v1913_v15 = vld [vmem:[#allocation6 + $0x7c0] sm:$0xff]  ;;  %v2426_v30 = vunpack.c.h.bf16 %v1917_v62 }
 0x23d   : > { %2489 = vmatprep.subr.mxu1 %v1986_v60  ;;  %2577 = vmatpush1.msra.mxu0 %v2249_v31  ;;  %v2185_v60 = vunpack.c.l.bf16 %v1797_v29  ;;  %v2153_v31 = vunpack.c.l.bf16 %v1781_v59  ;;  %v2418_v38 = vunpack.c.h.bf16 %v1913_v15  ;;  %v1769_v18 = vld [vmem:[#allocation6 + $0x340] sm:$0xff]  ;;  %v2417_v41 = vunpack.c.l.bf16 %v1913_v15 }
 0x23e   : > { %2490 = vmatpush1.msra.mxu1 %v1985_v0  ;;  %2578 = vmatprep.subr.mxu0 %v2242_v4  ;;  %v2162_v0 = vunpack.c.h.bf16 %v1785_v57  ;;  %v1909_v4 = vld [vmem:[#allocation6 + $0x7a0] sm:$0xff]  ;;  %v2129_v7 = vunpack.c.l.bf16 %v1769_v18 }
 0x23f   : > { %2491 = vmatprep.subr.mxu1 %v1978_v14  ;;  %2579 = vmatpush1.msra.mxu0 %v2241_v12  ;;  %v2177_v14 = vunpack.c.l.bf16 %v1793_v47  ;;  %v2145_v12 = vunpack.c.l.bf16 %v1777_v11  ;;  %v2409_v51 = vunpack.c.l.bf16 %v1909_v4 }
 0x240   : > { %2492 = vmatpush1.msra.mxu1 %v1977_v16  ;;  %2580 = vmatprep.subr.mxu0 %v2234_v43  ;;  %v2154_v16 = vunpack.c.h.bf16 %v1781_v59  ;;  %v2138_v43 = vunpack.c.h.bf16 %v1773_v3 }
 0x241   : > { %2493 = vmatprep.subr.mxu1 %v1970_v36  ;;  %2581 = vmatpush1.msra.mxu0 %v2233_v19  ;;  %v2425_v36 = vunpack.c.l.bf16 %v1917_v62  ;;  %v1765_v19 = vld [vmem:[#allocation6 + $0x320] sm:$0xff] }
 0x242   : > { %2494 = vmatpush1.msra.mxu1 %v1969_v37  ;;  %2582 = vmatprep.subr.mxu0 %v2226_v55  ;;  %v2146_v37 = vunpack.c.h.bf16 %v1777_v11  ;;  %v2130_v55 = vunpack.c.h.bf16 %v1769_v18  ;;  %v2121_v28 = vunpack.c.l.bf16 %v1765_v19  ;;  %v1729_v18 = vld [vmem:[#allocation6 + $0x200] sm:$0xff] }
 0x243   : > { %2495 = vmatprep.subr.mxu1 %v1962_v2  ;;  %2583 = vmatpush1.msra.mxu0 %v2225_v24  ;;  %v1905_v2 = vld [vmem:[#allocation6 + $0x780] sm:$0xff] }
 0x244   : > { %2496 = vmatpush1.msra.mxu1 %v1961_v44  ;;  %2584 = vmatprep.subr.mxu0 %v2218_v34  ;;  %v2410_v44 = vunpack.c.h.bf16 %v1909_v4  ;;  %v1761_v24 = vld [vmem:[#allocation6 + $0x300] sm:$0xff]  ;;  %v2401_v26 = vunpack.c.l.bf16 %v1905_v2  ;;  %v2122_v34 = vunpack.c.h.bf16 %v1765_v19  ;;  %v4959_v19 = vld [vmem:[#allocation6 + $0x1e8] sm:$0xff] }
 0x245   : > { %2497 = vmatprep.subr.mxu1 %v1954_v52  ;;  %2585 = vmatpush1.msra.mxu0 %v2217_v39  ;;  %v1901_v52 = vld [vmem:[#allocation6 + $0x760] sm:$0xff]  ;;  %v2113_v50 = vunpack.c.l.bf16 %v1761_v24 }
 0x246   : > { %2498 = vmatpush1.msra.mxu1 %v1953_v6  ;;  %2586 = vmatprep.subr.mxu0 %v2210_v46  ;;  %v2402_v6 = vunpack.c.h.bf16 %v1905_v2  ;;  %v1757_v39 = vld [vmem:[#allocation6 + $0x2e0] sm:$0xff]  ;;  %v2393_v40 = vunpack.c.l.bf16 %v1901_v52  ;;  %v2114_v46 = vunpack.c.h.bf16 %v1761_v24 }
 0x247   : > { %2499 = vmatprep.subr.mxu1 %v1946_v33  ;;  %2587 = vmatpush1.msra.mxu0 %v2209_v53  ;;  %v1897_v33 = vld [vmem:[#allocation6 + $0x740] sm:$0xff]  ;;  %v2105_v20 = vunpack.c.l.bf16 %v1757_v39 }
 0x248   : > { %2500 = vmatpush1.msra.mxu1 %v1945_v27  ;;  %2588 = vmatprep.subr.mxu0 %v2202_v8  ;;  %v2394_v27 = vunpack.c.h.bf16 %v1901_v52  ;;  %v1753_v53 = vld [vmem:[#allocation6 + $0x2c0] sm:$0xff]  ;;  %v2385_v54 = vunpack.c.l.bf16 %v1897_v33  ;;  %v2106_v8 = vunpack.c.h.bf16 %v1757_v39 }
 0x249   : > { %2501 = vmatprep.subr.mxu1 %v1938_v45  ;;  %2589 = vmatpush1.msra.mxu0 %v2201_v21  ;;  %v1893_v45 = vld [vmem:[#allocation6 + $0x720] sm:$0xff]  ;;  %v2097_v57 = vunpack.c.l.bf16 %v1753_v53 }
 0x24a   : > { %2502 = vmatpush1.msra.mxu1 %v1937_v49  ;;  %2590 = vmatprep.subr.mxu0 %v2194_v42  ;;  %v2386_v49 = vunpack.c.h.bf16 %v1897_v33  ;;  %v1749_v21 = vld [vmem:[#allocation6 + $0x2a0] sm:$0xff]  ;;  %v2377_v29 = vunpack.c.l.bf16 %v1893_v45  ;;  %v2098_v42 = vunpack.c.h.bf16 %v1753_v53  ;;  %v2044_v33 = vunpack.c.h.bf16 %v4959_v19 }
 0x24b   : > { %2503 = vmatprep.subr.mxu1 %v1930_v5  ;;  %2591 = vmatpush1.msra.mxu0 %v2193_v32  ;;  %v1889_v5 = vld [vmem:[#allocation6 + $0x700] sm:$0xff]  ;;  %v2089_v59 = vunpack.c.l.bf16 %v1749_v21 }
 0x24c   : > { %2504 = vmatpush1.msra.mxu1 %v1929_v17  ;;  %2592 = vmatprep.subr.mxu0 %v2186_v48  ;;  %v2378_v17 = vunpack.c.h.bf16 %v1893_v45  ;;  %v1745_v32 = vld [vmem:[#allocation6 + $0x280] sm:$0xff]  ;;  %v2369_v47 = vunpack.c.l.bf16 %v1889_v5  ;;  %v2090_v48 = vunpack.c.h.bf16 %v1749_v21  ;;  %v4962_v45 = vld [vmem:[#allocation6 + $0x5e8] sm:$0xff] }
 0x24d   : > { %2505 = vmatprep.subr.mxu1 %v1922_v1  ;;  %2593 = vmatpush1.msra.mxu0 %v2185_v60  ;;  %v1885_v1 = vld [vmem:[#allocation6 + $0x6e0] sm:$0xff]  ;;  %v2081_v11 = vunpack.c.l.bf16 %v1745_v32 }
 0x24e   : > { %2506 = vmatpush1.msra.mxu1 %v1921_v56  ;;  %2594 = vmatprep.subr.mxu0 %v2178_v9  ;;  %v2370_v56 = vunpack.c.h.bf16 %v1889_v5  ;;  %v1741_v60 = vld [vmem:[#allocation6 + $0x260] sm:$0xff]  ;;  %v2361_v62 = vunpack.c.l.bf16 %v1885_v1  ;;  %v2082_v9 = vunpack.c.h.bf16 %v1745_v32 }
 0x24f   : > { %2507 = vmatprep.subr.mxu1 %v2170_v35  ;;  %2595 = vmatpush1.msra.mxu0 %v2177_v14  ;;  %v1881_v35 = vld [vmem:[#allocation6 + $0x6c0] sm:$0xff]  ;;  %v2073_v3 = vunpack.c.l.bf16 %v1741_v60 }
 0x250   : > { %2508 = vmatpush2.msra.mxu1 %v2169_v58  ;;  %2596 = vmatprep.subr.mxu0 %v2426_v30  ;;  %v2362_v58 = vunpack.c.h.bf16 %v1885_v1  ;;  %v1737_v14 = vld [vmem:[#allocation6 + $0x240] sm:$0xff]  ;;  %v2353_v15 = vunpack.c.l.bf16 %v1881_v35  ;;  %v2074_v30 = vunpack.c.h.bf16 %v1741_v60 }
 0x251   : > { %2509 = vmatprep.subr.mxu1 %v2162_v0  ;;  %2597 = vmatpush2.msra.mxu0 %v2425_v36  ;;  %v1877_v0 = vld [vmem:[#allocation6 + $0x6a0] sm:$0xff] }
 0x252   : > { %2510 = vmatpush2.msra.mxu1 %v2161_v10  ;;  %2598 = vmatprep.subr.mxu0 %v2418_v38  ;;  %v2354_v10 = vunpack.c.h.bf16 %v1881_v35  ;;  %v1733_v36 = vld [vmem:[#allocation6 + $0x220] sm:$0xff]  ;;  %v2345_v4 = vunpack.c.l.bf16 %v1877_v0  ;;  %v2043_v35 = vunpack.c.l.bf16 %v4959_v19 }
 0x253   : > { %2511 = vmatprep.subr.mxu1 %v2154_v16  ;;  %2599 = vmatpush2.msra.mxu0 %v2417_v41  ;;  %v1873_v16 = vld [vmem:[#allocation6 + $0x680] sm:$0xff] }
 0x254   : > { %2512 = vmatpush2.msra.mxu1 %v2153_v31  ;;  %2600 = vmatprep.subr.mxu0 %v2410_v44  ;;  %v2346_v31 = vunpack.c.h.bf16 %v1877_v0  ;;  %v2338_v38 = vunpack.c.h.bf16 %v1873_v16  ;;  %v2337_v41 = vunpack.c.l.bf16 %v1873_v16  ;;  %v1869_v2 = vld [vmem:[#allocation6 + $0x660] sm:$0xff] }
 0x255   : > { %2513 = vmatprep.subr.mxu1 %v2146_v37  ;;  %2601 = vmatpush2.msra.mxu0 %v2409_v51  ;;  %v2066_v37 = vunpack.c.h.bf16 %v1737_v14  ;;  %v2330_v44 = vunpack.c.h.bf16 %v1869_v2  ;;  %v2329_v51 = vunpack.c.l.bf16 %v1869_v2  ;;  %v1865_v52 = vld [vmem:[#allocation6 + $0x640] sm:$0xff] }
 0x256   : > { %2514 = vmatpush2.msra.mxu1 %v2145_v12  ;;  %2602 = vmatprep.subr.mxu0 %v2402_v6  ;;  %v2065_v12 = vunpack.c.l.bf16 %v1737_v14  ;;  %v2322_v6 = vunpack.c.h.bf16 %v1865_v52  ;;  %v2321_v24 = vunpack.c.l.bf16 %v1865_v52 }
 0x257   : > { %2515 = vmatprep.subr.mxu1 %v2138_v43  ;;  %2603 = vmatpush2.msra.mxu0 %v2401_v26  ;;  %v2058_v43 = vunpack.c.h.bf16 %v1733_v36  ;;  %v1861_v26 = vld [vmem:[#allocation6 + $0x620] sm:$0xff] }
 0x258   : > { %2516 = vmatpush2.msra.mxu1 %v2137_v13  ;;  %2604 = vmatprep.subr.mxu0 %v2394_v27  ;;  %v2057_v13 = vunpack.c.l.bf16 %v1733_v36  ;;  %v2313_v27 = vunpack.c.l.bf16 %v1861_v26 }
 0x259   : > { %2517 = vmatprep.subr.mxu1 %v2130_v55  ;;  %2605 = vmatpush2.msra.mxu0 %v2393_v40  ;;  %v2050_v55 = vunpack.c.h.bf16 %v1729_v18 }
 0x25a   : > { %2518 = vmatpush2.msra.mxu1 %v2129_v7  ;;  %2606 = vmatprep.subr.mxu0 %v2386_v49  ;;  %v2049_v7 = vunpack.c.l.bf16 %v1729_v18  ;;  %v4968_v49 = vld [vmem:[%s5174_s1 + $0x6] sm:$0xf] }
 0x25b   : > { %2519 = vmatprep.subr.mxu1 %v2122_v34  ;;  %2607 = vmatpush2.msra.mxu0 %v2385_v54  ;;  %v2314_v34 = vunpack.c.h.bf16 %v1861_v26  ;;  %v4976_v53 = vrot.slane %v4968_v49, %v4806_v25  ;;  %v1706_v18 = vld [vmem:[#allocation6 + $0x148] sm:$0xff] }
 0x25c   : > { %2520 = vmatpush2.msra.mxu1 %v2121_v28  ;;  %2608 = vmatprep.subr.mxu0 %v2378_v17  ;;  %v1857_v28 = vld [vmem:[#allocation6 + $0x600] sm:$0xff]  ;;  %v2004_v52 = vunpack.c.h.bf16 %v1706_v18 }
 0x25d   : > { %2521 = vmatprep.subr.mxu1 %v2114_v46  ;;  %2609 = vmatpush2.msra.mxu0 %v2377_v29  ;;  %v2306_v39 = vunpack.c.h.bf16 %v1857_v28  ;;  %v2305_v40 = vunpack.c.l.bf16 %v1857_v28  ;;  %v2300_v46 = vunpack.c.h.bf16 %v4962_v45 }
 0x25e   : > { %2522 = vmatpush2.msra.mxu1 %v2113_v50  ;;  %2610 = vmatprep.subr.mxu0 %v2370_v56  ;;  %v4972_v50 = vrot.slane %v4968_v49, %v4800_v23 }
 0x25f   : > { %2523 = vmatprep.subr.mxu1 %v2106_v8  ;;  %2611 = vmatpush2.msra.mxu0 %v2369_v47 }
 0x260   : > { %2524 = vmatpush2.msra.mxu1 %v2105_v20  ;;  %2612 = vmatprep.subr.mxu0 %v2362_v58 }
 0x261   : > { %2525 = vmatprep.subr.mxu1 %v2098_v42  ;;  %2613 = vmatpush2.msra.mxu0 %v2361_v62  ;;  %v1722_v42 = vld [vmem:[#allocation6 + $0x1c8] sm:$0xff] }
 0x262   : > { %2526 = vmatpush2.msra.mxu1 %v2097_v57  ;;  %2614 = vmatprep.subr.mxu0 %v2354_v10  ;;  %v2036_v62 = vunpack.c.h.bf16 %v1722_v42  ;;  %v2035_v10 = vunpack.c.l.bf16 %v1722_v42  ;;  %v1686_v42 = vld [vmem:[#allocation6 + $0xa8] sm:$0xff] }
 0x263   : > { %2527 = vmatprep.subr.mxu1 %v2090_v48  ;;  %2615 = vmatpush2.msra.mxu0 %v2353_v15  ;;  %v1718_v48 = vld [vmem:[#allocation6 + $0x1a8] sm:$0xff] }
 0x264   : > { %2528 = vmatpush2.msra.mxu1 %v2089_v59  ;;  %2616 = vmatprep.subr.mxu0 %v2346_v31  ;;  %v2028_v14 = vunpack.c.h.bf16 %v1718_v48  ;;  %v2027_v16 = vunpack.c.l.bf16 %v1718_v48  ;;  %v1964_v48 = vunpack.c.h.bf16 %v1686_v42 }
 0x265   : > { %2529 = vmatprep.subr.mxu1 %v2082_v9  ;;  %2617 = vmatpush2.msra.mxu0 %v2345_v4 }
 0x266   : > { %2530 = vmatpush2.msra.mxu1 %v2081_v11  ;;  %2618 = vmatprep.subr.mxu0 %v2338_v38  ;;  %v1714_v11 = vld [vmem:[#allocation6 + $0x188] sm:$0xff] }
 0x267   : > { %2531 = vmatprep.subr.mxu1 %v2074_v30  ;;  %2619 = vmatpush2.msra.mxu0 %v2337_v41  ;;  %v1710_v30 = vld [vmem:[#allocation6 + $0x168] sm:$0xff]  ;;  %v2020_v4 = vunpack.c.h.bf16 %v1714_v11 }
 0x268   : > { %2532 = vmatpush2.msra.mxu1 %v2073_v3  ;;  %2620 = vmatprep.subr.mxu0 %v2330_v44  ;;  %v2011_v19 = vunpack.c.l.bf16 %v1710_v30 }
 0x269   : > { %2533 = vmatprep.subr.mxu1 %v2066_v37  ;;  %2621 = vmatpush2.msra.mxu0 %v2329_v51  ;;  %v1702_v51 = vld [vmem:[#allocation6 + $0x128] sm:$0xff] }
 0x26a   : > { %2534 = vmatpush2.msra.mxu1 %v2065_v12  ;;  %2622 = vmatprep.subr.mxu0 %v2322_v6  ;;  %v2019_v12 = vunpack.c.l.bf16 %v1714_v11  ;;  %v2003_v6 = vunpack.c.l.bf16 %v1706_v18  ;;  %v1786_v18 = vld [vmem:[#allocation6 + $0x3c8] sm:$0xff] }
 0x26b   : > { %2535 = vmatprep.subr.mxu1 %v2058_v43  ;;  %2623 = vmatpush2.msra.mxu0 %v2321_v24  ;;  %v2012_v43 = vunpack.c.h.bf16 %v1710_v30  ;;  %v1666_v30 = vld [vmem:[#allocation6 + $0x8] sm:$0xff] }
 0x26c   : > { %2536 = vmatpush2.msra.mxu1 %v2057_v13  ;;  %2624 = vmatprep.subr.mxu0 %v2314_v34  ;;  %v1996_v34 = vunpack.c.h.bf16 %v1702_v51 }
 0x26d   : > { %2537 = vmatprep.subr.mxu1 %v2050_v55  ;;  %2625 = vmatpush2.msra.mxu0 %v2313_v27 }
 0x26e   : > { %2538 = vmatpush2.msra.mxu1 %v2049_v7  ;;  %2626 = vmatprep.subr.mxu0 %v2306_v39  ;;  %v1698_v7 = vld [vmem:[#allocation6 + $0x108] sm:$0xff]  ;;  %v1995_v39 = vunpack.c.l.bf16 %v1702_v51 }
 0x26f   : > { %2653 = vmatprep.subr.mxu1 %v2044_v33  ;;  %2627 = vmatpush2.msra.mxu0 %v2305_v40  ;;  %v1694_v40 = vld [vmem:[#allocation6 + $0xe8] sm:$0xff] }
 0x270   : > { %2742 = vmatprep.subr.mxu0 %v2300_v46 }
 0x2a1   : > { %v1359_v54 = vpop.f32.mrf.mxu1  ;;  %v1448_v5 = vpop.f32.mrf.mxu0 }
 0x2a2   : > { %v1360_v8 = vadd.f32 %v1359_v54, %v4972_v50 }
 0x2a3   : > { %v1361_v17 = vpop.f32.mrf.mxu1  ;;  %v1450_v29 = vpop.f32.mrf.mxu0 }
 0x2a4   : > { %v1362_v20 = vadd.f32 %v1361_v17, %v4976_v53  ;;  %v1449_v21 = vadd.f32 %v1448_v5, %v1360_v8  ;;  %v1988_v5 = vunpack.c.h.bf16 %v1698_v7 }
 0x2a6   : > { %v1451_v1 = vadd.f32 %v1450_v29, %v1362_v20  ;;  %v4984_v58 = vmax.f32 %v1449_v21, 0.0  ;;  %v1987_v20 = vunpack.c.l.bf16 %v1698_v7  ;;  %v1690_v21 = vld [vmem:[#allocation6 + $0xc8] sm:$0xff] }
 0x2a7   : > { %v1365_v56 = vpop.f32.mrf.mxu1  ;;  %v1454_v57 = vpop.f32.mrf.mxu0 }
 0x2a8   : > { %v4980_v32 = vmax.f32 %v1451_v1, 0.0  ;;  %v1366_v47 = vadd.f32 %v1365_v56, %v4972_v50  ;;  %v1979_v1 = vunpack.c.l.bf16 %v1694_v40 }
 0x2a9   : > { %v1367_v59 = vpop.f32.mrf.mxu1  ;;  %v1456_v60 = vpop.f32.mrf.mxu0 }
 0x2aa   : > { %v1368_v0 = vadd.f32 %v1367_v59, %v4976_v53  ;;  %v1455_v9 = vadd.f32 %v1454_v57, %v1366_v47  ;;  %2539 = vmatprep.mubr.f32.mxu1 %v4980_v32  ;;  %v1972_v57 = vunpack.c.h.bf16 %v1690_v21  ;;  %v1963_v59 = vunpack.c.l.bf16 %v1686_v42 }
 0x2ab   : > { %2540 = vmatmul.mubr.f32.vlgmr.msra.gmra.mxu1 %v4984_v58 }
 0x2ac   : > { %v1457_v15 = vadd.f32 %v1456_v60, %v1368_v0  ;;  %2654 = vmatpush1.msra.mxu1 %v2043_v35  ;;  %v4989_v31 = vmax.f32 %v1455_v9, 0.0  ;;  %v1682_v35 = vld [vmem:[#allocation6 + $0x88] sm:$0xff] }
 0x2ad   : > { %v1371_v3 = vpop.f32.mrf.mxu1  ;;  %v1460_v36 = vpop.f32.mrf.mxu0  ;;  %2655 = vmatprep.subr.mxu1 %v2036_v62  ;;  %v1678_v60 = vld [vmem:[#allocation6 + $0x68] sm:$0xff]  ;;  %v1956_v62 = vunpack.c.h.bf16 %v1682_v35  ;;  %v1955_v0 = vunpack.c.l.bf16 %v1682_v35 }
 0x2ae   : > { %v1372_v37 = vadd.f32 %v1371_v3, %v4972_v50  ;;  %v4992_v38 = vmax.f32 %v1457_v15, 0.0  ;;  %2656 = vmatpush1.msra.mxu1 %v2035_v10  ;;  %v1674_v9 = vld [vmem:[#allocation6 + $0x48] sm:$0xff]  ;;  %v1948_v10 = vunpack.c.h.bf16 %v1678_v60  ;;  %v1947_v11 = vunpack.c.l.bf16 %v1678_v60 }
 0x2af   : > { %v1373_v41 = vpop.f32.mrf.mxu1  ;;  %v1462_v2 = vpop.f32.mrf.mxu0  ;;  %2657 = vmatprep.subr.mxu1 %v2028_v14  ;;  %v1670_v14 = vld [vmem:[#allocation6 + $0x28] sm:$0xff]  ;;  %v1940_v15 = vunpack.c.h.bf16 %v1674_v9 }
 0x2b0   : > { %v1374_v44 = vadd.f32 %v1373_v41, %v4976_v53  ;;  %v1461_v13 = vadd.f32 %v1460_v36, %v1372_v37  ;;  %2545 = vmatprep.mubr.f32.mxu1 %v4992_v38  ;;  %2658 = vmatpush1.msra.mxu1 %v2027_v16  ;;  %v1939_v16 = vunpack.c.l.bf16 %v1674_v9  ;;  %v1932_v3 = vunpack.c.h.bf16 %v1670_v14 }
 0x2b1   : > { %2546 = vmatmul.mubr.f32.gmra.mxu1 %v4989_v31  ;;  %2659 = vmatprep.subr.mxu1 %v2020_v4  ;;  %v1931_v36 = vunpack.c.l.bf16 %v1670_v14  ;;  %v1790_v4 = vld [vmem:[#allocation6 + $0x3e8] sm:$0xff]  ;;  %v1924_v37 = vunpack.c.h.bf16 %v1666_v30 }
 0x2b2   : > { %v1463_v55 = vadd.f32 %v1462_v2, %v1374_v44  ;;  %2660 = vmatpush1.msra.mxu1 %v2019_v12  ;;  %v4997_v24 = vmax.f32 %v1461_v13, 0.0  ;;  %v1923_v12 = vunpack.c.l.bf16 %v1666_v30  ;;  %v2172_v41 = vunpack.c.h.bf16 %v1790_v4 }
 0x2b3   : > { %v1377_v26 = vpop.f32.mrf.mxu1  ;;  %v1466_v33 = vpop.f32.mrf.mxu0  ;;  %2661 = vmatprep.subr.mxu1 %v2012_v43  ;;  %v2171_v2 = vunpack.c.l.bf16 %v1790_v4  ;;  %v1782_v43 = vld [vmem:[#allocation6 + $0x3a8] sm:$0xff]  ;;  %v2164_v44 = vunpack.c.h.bf16 %v1786_v18  ;;  %v2163_v13 = vunpack.c.l.bf16 %v1786_v18  ;;  %v5014_v4 = vrot.slane %v4968_v49, %v4811_v61  ;;  %v1723_v18 = vld [vmem:[#allocation6 + $0x1d0] sm:$0xff] }
 0x2b4   : > { %v1378_v27 = vadd.f32 %v1377_v26, %v4972_v50  ;;  %v5000_v28 = vmax.f32 %v1463_v55, 0.0  ;;  %2662 = vmatpush1.msra.mxu1 %v2011_v19  ;;  %v1980_v50 = vunpack.c.h.bf16 %v1694_v40  ;;  %v1778_v19 = vld [vmem:[#allocation6 + $0x388] sm:$0xff]  ;;  %v2156_v51 = vunpack.c.h.bf16 %v1782_v43 }
 0x2b5   : > { %v1379_v46 = vpop.f32.mrf.mxu1  ;;  %v1468_v54 = vpop.f32.mrf.mxu0  ;;  %2663 = vmatprep.subr.mxu1 %v2004_v52  ;;  %v2155_v52 = vunpack.c.l.bf16 %v1782_v43  ;;  %v1774_v55 = vld [vmem:[#allocation6 + $0x368] sm:$0xff]  ;;  %v2147_v7 = vunpack.c.l.bf16 %v1778_v19 }
 0x2b6   : > { %v1380_v8 = vadd.f32 %v1379_v46, %v4976_v53  ;;  %v1467_v17 = vadd.f32 %v1466_v33, %v1378_v27  ;;  %2551 = vmatprep.mubr.f32.mxu1 %v5000_v28  ;;  %2664 = vmatpush1.msra.mxu1 %v2003_v6  ;;  %v1971_v53 = vunpack.c.l.bf16 %v1690_v21  ;;  %v2148_v6 = vunpack.c.h.bf16 %v1778_v19  ;;  %v1770_v26 = vld [vmem:[#allocation6 + $0x348] sm:$0xff]  ;;  %v1719_v19 = vld [vmem:[#allocation6 + $0x1b0] sm:$0xff] }
 0x2b7   : > { %2552 = vmatmul.mubr.f32.gmra.mxu1 %v4997_v24  ;;  %2665 = vmatprep.subr.mxu1 %v1996_v34  ;;  %v2140_v33 = vunpack.c.h.bf16 %v1774_v55  ;;  %v2139_v34 = vunpack.c.l.bf16 %v1774_v55  ;;  %v1766_v27 = vld [vmem:[#allocation6 + $0x328] sm:$0xff]  ;;  %v2131_v40 = vunpack.c.l.bf16 %v1770_v26 }
 0x2b8   : > { %v1469_v29 = vadd.f32 %v1468_v54, %v1380_v8  ;;  %2666 = vmatpush1.msra.mxu1 %v1995_v39  ;;  %v5005_v56 = vmax.f32 %v1467_v17, 0.0  ;;  %v2132_v39 = vunpack.c.h.bf16 %v1770_v26  ;;  %v1762_v46 = vld [vmem:[#allocation6 + $0x308] sm:$0xff]  ;;  %v2124_v54 = vunpack.c.h.bf16 %v1766_v27  ;;  %v1715_v26 = vld [vmem:[#allocation6 + $0x190] sm:$0xff] }
 0x2b9   : > { %2667 = vmatprep.subr.mxu1 %v1988_v5  ;;  %v2123_v5 = vunpack.c.l.bf16 %v1766_v27  ;;  %v1758_v8 = vld [vmem:[#allocation6 + $0x2e8] sm:$0xff]  ;;  %v2116_v17 = vunpack.c.h.bf16 %v1762_v46 }
 0x2ba   : > { %v5007_v47 = vmax.f32 %v1469_v29, 0.0  ;;  %2668 = vmatpush1.msra.mxu1 %v1987_v20  ;;  %v2115_v20 = vunpack.c.l.bf16 %v1762_v46  ;;  %v1754_v21 = vld [vmem:[#allocation6 + $0x2c8] sm:$0xff]  ;;  %v2107_v29 = vunpack.c.l.bf16 %v1758_v8 }
 0x2bb   : > { %2669 = vmatprep.subr.mxu1 %v1980_v50  ;;  %v2108_v50 = vunpack.c.h.bf16 %v1758_v8  ;;  %v2100_v42 = vunpack.c.h.bf16 %v1754_v21  ;;  %v2022_v8 = vunpack.c.h.bf16 %v1715_v26 }
 0x2bc   : > { %2557 = vmatprep.mubr.f32.mxu1 %v5007_v47  ;;  %2670 = vmatpush1.msra.mxu1 %v1979_v1  ;;  %v1750_v1 = vld [vmem:[#allocation6 + $0x2a8] sm:$0xff] }
 0x2bd   : > { %2558 = vmatmul.mubr.f32.gmra.mxu1 %v5005_v56  ;;  %2671 = vmatprep.subr.mxu1 %v1972_v57  ;;  %v2099_v57 = vunpack.c.l.bf16 %v1754_v21  ;;  %v2092_v35 = vunpack.c.h.bf16 %v1750_v1 }
 0x2be   : > { %2717 = vmatprep.mubr.f32.mxu1 %v4980_v32  ;;  %2672 = vmatpush1.msra.mxu1 %v1971_v53  ;;  %v1746_v53 = vld [vmem:[#allocation6 + $0x288] sm:$0xff] }
 0x2bf   : > { %2673 = vmatprep.subr.mxu1 %v1964_v48  ;;  %v2091_v48 = vunpack.c.l.bf16 %v1750_v1  ;;  %v2084_v60 = vunpack.c.h.bf16 %v1746_v53 }
 0x2c0   : > { %2674 = vmatpush1.msra.mxu1 %v1963_v59  ;;  %v1742_v59 = vld [vmem:[#allocation6 + $0x268] sm:$0xff] }
 0x2c1   : > { %2675 = vmatprep.subr.mxu1 %v1956_v62  ;;  %v2083_v62 = vunpack.c.l.bf16 %v1746_v53  ;;  %v2076_v9 = vunpack.c.h.bf16 %v1742_v59 }
 0x2c2   : > { %2676 = vmatpush1.msra.mxu1 %v1955_v0  ;;  %v1738_v0 = vld [vmem:[#allocation6 + $0x248] sm:$0xff] }
 0x2c3   : > { %2677 = vmatprep.subr.mxu1 %v1948_v10  ;;  %v2075_v10 = vunpack.c.l.bf16 %v1742_v59  ;;  %v2068_v14 = vunpack.c.h.bf16 %v1738_v0 }
 0x2c4   : > { %2678 = vmatpush1.msra.mxu1 %v1947_v11  ;;  %v1734_v11 = vld [vmem:[#allocation6 + $0x228] sm:$0xff] }
 0x2c5   : > { %2679 = vmatprep.subr.mxu1 %v1940_v15  ;;  %v2067_v15 = vunpack.c.l.bf16 %v1738_v0  ;;  %v2060_v30 = vunpack.c.h.bf16 %v1734_v11 }
 0x2c6   : > { %2680 = vmatpush1.msra.mxu1 %v1939_v16  ;;  %v1730_v16 = vld [vmem:[#allocation6 + $0x208] sm:$0xff] }
 0x2c7   : > { %2681 = vmatprep.subr.mxu1 %v1932_v3  ;;  %v2059_v3 = vunpack.c.l.bf16 %v1734_v11 }
 0x2c8   : > { %2682 = vmatpush1.msra.mxu1 %v1931_v36  ;;  %v1727_v36 = vld [vmem:[#allocation6 + $0x1f0] sm:$0xff] }
 0x2c9   : > { %2683 = vmatprep.subr.mxu1 %v1924_v37  ;;  %v2052_v37 = vunpack.c.h.bf16 %v1730_v16 }
 0x2ca   : > { %2684 = vmatpush1.msra.mxu1 %v1923_v12  ;;  %v2051_v12 = vunpack.c.l.bf16 %v1730_v16 }
 0x2cb   : > { %2685 = vmatprep.subr.mxu1 %v2172_v41  ;;  %v5018_v41 = vrot.slane %v4968_v49, %v4817_v63  ;;  %v2030_v49 = vunpack.c.h.bf16 %v1719_v19 }
 0x2cc   : > { %2686 = vmatpush2.msra.mxu1 %v2171_v2  ;;  %v2046_v2 = vunpack.c.h.bf16 %v1727_v36 }
 0x2cd   : > { %2687 = vmatprep.subr.mxu1 %v2164_v44 }
 0x2ce   : > { %2688 = vmatpush2.msra.mxu1 %v2163_v13  ;;  %v2045_v13 = vunpack.c.l.bf16 %v1727_v36  ;;  %v1838_v36 = vld [vmem:[#allocation6 + $0x568] sm:$0xff] }
 0x2cf   : > { %2689 = vmatprep.subr.mxu1 %v2156_v51 }
 0x2d0   : > { %2690 = vmatpush2.msra.mxu1 %v2155_v52  ;;  %v2038_v52 = vunpack.c.h.bf16 %v1723_v18 }
 0x2d1   : > { %2691 = vmatprep.subr.mxu1 %v2148_v6 }
 0x2d2   : > { %2692 = vmatpush2.msra.mxu1 %v2147_v7  ;;  %v2037_v7 = vunpack.c.l.bf16 %v1723_v18 }
 0x2d3   : > { %2693 = vmatprep.subr.mxu1 %v2140_v33 }
 0x2d4   : > { %2694 = vmatpush2.msra.mxu1 %v2139_v34 }
 0x2d5   : > { %2695 = vmatprep.subr.mxu1 %v2132_v39 }
 0x2d6   : > { %2696 = vmatpush2.msra.mxu1 %v2131_v40  ;;  %v2029_v40 = vunpack.c.l.bf16 %v1719_v19 }
 0x2d7   : > { %2697 = vmatprep.subr.mxu1 %v2124_v54 }
 0x2d8   : > { %2698 = vmatpush2.msra.mxu1 %v2123_v5  ;;  %v1850_v5 = vld [vmem:[#allocation6 + $0x5c8] sm:$0xff] }
 0x2d9   : > { %2699 = vmatprep.subr.mxu1 %v2116_v17  ;;  %v5025_v17 = vld [vmem:[#allocation6 + $0x170] sm:$0xff] }
 0x2da   : > { %2700 = vmatpush2.msra.mxu1 %v2115_v20 }
 0x2db   : > { %2701 = vmatprep.subr.mxu1 %v2108_v50  ;;  %v2021_v50 = vunpack.c.l.bf16 %v1715_v26 }
 0x2dc   : > { %2702 = vmatpush2.msra.mxu1 %v2107_v29 }
 0x2dd   : > { %2703 = vmatprep.subr.mxu1 %v2100_v42  ;;  %v2299_v42 = vunpack.c.l.bf16 %v4962_v45  ;;  %v2291_v45 = vunpack.c.l.bf16 %v1850_v5 }
 0x2de   : > { %2704 = vmatpush2.msra.mxu1 %v2099_v57  ;;  %v1846_v57 = vld [vmem:[#allocation6 + $0x5a8] sm:$0xff] }
 0x2df   : > { %2705 = vmatprep.subr.mxu1 %v2092_v35 }
 0x2e0   : > { %2706 = vmatpush2.msra.mxu1 %v2091_v48 }
 0x2e1   : > { %2707 = vmatprep.subr.mxu1 %v2084_v60  ;;  %v2292_v60 = vunpack.c.h.bf16 %v1850_v5 }
 0x2e2   : > { %2708 = vmatpush2.msra.mxu1 %v2083_v62  ;;  %v2014_v62 = vunpack.c.h.bf16 %v5025_v17 }
 0x2e3   : > { %2709 = vmatprep.subr.mxu1 %v2076_v9 }
 0x2e4   : > { %2710 = vmatpush2.msra.mxu1 %v2075_v10  ;;  %v1842_v10 = vld [vmem:[#allocation6 + $0x588] sm:$0xff] }
 0x2e5   : > { %2711 = vmatprep.subr.mxu1 %v2068_v14 }
 0x2e6   : > { %2712 = vmatpush2.msra.mxu1 %v2067_v15  ;;  %v2284_v15 = vunpack.c.h.bf16 %v1846_v57 }
 0x2e7   : > { %2713 = vmatprep.subr.mxu1 %v2060_v30 }
 0x2e8   : > { %v1537_v43 = vpop.f32.mrf.mxu1  ;;  %v1626_v44 = vpop.f32.mrf.mxu0  ;;  %2714 = vmatpush2.msra.mxu1 %v2059_v3  ;;  %v2283_v3 = vunpack.c.l.bf16 %v1846_v57 }
 0x2e9   : > { %v1538_v51 = vadd.f32 %v1537_v43, %v5014_v4  ;;  %2715 = vmatprep.subr.mxu1 %v2052_v37  ;;  %v2276_v43 = vunpack.c.h.bf16 %v1842_v10 }
 0x2ea   : > { %v1539_v55 = vpop.f32.mrf.mxu1  ;;  %v1628_v6 = vpop.f32.mrf.mxu0  ;;  %2716 = vmatpush2.msra.mxu1 %v2051_v12 }
 0x2eb   : > { %v1540_v33 = vadd.f32 %v1539_v55, %v5018_v41  ;;  %2718 = vmatmul.mubr.f32.vlgmr.msra.gmra.mxu1 %v4984_v58  ;;  %2831 = vmatprep.subr.mxu1 %v2046_v2  ;;  %v1627_v34 = vadd.f32 %v1626_v44, %v1538_v51  ;;  %v2013_v44 = vunpack.c.l.bf16 %v5025_v17  ;;  %v1834_v55 = vld [vmem:[#allocation6 + $0x548] sm:$0xff] }
 0x2ec   : > { %v1543_v27 = vpop.f32.mrf.mxu1  ;;  %v1632_v39 = vpop.f32.mrf.mxu0  ;;  %2723 = vmatprep.mubr.f32.mxu1 %v4992_v38  ;;  %2832 = vmatpush1.msra.mxu1 %v2045_v13  ;;  %v1707_v13 = vld [vmem:[#allocation6 + $0x150] sm:$0xff]  ;;  %v1826_v17 = vld [vmem:[#allocation6 + $0x508] sm:$0xff] }
 0x2ed   : > { %v1629_v46 = vadd.f32 %v1628_v6, %v1540_v33  ;;  %v1544_v54 = vadd.f32 %v1543_v27, %v5014_v4  ;;  %2833 = vmatprep.subr.mxu1 %v2038_v52  ;;  %v5032_v53 = vmax.f32 %v1627_v34, 0.0  ;;  %v2275_v52 = vunpack.c.l.bf16 %v1842_v10 }
 0x2ee   : > { %v1545_v20 = vpop.f32.mrf.mxu1  ;;  %v1634_v21 = vpop.f32.mrf.mxu0  ;;  %2834 = vmatpush1.msra.mxu1 %v2037_v7  ;;  %v2268_v7 = vunpack.c.h.bf16 %v1838_v36  ;;  %v2006_v34 = vunpack.c.h.bf16 %v1707_v13  ;;  %v2244_v57 = vunpack.c.h.bf16 %v1826_v17 }
 0x2ef   : > { %v5027_v29 = vmax.f32 %v1629_v46, 0.0  ;;  %v1546_v1 = vadd.f32 %v1545_v20, %v5018_v41  ;;  %2724 = vmatmul.mubr.f32.gmra.mxu1 %v4989_v31  ;;  %2835 = vmatprep.subr.mxu1 %v2030_v49  ;;  %v1633_v35 = vadd.f32 %v1632_v39, %v1544_v54  ;;  %v2267_v49 = vunpack.c.l.bf16 %v1838_v36 }
 0x2f0   : > { %v1549_v48 = vpop.f32.mrf.mxu1  ;;  %v1638_v59 = vpop.f32.mrf.mxu0  ;;  %2729 = vmatprep.mubr.f32.mxu1 %v5000_v28  ;;  %2836 = vmatpush1.msra.mxu1 %v2029_v40  ;;  %v2260_v46 = vunpack.c.h.bf16 %v1834_v55  ;;  %v2005_v54 = vunpack.c.l.bf16 %v1707_v13 }
 0x2f1   : > { %v1635_v0 = vadd.f32 %v1634_v21, %v1546_v1  ;;  %v1550_v9 = vadd.f32 %v1549_v48, %v5014_v4  ;;  %2628 = vmatprep.mubr.f32.mxu0 %v5027_v29  ;;  %2837 = vmatprep.subr.mxu1 %v2022_v8  ;;  %v5043_v37 = vmax.f32 %v1633_v35, 0.0  ;;  %v2259_v8 = vunpack.c.l.bf16 %v1834_v55  ;;  %v1699_v35 = vld [vmem:[#allocation6 + $0x110] sm:$0xff]  ;;  %v1822_v48 = vld [vmem:[#allocation6 + $0x4e8] sm:$0xff] }
 0x2f2   : > { %v1551_v11 = vpop.f32.mrf.mxu1  ;;  %v1640_v14 = vpop.f32.mrf.mxu0  ;;  %2629 = vmatmul.mubr.f32.vlgmr.msra.gmra.mxu0 %v5032_v53  ;;  %2838 = vmatpush1.msra.mxu1 %v2021_v50  ;;  %v1989_v10 = vunpack.c.l.bf16 %v1699_v35 }
 0x2f3   : > { %v5039_v16 = vmax.f32 %v1635_v0, 0.0  ;;  %v1552_v30 = vadd.f32 %v1551_v11, %v5018_v41  ;;  %2743 = vmatpush1.msra.mxu0 %v2299_v42  ;;  %2730 = vmatmul.mubr.f32.gmra.mxu1 %v4997_v24  ;;  %v1639_v12 = vadd.f32 %v1638_v59, %v1550_v9  ;;  %v1818_v0 = vld [vmem:[#allocation6 + $0x4c8] sm:$0xff]  ;;  %v1990_v9 = vunpack.c.h.bf16 %v1699_v35 }
 0x2f4   : > { %2744 = vmatprep.subr.mxu0 %v2292_v60  ;;  %v1555_v18 = vpop.f32.mrf.mxu1  ;;  %v1644_v2 = vpop.f32.mrf.mxu0  ;;  %2839 = vmatprep.subr.mxu1 %v2014_v62  ;;  %v2243_v60 = vunpack.c.l.bf16 %v1826_v17  ;;  %v1695_v62 = vld [vmem:[#allocation6 + $0xf0] sm:$0xff]  ;;  %v2235_v11 = vunpack.c.l.bf16 %v1822_v48 }
 0x2f5   : > { %v1641_v19 = vadd.f32 %v1640_v14, %v1552_v30  ;;  %v1556_v51 = vadd.f32 %v1555_v18, %v5014_v4  ;;  %2745 = vmatpush1.msra.mxu0 %v2291_v45  ;;  %2634 = vmatprep.mubr.f32.mxu0 %v5039_v16  ;;  %v1830_v4 = vld [vmem:[#allocation6 + $0x528] sm:$0xff]  ;;  %v5053_v27 = vmax.f32 %v1639_v12, 0.0  ;;  %v2236_v45 = vunpack.c.h.bf16 %v1822_v48  ;;  %v1691_v14 = vld [vmem:[#allocation6 + $0xd0] sm:$0xff] }
 0x2f6   : > { %2746 = vmatprep.subr.mxu0 %v2284_v15  ;;  %v1557_v6 = vpop.f32.mrf.mxu1  ;;  %2635 = vmatmul.mubr.f32.gmra.mxu0 %v5043_v37  ;;  %v1646_v40 = vpop.f32.mrf.mxu0  ;;  %v2252_v20 = vunpack.c.h.bf16 %v1830_v4  ;;  %v2251_v50 = vunpack.c.l.bf16 %v1830_v4  ;;  %v1814_v15 = vld [vmem:[#allocation6 + $0x4a8] sm:$0xff]  ;;  %v1982_v30 = vunpack.c.h.bf16 %v1695_v62  ;;  %v1981_v36 = vunpack.c.l.bf16 %v1695_v62  ;;  %v1687_v18 = vld [vmem:[#allocation6 + $0xb0] sm:$0xff] }
 0x2f7   : > { %v5049_v26 = vmax.f32 %v1641_v19, 0.0  ;;  %v1558_v33 = vadd.f32 %v1557_v6, %v5018_v41  ;;  %2747 = vmatpush1.msra.mxu0 %v2283_v3  ;;  %2735 = vmatprep.mubr.f32.mxu1 %v5007_v47  ;;  %v1645_v39 = vadd.f32 %v1644_v2, %v1556_v51  ;;  %v1703_v41 = vld [vmem:[#allocation6 + $0x130] sm:$0xff]  ;;  %v2228_v3 = vunpack.c.h.bf16 %v1818_v0  ;;  %v1810_v2 = vld [vmem:[#allocation6 + $0x488] sm:$0xff] }
 0x2f8   : > { %2748 = vmatprep.subr.mxu0 %v2276_v43  ;;  %2840 = vmatpush1.msra.mxu1 %v2013_v44  ;;  %v1998_v42 = vunpack.c.h.bf16 %v1703_v41  ;;  %v1997_v59 = vunpack.c.l.bf16 %v1703_v41  ;;  %v2227_v12 = vunpack.c.l.bf16 %v1818_v0  ;;  %v1974_v43 = vunpack.c.h.bf16 %v1691_v14  ;;  %v1683_v51 = vld [vmem:[#allocation6 + $0x90] sm:$0xff]  ;;  %v1918_v62 = vld [vmem:[#allocation6 + $0x7e8] sm:$0xff] }
 0x2f9   : > { %v1647_v5 = vadd.f32 %v1646_v40, %v1558_v33  ;;  %2749 = vmatpush1.msra.mxu0 %v2275_v52  ;;  %2640 = vmatprep.mubr.f32.mxu0 %v5049_v26  ;;  %v5059_v1 = vmax.f32 %v1645_v39, 0.0  ;;  %v2220_v44 = vunpack.c.h.bf16 %v1814_v15  ;;  %v1973_v13 = vunpack.c.l.bf16 %v1691_v14  ;;  %v1806_v52 = vld [vmem:[#allocation6 + $0x468] sm:$0xff] }
 0x2fa   : > { %2750 = vmatprep.subr.mxu0 %v2268_v7  ;;  %2641 = vmatmul.mubr.f32.gmra.mxu0 %v5053_v27  ;;  %v2219_v19 = vunpack.c.l.bf16 %v1814_v15  ;;  %v1966_v55 = vunpack.c.h.bf16 %v1687_v18  ;;  %v2212_v6 = vunpack.c.h.bf16 %v1810_v2  ;;  %v1965_v7 = vunpack.c.l.bf16 %v1687_v18  ;;  %v1914_v14 = vld [vmem:[#allocation6 + $0x7c8] sm:$0xff] }
 0x2fb   : > { %v5057_v21 = vmax.f32 %v1647_v5, 0.0  ;;  %2751 = vmatpush1.msra.mxu0 %v2267_v49  ;;  %2841 = vmatprep.subr.mxu1 %v2006_v34  ;;  %v2211_v33 = vunpack.c.l.bf16 %v1810_v2  ;;  %v1679_v49 = vld [vmem:[#allocation6 + $0x70] sm:$0xff]  ;;  %v1802_v34 = vld [vmem:[#allocation6 + $0x448] sm:$0xff]  ;;  %v1958_v4 = vunpack.c.h.bf16 %v1683_v51  ;;  %v2204_v39 = vunpack.c.h.bf16 %v1806_v52 }
 0x2fc   : > { %2752 = vmatprep.subr.mxu0 %v2260_v46  ;;  %2842 = vmatpush1.msra.mxu1 %v2005_v54  ;;  %v1957_v40 = vunpack.c.l.bf16 %v1683_v51  ;;  %v2203_v46 = vunpack.c.l.bf16 %v1806_v52  ;;  %v1675_v54 = vld [vmem:[#allocation6 + $0x50] sm:$0xff]  ;;  %v1798_v5 = vld [vmem:[#allocation6 + $0x428] sm:$0xff]  ;;  %v2196_v41 = vunpack.c.h.bf16 %v1802_v34  ;;  %v1949_v17 = vunpack.c.l.bf16 %v1679_v49 }
 0x2fd   : > { %2753 = vmatpush1.msra.mxu0 %v2259_v8  ;;  %2646 = vmatprep.mubr.f32.mxu0 %v5057_v21  ;;  %v1950_v8 = vunpack.c.h.bf16 %v1679_v49  ;;  %v2188_v35 = vunpack.c.h.bf16 %v1798_v5  ;;  %v1941_v48 = vunpack.c.l.bf16 %v1675_v54  ;;  %v1910_v18 = vld [vmem:[#allocation6 + $0x7a8] sm:$0xff] }
 0x2fe   : > { %2754 = vmatprep.subr.mxu0 %v2252_v20  ;;  %2647 = vmatmul.mubr.f32.gmra.mxu0 %v5059_v1  ;;  %v2195_v20 = vunpack.c.l.bf16 %v1802_v34  ;;  %v1906_v51 = vld [vmem:[#allocation6 + $0x788] sm:$0xff] }
 0x2ff   : > { %2736 = vmatmul.mubr.f32.gmra.mxu1 %v5005_v56  ;;  %2755 = vmatpush1.msra.mxu0 %v2251_v50  ;;  %v1671_v50 = vld [vmem:[#allocation6 + $0x30] sm:$0xff]  ;;  %v1902_v49 = vld [vmem:[#allocation6 + $0x768] sm:$0xff] }
 0x300   : > { %2843 = vmatprep.subr.mxu1 %v1998_v42  ;;  %2756 = vmatprep.subr.mxu0 %v2244_v57  ;;  %v1794_v42 = vld [vmem:[#allocation6 + $0x408] sm:$0xff]  ;;  %v1942_v57 = vunpack.c.h.bf16 %v1675_v54  ;;  %v1934_v0 = vunpack.c.h.bf16 %v1671_v50 }
 0x301   : > { %2806 = vmatprep.mubr.f32.mxu0 %v5027_v29  ;;  %2844 = vmatpush1.msra.mxu1 %v1997_v59  ;;  %v2187_v59 = vunpack.c.l.bf16 %v1798_v5  ;;  %v1898_v54 = vld [vmem:[#allocation6 + $0x748] sm:$0xff] }
 0x302   : > { %2895 = vmatprep.mubr.f32.mxu1 %v4980_v32  ;;  %2757 = vmatpush1.msra.mxu0 %v2243_v60  ;;  %v1667_v60 = vld [vmem:[#allocation6 + $0x10] sm:$0xff] }
 0x303   : > { %2845 = vmatprep.subr.mxu1 %v1990_v9  ;;  %2758 = vmatprep.subr.mxu0 %v2236_v45  ;;  %v2180_v9 = vunpack.c.h.bf16 %v1794_v42  ;;  %v1933_v45 = vunpack.c.l.bf16 %v1671_v50  ;;  %v1926_v15 = vunpack.c.h.bf16 %v1667_v60  ;;  %v1894_v50 = vld [vmem:[#allocation6 + $0x728] sm:$0xff] }
 0x304   : > { %2846 = vmatpush1.msra.mxu1 %v1989_v10  ;;  %2759 = vmatpush1.msra.mxu0 %v2235_v11  ;;  %v2179_v10 = vunpack.c.l.bf16 %v1794_v42  ;;  %v1791_v11 = vld [vmem:[#allocation6 + $0x3f0] sm:$0xff] }
 0x305   : > { %2847 = vmatprep.subr.mxu1 %v1982_v30  ;;  %2760 = vmatprep.subr.mxu0 %v2228_v3  ;;  %v2428_v30 = vunpack.c.h.bf16 %v1918_v62  ;;  %v1925_v3 = vunpack.c.l.bf16 %v1667_v60  ;;  %v2174_v2 = vunpack.c.h.bf16 %v1791_v11  ;;  %v1890_v60 = vld [vmem:[#allocation6 + $0x708] sm:$0xff] }
 0x306   : > { %2848 = vmatpush1.msra.mxu1 %v1981_v36  ;;  %2761 = vmatpush1.msra.mxu0 %v2227_v12  ;;  %v2427_v36 = vunpack.c.l.bf16 %v1918_v62  ;;  %v1787_v12 = vld [vmem:[#allocation6 + $0x3d0] sm:$0xff] }
 0x307   : > { %2849 = vmatprep.subr.mxu1 %v1974_v43  ;;  %2762 = vmatprep.subr.mxu0 %v2220_v44  ;;  %v2420_v43 = vunpack.c.h.bf16 %v1914_v14  ;;  %v2173_v44 = vunpack.c.l.bf16 %v1791_v11  ;;  %v2166_v52 = vunpack.c.h.bf16 %v1787_v12  ;;  %v1886_v11 = vld [vmem:[#allocation6 + $0x6e8] sm:$0xff] }
 0x308   : > { %2850 = vmatpush1.msra.mxu1 %v1973_v13  ;;  %2763 = vmatpush1.msra.mxu0 %v2219_v19  ;;  %v2419_v13 = vunpack.c.l.bf16 %v1914_v14  ;;  %v1783_v19 = vld [vmem:[#allocation6 + $0x3b0] sm:$0xff] }
 0x309   : > { %2851 = vmatprep.subr.mxu1 %v1966_v55  ;;  %2764 = vmatprep.subr.mxu0 %v2212_v6  ;;  %v2412_v55 = vunpack.c.h.bf16 %v1910_v18  ;;  %v2165_v6 = vunpack.c.l.bf16 %v1787_v12  ;;  %v2158_v34 = vunpack.c.h.bf16 %v1783_v19  ;;  %v1882_v12 = vld [vmem:[#allocation6 + $0x6c8] sm:$0xff] }
 0x30a   : > { %2852 = vmatpush1.msra.mxu1 %v1965_v7  ;;  %2765 = vmatpush1.msra.mxu0 %v2211_v33  ;;  %v2411_v7 = vunpack.c.l.bf16 %v1910_v18  ;;  %v1779_v33 = vld [vmem:[#allocation6 + $0x390] sm:$0xff] }
 0x30b   : > { %2853 = vmatprep.subr.mxu1 %v1958_v4  ;;  %2766 = vmatprep.subr.mxu0 %v2204_v39  ;;  %v2404_v4 = vunpack.c.h.bf16 %v1906_v51  ;;  %v2157_v39 = vunpack.c.l.bf16 %v1783_v19  ;;  %v2150_v5 = vunpack.c.h.bf16 %v1779_v33  ;;  %v1878_v19 = vld [vmem:[#allocation6 + $0x6a8] sm:$0xff] }
 0x30c   : > { %2854 = vmatpush1.msra.mxu1 %v1957_v40  ;;  %2767 = vmatpush1.msra.mxu0 %v2203_v46  ;;  %v2403_v40 = vunpack.c.l.bf16 %v1906_v51  ;;  %v1775_v46 = vld [vmem:[#allocation6 + $0x370] sm:$0xff] }
 0x30d   : > { %2855 = vmatprep.subr.mxu1 %v1950_v8  ;;  %2768 = vmatprep.subr.mxu0 %v2196_v41  ;;  %v2396_v8 = vunpack.c.h.bf16 %v1902_v49  ;;  %v2149_v41 = vunpack.c.l.bf16 %v1779_v33  ;;  %v2142_v42 = vunpack.c.h.bf16 %v1775_v46  ;;  %v1874_v33 = vld [vmem:[#allocation6 + $0x688] sm:$0xff] }
 0x30e   : > { %2856 = vmatpush1.msra.mxu1 %v1949_v17  ;;  %2769 = vmatpush1.msra.mxu0 %v2195_v20  ;;  %v2395_v17 = vunpack.c.l.bf16 %v1902_v49  ;;  %v1771_v20 = vld [vmem:[#allocation6 + $0x350] sm:$0xff] }
 0x30f   : > { %2857 = vmatprep.subr.mxu1 %v1942_v57  ;;  %2770 = vmatprep.subr.mxu0 %v2188_v35  ;;  %v2388_v57 = vunpack.c.h.bf16 %v1898_v54  ;;  %v2141_v35 = vunpack.c.l.bf16 %v1775_v46  ;;  %v2134_v62 = vunpack.c.h.bf16 %v1771_v20  ;;  %v1870_v46 = vld [vmem:[#allocation6 + $0x668] sm:$0xff] }
 0x310   : > { %2858 = vmatpush1.msra.mxu1 %v1941_v48  ;;  %2771 = vmatpush1.msra.mxu0 %v2187_v59  ;;  %v2387_v48 = vunpack.c.l.bf16 %v1898_v54  ;;  %v1767_v59 = vld [vmem:[#allocation6 + $0x330] sm:$0xff] }
 0x311   : > { %2859 = vmatprep.subr.mxu1 %v1934_v0  ;;  %2772 = vmatprep.subr.mxu0 %v2180_v9  ;;  %v2380_v0 = vunpack.c.h.bf16 %v1894_v50  ;;  %v2133_v9 = vunpack.c.l.bf16 %v1771_v20  ;;  %v2126_v14 = vunpack.c.h.bf16 %v1767_v59  ;;  %v1866_v20 = vld [vmem:[#allocation6 + $0x648] sm:$0xff] }
 0x312   : > { %2860 = vmatpush1.msra.mxu1 %v1933_v45  ;;  %2773 = vmatpush1.msra.mxu0 %v2179_v10  ;;  %v2379_v45 = vunpack.c.l.bf16 %v1894_v50  ;;  %v1763_v10 = vld [vmem:[#allocation6 + $0x310] sm:$0xff] }
 0x313   : > { %2861 = vmatprep.subr.mxu1 %v1926_v15  ;;  %2774 = vmatprep.subr.mxu0 %v2428_v30  ;;  %v2372_v15 = vunpack.c.h.bf16 %v1890_v60  ;;  %v2125_v30 = vunpack.c.l.bf16 %v1767_v59  ;;  %v2118_v18 = vunpack.c.h.bf16 %v1763_v10  ;;  %v1862_v59 = vld [vmem:[#allocation6 + $0x628] sm:$0xff] }
 0x314   : > { %2862 = vmatpush1.msra.mxu1 %v1925_v3  ;;  %2775 = vmatpush2.msra.mxu0 %v2427_v36  ;;  %v2371_v3 = vunpack.c.l.bf16 %v1890_v60  ;;  %v1759_v36 = vld [vmem:[#allocation6 + $0x2f0] sm:$0xff] }
 0x315   : > { %2863 = vmatprep.subr.mxu1 %v2174_v2  ;;  %2776 = vmatprep.subr.mxu0 %v2420_v43  ;;  %v2364_v2 = vunpack.c.h.bf16 %v1886_v11  ;;  %v2117_v43 = vunpack.c.l.bf16 %v1763_v10  ;;  %v2110_v51 = vunpack.c.h.bf16 %v1759_v36  ;;  %v1858_v10 = vld [vmem:[#allocation6 + $0x608] sm:$0xff] }
 0x316   : > { %2864 = vmatpush2.msra.mxu1 %v2173_v44  ;;  %2777 = vmatpush2.msra.mxu0 %v2419_v13  ;;  %v2363_v44 = vunpack.c.l.bf16 %v1886_v11  ;;  %v1755_v13 = vld [vmem:[#allocation6 + $0x2d0] sm:$0xff] }
 0x317   : > { %2865 = vmatprep.subr.mxu1 %v2166_v52  ;;  %2778 = vmatprep.subr.mxu0 %v2412_v55  ;;  %v2356_v52 = vunpack.c.h.bf16 %v1882_v12  ;;  %v2109_v55 = vunpack.c.l.bf16 %v1759_v36  ;;  %v2102_v49 = vunpack.c.h.bf16 %v1755_v13 }
 0x318   : > { %2866 = vmatpush2.msra.mxu1 %v2165_v6  ;;  %2779 = vmatpush2.msra.mxu0 %v2411_v7  ;;  %v2355_v6 = vunpack.c.l.bf16 %v1882_v12  ;;  %v1751_v7 = vld [vmem:[#allocation6 + $0x2b0] sm:$0xff]  ;;  %v2308_v12 = vunpack.c.h.bf16 %v1858_v10 }
 0x319   : > { %2867 = vmatprep.subr.mxu1 %v2158_v34  ;;  %2780 = vmatprep.subr.mxu0 %v2404_v4  ;;  %v2348_v34 = vunpack.c.h.bf16 %v1878_v19  ;;  %v2101_v4 = vunpack.c.l.bf16 %v1755_v13  ;;  %v2094_v54 = vunpack.c.h.bf16 %v1751_v7  ;;  %v1728_v13 = vld [vmem:[#allocation6 + $0x1f8] sm:$0xff] }
 0x31a   : > { %2868 = vmatpush2.msra.mxu1 %v2157_v39  ;;  %2781 = vmatpush2.msra.mxu0 %v2403_v40  ;;  %v2347_v39 = vunpack.c.l.bf16 %v1878_v19  ;;  %v1747_v40 = vld [vmem:[#allocation6 + $0x290] sm:$0xff] }
 0x31b   : > { %2869 = vmatprep.subr.mxu1 %v2150_v5  ;;  %2782 = vmatprep.subr.mxu0 %v2396_v8  ;;  %v2340_v5 = vunpack.c.h.bf16 %v1874_v33  ;;  %v2093_v8 = vunpack.c.l.bf16 %v1751_v7  ;;  %v2086_v50 = vunpack.c.h.bf16 %v1747_v40  ;;  %v1724_v7 = vld [vmem:[#allocation6 + $0x1d8] sm:$0xff] }
 0x31c   : > { %2870 = vmatpush2.msra.mxu1 %v2149_v41  ;;  %2783 = vmatpush2.msra.mxu0 %v2395_v17  ;;  %v2339_v41 = vunpack.c.l.bf16 %v1874_v33  ;;  %v1743_v17 = vld [vmem:[#allocation6 + $0x270] sm:$0xff] }
 0x31d   : > { %2871 = vmatprep.subr.mxu1 %v2142_v42  ;;  %2784 = vmatprep.subr.mxu0 %v2388_v57  ;;  %v2332_v42 = vunpack.c.h.bf16 %v1870_v46  ;;  %v2085_v57 = vunpack.c.l.bf16 %v1747_v40  ;;  %v2078_v60 = vunpack.c.h.bf16 %v1743_v17  ;;  %v1720_v40 = vld [vmem:[#allocation6 + $0x1b8] sm:$0xff] }
 0x31e   : > { %2872 = vmatpush2.msra.mxu1 %v2141_v35  ;;  %2785 = vmatpush2.msra.mxu0 %v2387_v48  ;;  %v2331_v35 = vunpack.c.l.bf16 %v1870_v46  ;;  %v1739_v48 = vld [vmem:[#allocation6 + $0x250] sm:$0xff]  ;;  %v2039_v46 = vunpack.c.l.bf16 %v1724_v7 }
 0x31f   : > { %2873 = vmatprep.subr.mxu1 %v2134_v62  ;;  %2786 = vmatprep.subr.mxu0 %v2380_v0  ;;  %v2324_v62 = vunpack.c.h.bf16 %v1866_v20  ;;  %v2077_v0 = vunpack.c.l.bf16 %v1743_v17  ;;  %v2070_v11 = vunpack.c.h.bf16 %v1739_v48  ;;  %v1716_v17 = vld [vmem:[#allocation6 + $0x198] sm:$0xff] }
 0x320   : > { %2874 = vmatpush2.msra.mxu1 %v2133_v9  ;;  %2787 = vmatpush2.msra.mxu0 %v2379_v45  ;;  %v2323_v9 = vunpack.c.l.bf16 %v1866_v20  ;;  %v1735_v45 = vld [vmem:[#allocation6 + $0x230] sm:$0xff] }
 0x321   : > { %2875 = vmatprep.subr.mxu1 %v2126_v14  ;;  %2788 = vmatprep.subr.mxu0 %v2372_v15  ;;  %v2316_v14 = vunpack.c.h.bf16 %v1862_v59  ;;  %v2069_v15 = vunpack.c.l.bf16 %v1739_v48  ;;  %v2062_v36 = vunpack.c.h.bf16 %v1735_v45  ;;  %v1712_v48 = vld [vmem:[#allocation6 + $0x178] sm:$0xff] }
 0x322   : > { %2876 = vmatpush2.msra.mxu1 %v2125_v30  ;;  %2789 = vmatpush2.msra.mxu0 %v2371_v3  ;;  %v2315_v30 = vunpack.c.l.bf16 %v1862_v59  ;;  %v1731_v3 = vld [vmem:[#allocation6 + $0x210] sm:$0xff]  ;;  %v2023_v59 = vunpack.c.l.bf16 %v1716_v17 }
 0x323   : > { %2877 = vmatprep.subr.mxu1 %v2118_v18  ;;  %2790 = vmatprep.subr.mxu0 %v2364_v2  ;;  %v1855_v18 = vld [vmem:[#allocation6 + $0x5f0] sm:$0xff]  ;;  %v2061_v2 = vunpack.c.l.bf16 %v1735_v45  ;;  %v2053_v19 = vunpack.c.l.bf16 %v1731_v3  ;;  %v1708_v45 = vld [vmem:[#allocation6 + $0x158] sm:$0xff] }
 0x324   : > { %2878 = vmatpush2.msra.mxu1 %v2117_v43  ;;  %2791 = vmatpush2.msra.mxu0 %v2363_v44  ;;  %v2307_v43 = vunpack.c.l.bf16 %v1858_v10  ;;  %v2054_v44 = vunpack.c.h.bf16 %v1731_v3  ;;  %v1704_v3 = vld [vmem:[#allocation6 + $0x138] sm:$0xff] }
 0x325   : > { %2879 = vmatprep.subr.mxu1 %v2110_v51  ;;  %2792 = vmatprep.subr.mxu0 %v2356_v52  ;;  %v2302_v51 = vunpack.c.h.bf16 %v1855_v18  ;;  %v1851_v52 = vld [vmem:[#allocation6 + $0x5d0] sm:$0xff] }
 0x326   : > { %2880 = vmatpush2.msra.mxu1 %v2109_v55  ;;  %2793 = vmatpush2.msra.mxu0 %v2355_v6  ;;  %v2301_v55 = vunpack.c.l.bf16 %v1855_v18  ;;  %v2048_v6 = vunpack.c.h.bf16 %v1728_v13  ;;  %v2294_v33 = vunpack.c.h.bf16 %v1851_v52  ;;  %v1827_v18 = vld [vmem:[#allocation6 + $0x510] sm:$0xff] }
 0x327   : > { %2881 = vmatprep.subr.mxu1 %v2102_v49  ;;  %2794 = vmatprep.subr.mxu0 %v2348_v34  ;;  %v1847_v49 = vld [vmem:[#allocation6 + $0x5b0] sm:$0xff]  ;;  %v2047_v34 = vunpack.c.l.bf16 %v1728_v13 }
 0x328   : > { %2882 = vmatpush2.msra.mxu1 %v2101_v4  ;;  %2795 = vmatpush2.msra.mxu0 %v2347_v39  ;;  %v2293_v4 = vunpack.c.l.bf16 %v1851_v52  ;;  %v2040_v39 = vunpack.c.h.bf16 %v1724_v7  ;;  %v1823_v13 = vld [vmem:[#allocation6 + $0x4f0] sm:$0xff]  ;;  %v2245_v52 = vunpack.c.l.bf16 %v1827_v18 }
 0x329   : > { %2883 = vmatprep.subr.mxu1 %v2094_v54  ;;  %2796 = vmatprep.subr.mxu0 %v2340_v5  ;;  %v2286_v54 = vunpack.c.h.bf16 %v1847_v49  ;;  %v1843_v5 = vld [vmem:[#allocation6 + $0x590] sm:$0xff] }
 0x32a   : > { %2884 = vmatpush2.msra.mxu1 %v2093_v8  ;;  %2797 = vmatpush2.msra.mxu0 %v2339_v41  ;;  %v2285_v8 = vunpack.c.l.bf16 %v1847_v49  ;;  %v2032_v41 = vunpack.c.h.bf16 %v1720_v40  ;;  %v2278_v20 = vunpack.c.h.bf16 %v1843_v5 }
 0x32b   : > { %2885 = vmatprep.subr.mxu1 %v2086_v50  ;;  %2798 = vmatprep.subr.mxu0 %v2332_v42  ;;  %v1839_v50 = vld [vmem:[#allocation6 + $0x570] sm:$0xff]  ;;  %v2031_v42 = vunpack.c.l.bf16 %v1720_v40 }
 0x32c   : > { %2886 = vmatpush2.msra.mxu1 %v2085_v57  ;;  %2799 = vmatpush2.msra.mxu0 %v2331_v35  ;;  %v2277_v57 = vunpack.c.l.bf16 %v1843_v5  ;;  %v2024_v35 = vunpack.c.h.bf16 %v1716_v17 }
 0x32d   : > { %2887 = vmatprep.subr.mxu1 %v2078_v60  ;;  %2800 = vmatprep.subr.mxu0 %v2324_v62  ;;  %v2270_v60 = vunpack.c.h.bf16 %v1839_v50  ;;  %v1835_v62 = vld [vmem:[#allocation6 + $0x550] sm:$0xff] }
 0x32e   : > { %2888 = vmatpush2.msra.mxu1 %v2077_v0  ;;  %2801 = vmatpush2.msra.mxu0 %v2323_v9  ;;  %v2269_v0 = vunpack.c.l.bf16 %v1839_v50  ;;  %v2016_v9 = vunpack.c.h.bf16 %v1712_v48  ;;  %v2262_v10 = vunpack.c.h.bf16 %v1835_v62 }
 0x32f   : > { %2889 = vmatprep.subr.mxu1 %v2070_v11  ;;  %2802 = vmatprep.subr.mxu0 %v2316_v14  ;;  %v1831_v11 = vld [vmem:[#allocation6 + $0x530] sm:$0xff]  ;;  %v2015_v14 = vunpack.c.l.bf16 %v1712_v48 }
 0x330   : > { %2890 = vmatpush2.msra.mxu1 %v2069_v15  ;;  %2803 = vmatpush2.msra.mxu0 %v2315_v30  ;;  %v2261_v15 = vunpack.c.l.bf16 %v1835_v62  ;;  %v2008_v30 = vunpack.c.h.bf16 %v1708_v45  ;;  %v1680_v62 = vld [vmem:[#allocation6 + $0x78] sm:$0xff] }
 0x331   : > { %2891 = vmatprep.subr.mxu1 %v2062_v36  ;;  %2804 = vmatprep.subr.mxu0 %v2308_v12  ;;  %v2007_v36 = vunpack.c.l.bf16 %v1708_v45  ;;  %v2254_v12 = vunpack.c.h.bf16 %v1831_v11 }
 0x332   : > { %2892 = vmatpush2.msra.mxu1 %v2061_v2  ;;  %2805 = vmatpush2.msra.mxu0 %v2307_v43  ;;  %v2253_v2 = vunpack.c.l.bf16 %v1831_v11  ;;  %v2000_v43 = vunpack.c.h.bf16 %v1704_v3 }
 0x333   : > { %2893 = vmatprep.subr.mxu1 %v2054_v44  ;;  %2807 = vmatmul.mubr.f32.vlgmr.msra.gmra.mxu0 %v5032_v53  ;;  %v1700_v44 = vld [vmem:[#allocation6 + $0x118] sm:$0xff] }
 0x334   : > { %2894 = vmatpush2.msra.mxu1 %v2053_v19  ;;  %2920 = vmatprep.subr.mxu0 %v2302_v51  ;;  %v1999_v19 = vunpack.c.l.bf16 %v1704_v3  ;;  %v2246_v51 = vunpack.c.h.bf16 %v1827_v18  ;;  %v1992_v7 = vunpack.c.h.bf16 %v1700_v44  ;;  %v1991_v49 = vunpack.c.l.bf16 %v1700_v44  ;;  %v1672_v18 = vld [vmem:[#allocation6 + $0x38] sm:$0xff] }
 0x335   : > { %2812 = vmatprep.mubr.f32.mxu0 %v5039_v16  ;;  %2896 = vmatmul.mubr.f32.vlgmr.msra.gmra.mxu1 %v4984_v58 }
 0x336   : > { %2921 = vmatpush1.msra.mxu0 %v2301_v55  ;;  %3009 = vmatprep.subr.mxu1 %v2048_v6  ;;  %v1696_v55 = vld [vmem:[#allocation6 + $0xf8] sm:$0xff]  ;;  %v1819_v6 = vld [vmem:[#allocation6 + $0x4d0] sm:$0xff] }
 0x337   : > { %2901 = vmatprep.mubr.f32.mxu1 %v4992_v38  ;;  %2922 = vmatprep.subr.mxu0 %v2294_v33  ;;  %v2238_v33 = vunpack.c.h.bf16 %v1823_v13  ;;  %v1984_v40 = vunpack.c.h.bf16 %v1696_v55  ;;  %v2229_v5 = vunpack.c.l.bf16 %v1819_v6 }
 0x338   : > { %3010 = vmatpush1.msra.mxu1 %v2047_v34  ;;  %2923 = vmatpush1.msra.mxu0 %v2293_v4  ;;  %v2237_v34 = vunpack.c.l.bf16 %v1823_v13  ;;  %v1692_v4 = vld [vmem:[#allocation6 + $0xd8] sm:$0xff] }
 0x339   : > { %3011 = vmatprep.subr.mxu1 %v2040_v39  ;;  %2813 = vmatmul.mubr.f32.gmra.mxu0 %v5043_v37  ;;  %v1815_v39 = vld [vmem:[#allocation6 + $0x4b0] sm:$0xff]  ;;  %v1976_v17 = vunpack.c.h.bf16 %v1692_v4  ;;  %v1975_v50 = vunpack.c.l.bf16 %v1692_v4 }
 0x33a   : > { %2924 = vmatprep.subr.mxu0 %v2286_v54  ;;  %3012 = vmatpush1.msra.mxu1 %v2039_v46  ;;  %v2230_v46 = vunpack.c.h.bf16 %v1819_v6  ;;  %v1983_v54 = vunpack.c.l.bf16 %v1696_v55  ;;  %v1936_v55 = vunpack.c.h.bf16 %v1672_v18 }
 0x33b   : > { %2818 = vmatprep.mubr.f32.mxu0 %v5049_v26  ;;  %2902 = vmatmul.mubr.f32.gmra.mxu1 %v4989_v31 }
 0x33c   : > { %2925 = vmatpush1.msra.mxu0 %v2285_v8  ;;  %3013 = vmatprep.subr.mxu1 %v2032_v41  ;;  %v1688_v8 = vld [vmem:[#allocation6 + $0xb8] sm:$0xff]  ;;  %v1811_v41 = vld [vmem:[#allocation6 + $0x490] sm:$0xff] }
 0x33d   : > { %2907 = vmatprep.mubr.f32.mxu1 %v5000_v28  ;;  %2926 = vmatprep.subr.mxu0 %v2278_v20  ;;  %v2222_v20 = vunpack.c.h.bf16 %v1815_v39  ;;  %v1968_v48 = vunpack.c.h.bf16 %v1688_v8 }
 0x33e   : > { %3014 = vmatpush1.msra.mxu1 %v2031_v42  ;;  %2927 = vmatpush1.msra.mxu0 %v2277_v57  ;;  %v2221_v42 = vunpack.c.l.bf16 %v1815_v39  ;;  %v1684_v57 = vld [vmem:[#allocation6 + $0x98] sm:$0xff] }
 0x33f   : > { %3015 = vmatprep.subr.mxu1 %v2024_v35  ;;  %2819 = vmatmul.mubr.f32.gmra.mxu0 %v5053_v27  ;;  %v1807_v35 = vld [vmem:[#allocation6 + $0x470] sm:$0xff] }
 0x340   : > { %2928 = vmatprep.subr.mxu0 %v2270_v60  ;;  %3016 = vmatpush1.msra.mxu1 %v2023_v59  ;;  %v2214_v59 = vunpack.c.h.bf16 %v1811_v41  ;;  %v2213_v60 = vunpack.c.l.bf16 %v1811_v41  ;;  %v2206_v45 = vunpack.c.h.bf16 %v1807_v35  ;;  %v2205_v11 = vunpack.c.l.bf16 %v1807_v35 }
 0x341   : > { %2824 = vmatprep.mubr.f32.mxu0 %v5057_v21  ;;  %2908 = vmatmul.mubr.f32.gmra.mxu1 %v4997_v24 }
 0x342   : > { %2929 = vmatpush1.msra.mxu0 %v2269_v0  ;;  %3017 = vmatprep.subr.mxu1 %v2016_v9  ;;  %v1803_v0 = vld [vmem:[#allocation6 + $0x450] sm:$0xff]  ;;  %v1960_v9 = vunpack.c.h.bf16 %v1684_v57 }
 0x343   : > { %2913 = vmatprep.mubr.f32.mxu1 %v5007_v47  ;;  %2930 = vmatprep.subr.mxu0 %v2262_v10  ;;  %v1959_v10 = vunpack.c.l.bf16 %v1684_v57  ;;  %v2198_v3 = vunpack.c.h.bf16 %v1803_v0 }
 0x344   : > { %3018 = vmatpush1.msra.mxu1 %v2015_v14  ;;  %2931 = vmatpush1.msra.mxu0 %v2261_v15  ;;  %v1676_v14 = vld [vmem:[#allocation6 + $0x58] sm:$0xff]  ;;  %v1799_v15 = vld [vmem:[#allocation6 + $0x430] sm:$0xff] }
 0x345   : > { %3019 = vmatprep.subr.mxu1 %v2008_v30  ;;  %2825 = vmatmul.mubr.f32.gmra.mxu0 %v5059_v1  ;;  %v1952_v30 = vunpack.c.h.bf16 %v1680_v62  ;;  %v2190_v44 = vunpack.c.h.bf16 %v1799_v15  ;;  %v1943_v13 = vunpack.c.l.bf16 %v1676_v14 }
 0x346   : > { %2932 = vmatprep.subr.mxu0 %v2254_v12  ;;  %3020 = vmatpush1.msra.mxu1 %v2007_v36  ;;  %v1951_v36 = vunpack.c.l.bf16 %v1680_v62  ;;  %v2197_v12 = vunpack.c.l.bf16 %v1803_v0 }
 0x347   : > { %2914 = vmatmul.mubr.f32.gmra.mxu1 %v5005_v56  ;;  %2933 = vmatpush1.msra.mxu0 %v2253_v2  ;;  %v1795_v2 = vld [vmem:[#allocation6 + $0x410] sm:$0xff] }
 0x348   : > { %2984 = vmatprep.mubr.f32.mxu0 %v5027_v29  ;;  %3021 = vmatprep.subr.mxu1 %v2000_v43  ;;  %v1944_v43 = vunpack.c.h.bf16 %v1676_v14  ;;  %v2182_v6 = vunpack.c.h.bf16 %v1795_v2 }
 0x349   : > { %2934 = vmatprep.subr.mxu0 %v2246_v51  ;;  %3022 = vmatpush1.msra.mxu1 %v1999_v19  ;;  %v2189_v19 = vunpack.c.l.bf16 %v1799_v15  ;;  %v1668_v51 = vld [vmem:[#allocation6 + $0x18] sm:$0xff] }
 0x34a   : > { %3073 = vmatprep.mubr.f32.mxu1 %v4980_v32  ;;  %2935 = vmatpush1.msra.mxu0 %v2245_v52  ;;  %v1967_v32 = vunpack.c.l.bf16 %v1688_v8  ;;  %v1919_v52 = vld [vmem:[#allocation6 + $0x7f0] sm:$0xff]  ;;  %v1928_v4 = vunpack.c.h.bf16 %v1668_v51 }
 0x34b   : > { %3023 = vmatprep.subr.mxu1 %v1992_v7  ;;  %2936 = vmatprep.subr.mxu0 %v2238_v33  ;;  %v1935_v7 = vunpack.c.l.bf16 %v1672_v18  ;;  %v2181_v33 = vunpack.c.l.bf16 %v1795_v2  ;;  %v2430_v39 = vunpack.c.h.bf16 %v1919_v52 }
 0x34c   : > { %3024 = vmatpush1.msra.mxu1 %v1991_v49  ;;  %2937 = vmatpush1.msra.mxu0 %v2237_v34  ;;  %v1792_v49 = vld [vmem:[#allocation6 + $0x3f8] sm:$0xff]  ;;  %v1915_v34 = vld [vmem:[#allocation6 + $0x7d0] sm:$0xff] }
 0x34d   : > { %3025 = vmatprep.subr.mxu1 %v1984_v40  ;;  %2938 = vmatprep.subr.mxu0 %v2230_v46  ;;  %v1927_v40 = vunpack.c.l.bf16 %v1668_v51  ;;  %v2429_v46 = vunpack.c.l.bf16 %v1919_v52  ;;  %v2176_v8 = vunpack.c.h.bf16 %v1792_v49  ;;  %v2422_v41 = vunpack.c.h.bf16 %v1915_v34 }
 0x34e   : > { %3026 = vmatpush1.msra.mxu1 %v1983_v54  ;;  %2939 = vmatpush1.msra.mxu0 %v2229_v5  ;;  %v1788_v54 = vld [vmem:[#allocation6 + $0x3d8] sm:$0xff]  ;;  %v1911_v5 = vld [vmem:[#allocation6 + $0x7b0] sm:$0xff] }
 0x34f   : > { %3027 = vmatprep.subr.mxu1 %v1976_v17  ;;  %2940 = vmatprep.subr.mxu0 %v2222_v20  ;;  %v2175_v17 = vunpack.c.l.bf16 %v1792_v49  ;;  %v2421_v20 = vunpack.c.l.bf16 %v1915_v34  ;;  %v2168_v57 = vunpack.c.h.bf16 %v1788_v54  ;;  %v2414_v35 = vunpack.c.h.bf16 %v1911_v5 }
 0x350   : > { %3028 = vmatpush1.msra.mxu1 %v1975_v50  ;;  %2941 = vmatpush1.msra.mxu0 %v2221_v42  ;;  %v1784_v50 = vld [vmem:[#allocation6 + $0x3b8] sm:$0xff]  ;;  %v1907_v42 = vld [vmem:[#allocation6 + $0x790] sm:$0xff] }
 0x351   : > { %3029 = vmatprep.subr.mxu1 %v1968_v48  ;;  %2942 = vmatprep.subr.mxu0 %v2214_v59  ;;  %v2167_v48 = vunpack.c.l.bf16 %v1788_v54  ;;  %v2413_v59 = vunpack.c.l.bf16 %v1911_v5  ;;  %v2160_v62 = vunpack.c.h.bf16 %v1784_v50  ;;  %v2406_v0 = vunpack.c.h.bf16 %v1907_v42 }
 0x352   : > { %3030 = vmatpush1.msra.mxu1 %v1967_v32  ;;  %2943 = vmatpush1.msra.mxu0 %v2213_v60  ;;  %v1780_v32 = vld [vmem:[#allocation6 + $0x398] sm:$0xff]  ;;  %v1903_v60 = vld [vmem:[#allocation6 + $0x770] sm:$0xff] }
 0x353   : > { %3031 = vmatprep.subr.mxu1 %v1960_v9  ;;  %2944 = vmatprep.subr.mxu0 %v2206_v45  ;;  %v2159_v9 = vunpack.c.l.bf16 %v1784_v50  ;;  %v2405_v45 = vunpack.c.l.bf16 %v1907_v42  ;;  %v2152_v14 = vunpack.c.h.bf16 %v1780_v32  ;;  %v2398_v15 = vunpack.c.h.bf16 %v1903_v60 }
 0x354   : > { %3032 = vmatpush1.msra.mxu1 %v1959_v10  ;;  %2945 = vmatpush1.msra.mxu0 %v2205_v11  ;;  %v1776_v10 = vld [vmem:[#allocation6 + $0x378] sm:$0xff]  ;;  %v1899_v11 = vld [vmem:[#allocation6 + $0x750] sm:$0xff] }
 0x355   : > { %3033 = vmatprep.subr.mxu1 %v1952_v30  ;;  %2946 = vmatprep.subr.mxu0 %v2198_v3  ;;  %v2151_v30 = vunpack.c.l.bf16 %v1780_v32  ;;  %v2397_v3 = vunpack.c.l.bf16 %v1903_v60  ;;  %v2144_v18 = vunpack.c.h.bf16 %v1776_v10  ;;  %v2390_v2 = vunpack.c.h.bf16 %v1899_v11 }
 0x356   : > { %3034 = vmatpush1.msra.mxu1 %v1951_v36  ;;  %2947 = vmatpush1.msra.mxu0 %v2197_v12  ;;  %v1772_v36 = vld [vmem:[#allocation6 + $0x358] sm:$0xff]  ;;  %v1895_v12 = vld [vmem:[#allocation6 + $0x730] sm:$0xff] }
 0x357   : > { %3035 = vmatprep.subr.mxu1 %v1944_v43  ;;  %2948 = vmatprep.subr.mxu0 %v2190_v44  ;;  %v2143_v43 = vunpack.c.l.bf16 %v1776_v10  ;;  %v2389_v44 = vunpack.c.l.bf16 %v1899_v11  ;;  %v2136_v51 = vunpack.c.h.bf16 %v1772_v36  ;;  %v2382_v52 = vunpack.c.h.bf16 %v1895_v12 }
 0x358   : > { %3036 = vmatpush1.msra.mxu1 %v1943_v13  ;;  %2949 = vmatpush1.msra.mxu0 %v2189_v19  ;;  %v1768_v13 = vld [vmem:[#allocation6 + $0x338] sm:$0xff]  ;;  %v1891_v19 = vld [vmem:[#allocation6 + $0x710] sm:$0xff] }
 0x359   : > { %3037 = vmatprep.subr.mxu1 %v1936_v55  ;;  %2950 = vmatprep.subr.mxu0 %v2182_v6  ;;  %v2135_v55 = vunpack.c.l.bf16 %v1772_v36  ;;  %v2381_v6 = vunpack.c.l.bf16 %v1895_v12  ;;  %v2128_v49 = vunpack.c.h.bf16 %v1768_v13  ;;  %v2374_v34 = vunpack.c.h.bf16 %v1891_v19 }
 0x35a   : > { %3038 = vmatpush1.msra.mxu1 %v1935_v7  ;;  %2951 = vmatpush1.msra.mxu0 %v2181_v33  ;;  %v1764_v7 = vld [vmem:[#allocation6 + $0x318] sm:$0xff]  ;;  %v1887_v33 = vld [vmem:[#allocation6 + $0x6f0] sm:$0xff] }
 0x35b   : > { %3039 = vmatprep.subr.mxu1 %v1928_v4  ;;  %2952 = vmatprep.subr.mxu0 %v2430_v39  ;;  %v2127_v4 = vunpack.c.l.bf16 %v1768_v13  ;;  %v2373_v39 = vunpack.c.l.bf16 %v1891_v19  ;;  %v2120_v54 = vunpack.c.h.bf16 %v1764_v7  ;;  %v2366_v5 = vunpack.c.h.bf16 %v1887_v33 }
 0x35c   : > { %3040 = vmatpush1.msra.mxu1 %v1927_v40  ;;  %2953 = vmatpush2.msra.mxu0 %v2429_v46  ;;  %v1760_v40 = vld [vmem:[#allocation6 + $0x2f8] sm:$0xff]  ;;  %v1883_v46 = vld [vmem:[#allocation6 + $0x6d0] sm:$0xff] }
 0x35d   : > { %3041 = vmatprep.subr.mxu1 %v2176_v8  ;;  %2954 = vmatprep.subr.mxu0 %v2422_v41  ;;  %v2119_v8 = vunpack.c.l.bf16 %v1764_v7  ;;  %v2365_v41 = vunpack.c.l.bf16 %v1887_v33  ;;  %v2112_v50 = vunpack.c.h.bf16 %v1760_v40  ;;  %v2358_v42 = vunpack.c.h.bf16 %v1883_v46 }
 0x35e   : > { %3042 = vmatpush2.msra.mxu1 %v2175_v17  ;;  %2955 = vmatpush2.msra.mxu0 %v2421_v20  ;;  %v1756_v17 = vld [vmem:[#allocation6 + $0x2d8] sm:$0xff]  ;;  %v1879_v20 = vld [vmem:[#allocation6 + $0x6b0] sm:$0xff] }
 0x35f   : > { %3043 = vmatprep.subr.mxu1 %v2168_v57  ;;  %2956 = vmatprep.subr.mxu0 %v2414_v35  ;;  %v2111_v57 = vunpack.c.l.bf16 %v1760_v40  ;;  %v2357_v35 = vunpack.c.l.bf16 %v1883_v46  ;;  %v2104_v32 = vunpack.c.h.bf16 %v1756_v17  ;;  %v2350_v60 = vunpack.c.h.bf16 %v1879_v20  ;;  %v1856_v46 = vld [vmem:[#allocation6 + $0x5f8] sm:$0xff] }
 0x360   : > { %3044 = vmatpush2.msra.mxu1 %v2167_v48  ;;  %2957 = vmatpush2.msra.mxu0 %v2413_v59  ;;  %v1752_v48 = vld [vmem:[#allocation6 + $0x2b8] sm:$0xff]  ;;  %v1875_v59 = vld [vmem:[#allocation6 + $0x690] sm:$0xff] }
 0x361   : > { %3045 = vmatprep.subr.mxu1 %v2160_v62  ;;  %2958 = vmatprep.subr.mxu0 %v2406_v0  ;;  %v2103_v62 = vunpack.c.l.bf16 %v1756_v17  ;;  %v2349_v0 = vunpack.c.l.bf16 %v1879_v20  ;;  %v2096_v10 = vunpack.c.h.bf16 %v1752_v48  ;;  %v2342_v11 = vunpack.c.h.bf16 %v1875_v59  ;;  %v1852_v20 = vld [vmem:[#allocation6 + $0x5d8] sm:$0xff] }
 0x362   : > { %3046 = vmatpush2.msra.mxu1 %v2159_v9  ;;  %2959 = vmatpush2.msra.mxu0 %v2405_v45  ;;  %v1748_v9 = vld [vmem:[#allocation6 + $0x298] sm:$0xff]  ;;  %v1871_v45 = vld [vmem:[#allocation6 + $0x670] sm:$0xff]  ;;  %v2304_v17 = vunpack.c.h.bf16 %v1856_v46 }
 0x363   : > { %3047 = vmatprep.subr.mxu1 %v2152_v14  ;;  %2960 = vmatprep.subr.mxu0 %v2398_v15  ;;  %v2095_v14 = vunpack.c.l.bf16 %v1752_v48  ;;  %v2341_v15 = vunpack.c.l.bf16 %v1875_v59  ;;  %v2088_v36 = vunpack.c.h.bf16 %v1748_v9  ;;  %v2334_v12 = vunpack.c.h.bf16 %v1871_v45  ;;  %v1844_v48 = vld [vmem:[#allocation6 + $0x598] sm:$0xff] }
 0x364   : > { %3048 = vmatpush2.msra.mxu1 %v2151_v30  ;;  %2961 = vmatpush2.msra.mxu0 %v2397_v3  ;;  %v1744_v30 = vld [vmem:[#allocation6 + $0x278] sm:$0xff]  ;;  %v1867_v3 = vld [vmem:[#allocation6 + $0x650] sm:$0xff] }
 0x365   : > { %3049 = vmatprep.subr.mxu1 %v2144_v18  ;;  %2962 = vmatprep.subr.mxu0 %v2390_v2  ;;  %v2087_v18 = vunpack.c.l.bf16 %v1748_v9  ;;  %v2333_v2 = vunpack.c.l.bf16 %v1871_v45  ;;  %v2080_v13 = vunpack.c.h.bf16 %v1744_v30  ;;  %v2326_v19 = vunpack.c.h.bf16 %v1867_v3  ;;  %v1836_v9 = vld [vmem:[#allocation6 + $0x558] sm:$0xff] }
 0x366   : > { %3050 = vmatpush2.msra.mxu1 %v2143_v43  ;;  %2963 = vmatpush2.msra.mxu0 %v2389_v44  ;;  %v1740_v43 = vld [vmem:[#allocation6 + $0x258] sm:$0xff]  ;;  %v1863_v44 = vld [vmem:[#allocation6 + $0x630] sm:$0xff] }
 0x367   : > { %3051 = vmatprep.subr.mxu1 %v2136_v51  ;;  %2964 = vmatprep.subr.mxu0 %v2382_v52  ;;  %v2079_v51 = vunpack.c.l.bf16 %v1744_v30  ;;  %v2325_v52 = vunpack.c.l.bf16 %v1867_v3  ;;  %v2072_v7 = vunpack.c.h.bf16 %v1740_v43  ;;  %v2318_v33 = vunpack.c.h.bf16 %v1863_v44  ;;  %v4209_v30 = vld [vmem:[#allocation7 + $0x38] sm:$0xff]  }
 0x368   : > { %3052 = vmatpush2.msra.mxu1 %v2135_v55  ;;  %2965 = vmatpush2.msra.mxu0 %v2381_v6  ;;  %v1736_v55 = vld [vmem:[#allocation6 + $0x238] sm:$0xff]  ;;  %v1859_v6 = vld [vmem:[#allocation6 + $0x610] sm:$0xff] }
 0x369   : > { %3053 = vmatprep.subr.mxu1 %v2128_v49  ;;  %2966 = vmatprep.subr.mxu0 %v2374_v34  ;;  %v2071_v49 = vunpack.c.l.bf16 %v1740_v43  ;;  %v2317_v34 = vunpack.c.l.bf16 %v1863_v44  ;;  %v2310_v40 = vunpack.c.h.bf16 %v1859_v6  ;;  %v1824_v3 = vld [vmem:[#allocation6 + $0x4f8] sm:$0xff] }
 0x36a   : > { %3054 = vmatpush2.msra.mxu1 %v2127_v4  ;;  %2967 = vmatpush2.msra.mxu0 %v2373_v39  ;;  %v1732_v4 = vld [vmem:[#allocation6 + $0x218] sm:$0xff]  ;;  %v2064_v39 = vunpack.c.h.bf16 %v1736_v55 }
 0x36b   : > { %3055 = vmatprep.subr.mxu1 %v2120_v54  ;;  %2968 = vmatprep.subr.mxu0 %v2366_v5  ;;  %v2063_v54 = vunpack.c.l.bf16 %v1736_v55  ;;  %v2309_v5 = vunpack.c.l.bf16 %v1859_v6  ;;  %v1820_v44 = vld [vmem:[#allocation6 + $0x4d8] sm:$0xff] }
 0x36c   : > { %3056 = vmatpush2.msra.mxu1 %v2119_v8  ;;  %2969 = vmatpush2.msra.mxu0 %v2365_v41  ;;  %v2056_v8 = vunpack.c.h.bf16 %v1732_v4  ;;  %v2055_v41 = vunpack.c.l.bf16 %v1732_v4  ;;  %v2232_v6 = vunpack.c.h.bf16 %v1820_v44  ;;  %v4207_v4 = vld [vmem:[#allocation7 + $0x28] sm:$0xff]  }
 0x36d   : > { %3057 = vmatprep.subr.mxu1 %v2112_v50  ;;  %2970 = vmatprep.subr.mxu0 %v2358_v42  ;;  %v2303_v50 = vunpack.c.l.bf16 %v1856_v46  ;;  %v1848_v42 = vld [vmem:[#allocation6 + $0x5b8] sm:$0xff] }
 0x36e   : > { %3058 = vmatpush2.msra.mxu1 %v2111_v57  ;;  %2971 = vmatpush2.msra.mxu0 %v2357_v35  ;;  %v2296_v57 = vunpack.c.h.bf16 %v1852_v20  ;;  %v2295_v35 = vunpack.c.l.bf16 %v1852_v20  ;;  %v2288_v59 = vunpack.c.h.bf16 %v1848_v42  ;;  %v1808_v46 = vld [vmem:[#allocation6 + $0x478] sm:$0xff] }
 0x36f   : > { %3059 = vmatprep.subr.mxu1 %v2104_v32  ;;  %2972 = vmatprep.subr.mxu0 %v2350_v60  ;;  %v2287_v32 = vunpack.c.l.bf16 %v1848_v42  ;;  %v1840_v60 = vld [vmem:[#allocation6 + $0x578] sm:$0xff]  ;;  %v4206_v42 = vld [vmem:[#allocation7 + $0x20] sm:$0xff]  }
 0x370   : > { %3060 = vmatpush2.msra.mxu1 %v2103_v62  ;;  %2973 = vmatpush2.msra.mxu0 %v2349_v0  ;;  %v2280_v62 = vunpack.c.h.bf16 %v1844_v48  ;;  %v2279_v0 = vunpack.c.l.bf16 %v1844_v48  ;;  %v2272_v45 = vunpack.c.h.bf16 %v1840_v60  ;;  %v1804_v20 = vld [vmem:[#allocation6 + $0x458] sm:$0xff]  ;;  %v2207_v48 = vunpack.c.l.bf16 %v1808_v46 }
 0x371   : > { %3061 = vmatprep.subr.mxu1 %v2096_v10  ;;  %2974 = vmatprep.subr.mxu0 %v2342_v11  ;;  %v2264_v10 = vunpack.c.h.bf16 %v1836_v9  ;;  %v4217_v11 = vld [vmem:[#allocation7 + $0x78] sm:$0xff]  }
 0x372   : > { %3062 = vmatpush2.msra.mxu1 %v2095_v14  ;;  %2975 = vmatpush2.msra.mxu0 %v2341_v15  ;;  %v2263_v14 = vunpack.c.l.bf16 %v1836_v9  ;;  %v1828_v15 = vld [vmem:[#allocation6 + $0x518] sm:$0xff]  ;;  %v2199_v9 = vunpack.c.l.bf16 %v1804_v20 }
 0x373   : > { %3063 = vmatprep.subr.mxu1 %v2088_v36  ;;  %2976 = vmatprep.subr.mxu0 %v2334_v12  ;;  %v4010_v36 = vunpack.c.h.bf16 %v4217_v11  ;;  %v2248_v12 = vunpack.c.h.bf16 %v1828_v15  ;;  %v2247_v43 = vunpack.c.l.bf16 %v1828_v15  ;;  %v1920_v15 = vld [vmem:[#allocation6 + $0x7f8] sm:$0xff] }
 0x374   : > { %3064 = vmatpush2.msra.mxu1 %v2087_v18  ;;  %2977 = vmatpush2.msra.mxu0 %v2333_v2  ;;  %v3978_v18 = vunpack.c.h.bf16 %v4209_v30  ;;  %v4216_v2 = vld [vmem:[#allocation7 + $0x70] sm:$0xff]  }
 0x375   : > { %3065 = vmatprep.subr.mxu1 %v2080_v13  ;;  %2978 = vmatprep.subr.mxu0 %v2326_v19  ;;  %v4009_v13 = vunpack.c.l.bf16 %v4217_v11  ;;  %v3977_v19 = vunpack.c.l.bf16 %v4209_v30  ;;  %v4006_v55 = vunpack.c.h.bf16 %v4216_v2  ;;  %v3965_v11 = vunpack.c.l.bf16 %v4206_v42 }
 0x376   : > { %3066 = vmatpush2.msra.mxu1 %v2079_v51  ;;  %2979 = vmatpush2.msra.mxu0 %v2325_v52  ;;  %v2239_v51 = vunpack.c.l.bf16 %v1824_v3  ;;  %v1816_v52 = vld [vmem:[#allocation6 + $0x4b8] sm:$0xff] }
 0x377   : > { %3067 = vmatprep.subr.mxu1 %v2072_v7  ;;  %2980 = vmatprep.subr.mxu0 %v2318_v33  ;;  %v4215_v33 = vld [vmem:[#allocation7 + $0x68] sm:$0xff]  }
 0x378   : > { %3068 = vmatpush2.msra.mxu1 %v2071_v49  ;;  %2981 = vmatpush2.msra.mxu0 %v2317_v34  ;;  %v1812_v49 = vld [vmem:[#allocation6 + $0x498] sm:$0xff]  ;;  %v4005_v34 = vunpack.c.l.bf16 %v4216_v2  ;;  %v4204_v2 = vld [vmem:[#allocation7 + $0x10] sm:$0xff]  }
 0x379   : > { %3069 = vmatprep.subr.mxu1 %v2064_v39  ;;  %2982 = vmatprep.subr.mxu0 %v2310_v40  ;;  %v2223_v40 = vunpack.c.l.bf16 %v1816_v52 }
 0x37a   : > { %3070 = vmatpush2.msra.mxu1 %v2063_v54  ;;  %2983 = vmatpush2.msra.mxu0 %v2309_v5  ;;  %v4002_v54 = vunpack.c.h.bf16 %v4215_v33  ;;  %v2216_v5 = vunpack.c.h.bf16 %v1812_v49 }
 0x37b   : > { %3071 = vmatprep.subr.mxu1 %v2056_v8  ;;  %2985 = vmatmul.mubr.f32.vlgmr.msra.gmra.mxu0 %v5032_v53  ;;  %v3970_v8 = vunpack.c.h.bf16 %v4207_v4 }
 0x37c   : > { %3072 = vmatpush2.msra.mxu1 %v2055_v41  ;;  %3098 = vmatprep.subr.mxu0 %v2304_v17  ;;  %v4214_v41 = vld [vmem:[#allocation7 + $0x60] sm:$0xff]   ;;  %v2215_v17 = vunpack.c.l.bf16 %v1812_v49  ;;  %v3957_v49 = vunpack.c.l.bf16 %v4204_v2 }
 0x37d   : > { %2990 = vmatprep.mubr.f32.mxu0 %v5039_v16  ;;  %3074 = vmatmul.mubr.f32.vlgmr.msra.gmra.mxu1 %v4984_v58  ;;  %v2271_v58 = vunpack.c.l.bf16 %v1840_v60  ;;  %v2200_v60 = vunpack.c.h.bf16 %v1804_v20 }
 0x37e   : > { %3099 = vmatpush1.msra.mxu0 %v2303_v50  ;;  %3079 = vmatprep.mubr.f32.mxu1 %v4992_v38  ;;  %v1832_v38 = vld [vmem:[#allocation6 + $0x538] sm:$0xff]  ;;  %v4001_v50 = vunpack.c.l.bf16 %v4215_v33  ;;  %v4203_v33 = vld [vmem:[#allocation7 + $0x8] sm:$0xff]  }
 0x37f   : > { %3100 = vmatprep.subr.mxu0 %v2296_v57  ;;  %2991 = vmatmul.mubr.f32.gmra.mxu0 %v5043_v37  ;;  %v2208_v57 = vunpack.c.h.bf16 %v1808_v46  ;;  %v4210_v46 = vld [vmem:[#allocation7 + $0x40] sm:$0xff]   ;;  %v3953_v20 = vunpack.c.l.bf16 %v4203_v33 }
 0x380   : > { %3101 = vmatpush1.msra.mxu0 %v2295_v35  ;;  %2996 = vmatprep.mubr.f32.mxu0 %v5049_v26  ;;  %v3969_v35 = vunpack.c.l.bf16 %v4207_v4  ;;  %v1904_v4 = vld [vmem:[#allocation6 + $0x778] sm:$0xff] }
 0x381   : > { %3102 = vmatprep.subr.mxu0 %v2288_v59  ;;  %3080 = vmatmul.mubr.f32.gmra.mxu1 %v4989_v31  ;;  %v2256_v31 = vunpack.c.h.bf16 %v1832_v38  ;;  %v1800_v59 = vld [vmem:[#allocation6 + $0x438] sm:$0xff] }
 0x382   : > { %3103 = vmatpush1.msra.mxu0 %v2287_v32  ;;  %3085 = vmatprep.mubr.f32.mxu1 %v5000_v28  ;;  %v2255_v28 = vunpack.c.l.bf16 %v1832_v38  ;;  %v3998_v32 = vunpack.c.h.bf16 %v4214_v41  ;;  %v4205_v38 = vld [vmem:[#allocation7 + $0x18] sm:$0xff]  }
 0x383   : > { %3104 = vmatprep.subr.mxu0 %v2280_v62  ;;  %2997 = vmatmul.mubr.f32.gmra.mxu0 %v5053_v27  ;;  %v3966_v62 = vunpack.c.h.bf16 %v4206_v42  ;;  %v2399_v42 = vunpack.c.l.bf16 %v1904_v4 }
 0x384   : > { %3105 = vmatpush1.msra.mxu0 %v2279_v0  ;;  %3002 = vmatprep.mubr.f32.mxu0 %v5057_v21  ;;  %v4213_v0 = vld [vmem:[#allocation7 + $0x58] sm:$0xff]  }
 0x385   : > { %3106 = vmatprep.subr.mxu0 %v2272_v45  ;;  %3086 = vmatmul.mubr.f32.gmra.mxu1 %v4997_v24  ;;  %v4208_v24 = vld [vmem:[#allocation7 + $0x30] sm:$0xff]   ;;  %v1796_v45 = vld [vmem:[#allocation6 + $0x418] sm:$0xff]  ;;  %v3994_v30 = vunpack.c.h.bf16 %v4213_v0 }
 0x386   : > { %3107 = vmatpush1.msra.mxu0 %v2271_v58  ;;  %3091 = vmatprep.mubr.f32.mxu1 %v5007_v47  ;;  %v2240_v47 = vunpack.c.h.bf16 %v1824_v3  ;;  %v3974_v7 = vunpack.c.h.bf16 %v4208_v24  ;;  %v3973_v39 = vunpack.c.l.bf16 %v4208_v24  ;;  %v3997_v58 = vunpack.c.l.bf16 %v4214_v41  ;;  %v4212_v3 = vld [vmem:[#allocation7 + $0x50] sm:$0xff]   ;;  %v1912_v24 = vld [vmem:[#allocation6 + $0x7b8] sm:$0xff]  ;;  %v3948_v41 = vld [vmem:[#allocation7] sm:$0xff]  }
 0x387   : > { %3108 = vmatprep.subr.mxu0 %v2264_v10  ;;  %3003 = vmatmul.mubr.f32.gmra.mxu0 %v5059_v1  ;;  %v2192_v10 = vunpack.c.h.bf16 %v1800_v59 }
 0x388   : > { %3109 = vmatpush1.msra.mxu0 %v2263_v14  ;;  %3162 = vmatprep.mubr.f32.mxu0 %v5027_v29  ;;  %v2231_v29 = vunpack.c.l.bf16 %v1820_v44  ;;  %v2191_v14 = vunpack.c.l.bf16 %v1800_v59  ;;  %v3961_v44 = vunpack.c.l.bf16 %v4205_v38  ;;  %v3950_v59 = vunpack.c.h.bf16 %v3948_v41 }
 0x389   : > { %3110 = vmatprep.subr.mxu0 %v2256_v31  ;;  %3092 = vmatmul.mubr.f32.gmra.mxu1 %v5005_v56  ;;  %v2224_v56 = vunpack.c.h.bf16 %v1816_v52  ;;  %v2184_v31 = vunpack.c.h.bf16 %v1796_v45  ;;  %v4211_v52 = vld [vmem:[#allocation7 + $0x48] sm:$0xff]  }
 0x38a   : > { %3111 = vmatpush1.msra.mxu0 %v2255_v28  ;;  %4266 = vmatprep.subr.mxu1 %v4010_v36  ;;  %v3962_v28 = vunpack.c.h.bf16 %v4205_v38  ;;  %v2183_v36 = vunpack.c.l.bf16 %v1796_v45  ;;  %v3949_v45 = vunpack.c.l.bf16 %v3948_v41 }
 0x38b   : > { %3112 = vmatprep.subr.mxu0 %v2248_v12  ;;  %4267 = vmatpush3.msra.mxu1 %v3978_v18  ;;  %v1916_v12 = vld [vmem:[#allocation6 + $0x7d8] sm:$0xff]  ;;  %v3993_v18 = vunpack.c.l.bf16 %v4213_v0  ;;  %v3981_v0 = vunpack.c.l.bf16 %v4210_v46 }
 0x38c   : > { %3113 = vmatpush1.msra.mxu0 %v2247_v43  ;;  %4268 = vmatprep.subr.mxu1 %v4009_v13  ;;  %v2432_v43 = vunpack.c.h.bf16 %v1920_v15  ;;  %v2431_v13 = vunpack.c.l.bf16 %v1920_v15 }
 0x38d   : > { %3114 = vmatprep.subr.mxu0 %v2240_v47  ;;  %4269 = vmatpush3.msra.mxu1 %v3977_v19  ;;  %v3990_v47 = vunpack.c.h.bf16 %v4212_v3  ;;  %v2424_v19 = vunpack.c.h.bf16 %v1916_v12 }
 0x38e   : > { %3115 = vmatpush1.msra.mxu0 %v2239_v51  ;;  %4270 = vmatprep.subr.mxu1 %v4006_v55  ;;  %v3958_v51 = vunpack.c.h.bf16 %v4204_v2  ;;  %v2423_v55 = vunpack.c.l.bf16 %v1916_v12  ;;  %v5105_v12 = vld [vmem:[%s5174_s1 + $0xa] sm:$0xff] }
 0x38f   : > { %3116 = vmatprep.subr.mxu0 %v2232_v6  ;;  %4271 = vmatpush3.msra.mxu1 %v3974_v7  ;;  %v1908_v6 = vld [vmem:[#allocation6 + $0x798] sm:$0xff]  ;;  %v3989_v7 = vunpack.c.l.bf16 %v4212_v3 }
 0x390   : > { %3117 = vmatpush1.msra.mxu0 %v2231_v29  ;;  %4272 = vmatprep.subr.mxu1 %v4005_v34  ;;  %v2416_v29 = vunpack.c.h.bf16 %v1912_v24  ;;  %v2415_v34 = vunpack.c.l.bf16 %v1912_v24  ;;  %v5109_v24 = vrot.slane %v5105_v12, %v4800_v23 }
 0x391   : > { %3118 = vmatprep.subr.mxu0 %v2224_v56  ;;  %4273 = vmatpush3.msra.mxu1 %v3973_v39  ;;  %v3986_v56 = vunpack.c.h.bf16 %v4211_v52  ;;  %v2408_v39 = vunpack.c.h.bf16 %v1908_v6 }
 0x392   : > { %3119 = vmatpush1.msra.mxu0 %v2223_v40  ;;  %4274 = vmatprep.subr.mxu1 %v4002_v54  ;;  %v3954_v40 = vunpack.c.h.bf16 %v4203_v33  ;;  %v2407_v54 = vunpack.c.l.bf16 %v1908_v6 }
 0x393   : > { %3120 = vmatprep.subr.mxu0 %v2216_v5  ;;  %4275 = vmatpush3.msra.mxu1 %v3970_v8  ;;  %v1900_v5 = vld [vmem:[#allocation6 + $0x758] sm:$0xff]  ;;  %v3985_v8 = vunpack.c.l.bf16 %v4211_v52 }
 0x394   : > { %3121 = vmatpush1.msra.mxu0 %v2215_v17  ;;  %4276 = vmatprep.subr.mxu1 %v4001_v50  ;;  %v2400_v17 = vunpack.c.h.bf16 %v1904_v4  ;;  %v5097_v50 = vpop.f32.mrf.mxu1 }
 0x395   : > { %3122 = vmatprep.subr.mxu0 %v2208_v57  ;;  %4277 = vmatpush3.msra.mxu1 %v3969_v35  ;;  %v1896_v57 = vld [vmem:[#allocation6 + $0x738] sm:$0xff]  ;;  %v3982_v35 = vunpack.c.h.bf16 %v4210_v46 }
 0x396   : > { %3123 = vmatpush1.msra.mxu0 %v2207_v48  ;;  %4278 = vmatprep.subr.mxu1 %v3998_v32  ;;  %v2392_v48 = vunpack.c.h.bf16 %v1900_v5  ;;  %v5099_v32 = vld [vmem:[#allocation7 + $0x178] sm:$0xff]   ;;  %v2383_v38 = vunpack.c.l.bf16 %v1896_v57 }
 0x397   : > { %3124 = vmatprep.subr.mxu0 %v2200_v60  ;;  %4279 = vmatpush3.msra.mxu1 %v3966_v62  ;;  %v2391_v60 = vunpack.c.l.bf16 %v1900_v5  ;;  %v1892_v62 = vld [vmem:[#allocation6 + $0x718] sm:$0xff] }
 0x398   : > { %3125 = vmatpush1.msra.mxu0 %v2199_v9  ;;  %4280 = vmatprep.subr.mxu1 %v3997_v58  ;;  %v2384_v9 = vunpack.c.h.bf16 %v1896_v57  ;;  %v2543_v58 = vpop.f32.mrf.mxu1  ;;  %v4241_v5 = vld [vmem:[#allocation7 + $0x138] sm:$0xff]  }
 0x399   : > { %3126 = vmatprep.subr.mxu0 %v2192_v10  ;;  %4281 = vmatpush3.msra.mxu1 %v3965_v11  ;;  %v1888_v10 = vld [vmem:[#allocation6 + $0x6f8] sm:$0xff]  ;;  %v4138_v11 = vunpack.c.h.bf16 %v5099_v32 }
 0x39a   : > { %3127 = vmatpush1.msra.mxu0 %v2191_v14  ;;  %4282 = vmatprep.subr.mxu1 %v3994_v30  ;;  %v2376_v14 = vunpack.c.h.bf16 %v1892_v62  ;;  %v2547_v15 = vpop.f32.mrf.mxu1  ;;  %v2375_v30 = vunpack.c.l.bf16 %v1892_v62  ;;  %v2367_v3 = vunpack.c.l.bf16 %v1888_v10 }
 0x39b   : > { %3128 = vmatprep.subr.mxu0 %v2184_v31  ;;  %4283 = vmatpush3.msra.mxu1 %v3962_v28  ;;  %v1884_v31 = vld [vmem:[#allocation6 + $0x6d8] sm:$0xff]  ;;  %v2368_v28 = vunpack.c.h.bf16 %v1888_v10 }
 0x39c   : > { %3129 = vmatpush1.msra.mxu0 %v2183_v36  ;;  %4284 = vmatprep.subr.mxu1 %v3993_v18  ;;  %v1880_v36 = vld [vmem:[#allocation6 + $0x6b8] sm:$0xff]  ;;  %v2360_v18 = vunpack.c.h.bf16 %v1884_v31  ;;  %v2549_v2 = vpop.f32.mrf.mxu1 }
 0x39d   : > { %3130 = vmatprep.subr.mxu0 %v2432_v43  ;;  %4285 = vmatpush3.msra.mxu1 %v3961_v44  ;;  %v2359_v43 = vunpack.c.l.bf16 %v1884_v31  ;;  %v1876_v44 = vld [vmem:[#allocation6 + $0x698] sm:$0xff] }
 0x39e   : > { %3131 = vmatpush2.msra.mxu0 %v2431_v13  ;;  %4286 = vmatprep.subr.mxu1 %v3990_v47  ;;  %v2352_v13 = vunpack.c.h.bf16 %v1880_v36  ;;  %v2351_v47 = vunpack.c.l.bf16 %v1880_v36  ;;  %v2344_v52 = vunpack.c.h.bf16 %v1876_v44  ;;  %v2343_v6 = vunpack.c.l.bf16 %v1876_v44  ;;  %v4225_v10 = vld [vmem:[#allocation7 + $0xb8] sm:$0xff]  }
 0x39f   : > { %3132 = vmatprep.subr.mxu0 %v2424_v19  ;;  %4287 = vmatpush3.msra.mxu1 %v3958_v51  ;;  %v1872_v19 = vld [vmem:[#allocation6 + $0x678] sm:$0xff]  ;;  %v5113_v51 = vrot.slane %v5105_v12, %v4806_v25 }
 0x3a0   : > { %3133 = vmatpush2.msra.mxu0 %v2423_v55  ;;  %4288 = vmatprep.subr.mxu1 %v3989_v7  ;;  %v2553_v55 = vpop.f32.mrf.mxu1  ;;  %v1868_v7 = vld [vmem:[#allocation6 + $0x658] sm:$0xff]  ;;  %v2336_v33 = vunpack.c.h.bf16 %v1872_v19  ;;  %v2335_v23 = vunpack.c.l.bf16 %v1872_v19 }
 0x3a1   : > { %3134 = vmatprep.subr.mxu0 %v2416_v29  ;;  %4289 = vmatpush3.msra.mxu1 %v3957_v49  ;;  %v2542_v29 = vadd.f32 %v5097_v50, %v5109_v24  ;;  %v1864_v49 = vld [vmem:[#allocation6 + $0x638] sm:$0xff]  ;;  %v2544_v4 = vadd.f32 %v2543_v58, %v5113_v51  ;;  %v2328_v25 = vunpack.c.h.bf16 %v1868_v7  ;;  %v4137_v58 = vunpack.c.l.bf16 %v5099_v32 }
 0x3a2   : > { %3135 = vmatpush2.msra.mxu0 %v2415_v34  ;;  %4290 = vmatprep.subr.mxu1 %v3986_v56  ;;  %v2555_v56 = vpop.f32.mrf.mxu1 }
 0x3a3   : > { %3136 = vmatprep.subr.mxu0 %v2408_v39  ;;  %4291 = vmatpush3.msra.mxu1 %v3954_v40  ;;  %v2327_v39 = vunpack.c.l.bf16 %v1868_v7  ;;  %v1860_v40 = vld [vmem:[#allocation6 + $0x618] sm:$0xff] }
 0x3a4   : > { %3137 = vmatpush2.msra.mxu0 %v2407_v54  ;;  %4292 = vmatprep.subr.mxu1 %v3985_v8  ;;  %v2320_v8 = vunpack.c.h.bf16 %v1864_v49  ;;  %v2312_v57 = vunpack.c.h.bf16 %v1860_v40 }
 0x3a5   : > { %3138 = vmatprep.subr.mxu0 %v2400_v17  ;;  %4293 = vmatpush3.msra.mxu1 %v3953_v20  ;;  %v2548_v17 = vadd.f32 %v2547_v15, %v5109_v24  ;;  %v2319_v20 = vunpack.c.l.bf16 %v1864_v49 }
 0x3a6   : > { %3139 = vmatpush2.msra.mxu0 %v2399_v42  ;;  %4294 = vmatprep.subr.mxu1 %v3982_v35  ;;  %v2550_v42 = vadd.f32 %v2549_v2, %v5113_v51 }
 0x3a7   : > { %3140 = vmatprep.subr.mxu0 %v2392_v48  ;;  %4295 = vmatpush3.msra.mxu1 %v3950_v59  ;;  %v4106_v48 = vunpack.c.h.bf16 %v4241_v5  ;;  %v2559_v59 = vpop.f32.mrf.mxu1 }
 0x3a8   : > { %3141 = vmatpush2.msra.mxu0 %v2391_v60  ;;  %4296 = vmatprep.subr.mxu1 %v3981_v0  ;;  %v2311_v60 = vunpack.c.l.bf16 %v1860_v40  ;;  %v2560_v19 = vadd.f32 %v2559_v59, %v5109_v24  ;;  %v4239_v40 = vld [vmem:[#allocation7 + $0x128] sm:$0xff]  }
 0x3a9   : > { %3142 = vmatprep.subr.mxu0 %v2384_v9  ;;  %4297 = vmatpush3.msra.mxu1 %v3949_v45  ;;  %v4233_v45 = vld [vmem:[#allocation7 + $0xf8] sm:$0xff]   ;;  %v2561_v36 = vpop.f32.mrf.mxu1  ;;  %v4097_v59 = vunpack.c.l.bf16 %v4239_v40 }
 0x3aa   : > { %3143 = vmatpush2.msra.mxu0 %v2383_v38  ;;  %4354 = vmatprep.subr.mxu1 %v4138_v11  ;;  %v4248_v11 = vld [vmem:[#allocation7 + $0x170] sm:$0xff]   ;;  %v4073_v7 = vunpack.c.l.bf16 %v4233_v45 }
 0x3ab   : > { %3144 = vmatprep.subr.mxu0 %v2376_v14  ;;  %v2554_v14 = vadd.f32 %v2553_v55, %v5109_v24  ;;  %v4134_v44 = vunpack.c.h.bf16 %v4248_v11  ;;  %v2562_v55 = vadd.f32 %v2561_v36, %v5113_v51  ;;  %v4224_v24 = vld [vmem:[#allocation7 + $0xb0] sm:$0xff]  }
 0x3ac   : > { %3145 = vmatpush2.msra.mxu0 %v2375_v30  ;;  %v2556_v30 = vadd.f32 %v2555_v56, %v5113_v51 }
 0x3ad   : > { %3146 = vmatprep.subr.mxu0 %v2368_v28  ;;  %v4074_v28 = vunpack.c.h.bf16 %v4233_v45 }
 0x3ae   : > { %3147 = vmatpush2.msra.mxu0 %v2367_v3  ;;  %v4105_v3 = vunpack.c.l.bf16 %v4241_v5  ;;  %v4231_v5 = vld [vmem:[#allocation7 + $0xe8] sm:$0xff]  }
 0x3af   : > { %3148 = vmatprep.subr.mxu0 %v2360_v18 }
 0x3b0   : > { %3149 = vmatpush2.msra.mxu0 %v2359_v43  ;;  %v4042_v43 = vunpack.c.h.bf16 %v4225_v10 }
 0x3b1   : > { %3150 = vmatprep.subr.mxu0 %v2352_v13  ;;  %v4240_v13 = vld [vmem:[#allocation7 + $0x130] sm:$0xff]  }
 0x3b2   : > { %3151 = vmatpush2.msra.mxu0 %v2351_v47  ;;  %v2630_v34 = vpop.f32.mrf.mxu0 }
 0x3b3   : > { %3152 = vmatprep.subr.mxu0 %v2344_v52  ;;  %v2631_v46 = vadd.f32 %v2630_v34, %v2542_v29  ;;  %v4232_v34 = vld [vmem:[#allocation7 + $0xf0] sm:$0xff]  }
 0x3b4   : > { %3153 = vmatpush2.msra.mxu0 %v2343_v6  ;;  %v2632_v54 = vpop.f32.mrf.mxu0  ;;  %v4070_v56 = vunpack.c.h.bf16 %v4232_v34 }
 0x3b5   : > { %3154 = vmatprep.subr.mxu0 %v2336_v33  ;;  %v2633_v41 = vadd.f32 %v2632_v54, %v2544_v4  ;;  %v3187_v62 = vmax.f32 %v2631_v46, 0.0  ;;  %v4102_v33 = vunpack.c.h.bf16 %v4240_v13  ;;  %v4133_v4 = vunpack.c.l.bf16 %v4248_v11  ;;  %v4229_v11 = vld [vmem:[#allocation7 + $0xd8] sm:$0xff]  }
 0x3b6   : > { %3155 = vmatpush2.msra.mxu0 %v2335_v23  ;;  %v2636_v50 = vpop.f32.mrf.mxu0  ;;  %v4038_v54 = vunpack.c.h.bf16 %v4224_v24  ;;  %v4058_v36 = vunpack.c.h.bf16 %v4229_v11 }
 0x3b7   : > { %3156 = vmatprep.subr.mxu0 %v2328_v25  ;;  %v3188_v35 = vmax.f32 %v2633_v41, 0.0  ;;  %v2637_v0 = vadd.f32 %v2636_v50, %v2548_v17  ;;  %v4247_v25 = vld [vmem:[#allocation7 + $0x168] sm:$0xff]   ;;  %v4098_v17 = vunpack.c.h.bf16 %v4239_v40  ;;  %v4066_v50 = vunpack.c.h.bf16 %v4231_v5  ;;  %v4234_v40 = vld [vmem:[#allocation7 + $0x100] sm:$0xff]  }
 0x3b8   : > { %3157 = vmatpush2.msra.mxu0 %v2327_v39  ;;  %v2638_v9 = vpop.f32.mrf.mxu0  ;;  %v4101_v39 = vunpack.c.l.bf16 %v4240_v13  ;;  %v4223_v41 = vld [vmem:[#allocation7 + $0xa8] sm:$0xff]   ;;  %v4057_v13 = vunpack.c.l.bf16 %v4229_v11 }
 0x3b9   : > { %3158 = vmatprep.subr.mxu0 %v2320_v8  ;;  %v2639_v38 = vadd.f32 %v2638_v9, %v2550_v42  ;;  %3546 = vmatprep.mubr.f32.mxu1 %v3188_v35  ;;  %v3195_v32 = vmax.f32 %v2637_v0, 0.0  ;;  %v4130_v8 = vunpack.c.h.bf16 %v4247_v25  ;;  %v4129_v42 = vunpack.c.l.bf16 %v4247_v25  ;;  %v4245_v9 = vld [vmem:[#allocation7 + $0x158] sm:$0xff]  }
 0x3ba   : > { %3159 = vmatpush2.msra.mxu0 %v2319_v20  ;;  %v2642_v15 = vpop.f32.mrf.mxu0  ;;  %3547 = vmatmul.mubr.f32.vlgmr.msra.gmra.mxu1 %v3187_v62  ;;  %v4246_v20 = vld [vmem:[#allocation7 + $0x160] sm:$0xff]   ;;  %v4034_v35 = vunpack.c.h.bf16 %v4223_v41  ;;  %v4033_v62 = vunpack.c.l.bf16 %v4223_v41 }
 0x3bb   : > { %3160 = vmatprep.subr.mxu0 %v2312_v57  ;;  %v3196_v31 = vmax.f32 %v2639_v38, 0.0  ;;  %4355 = vmatpush3.msra.mxu1 %v4106_v48  ;;  %v2643_v18 = vadd.f32 %v2642_v15, %v2554_v14  ;;  %v4238_v57 = vld [vmem:[#allocation7 + $0x120] sm:$0xff]   ;;  %v4237_v38 = vld [vmem:[#allocation7 + $0x118] sm:$0xff]  }
 0x3bc   : > { %3161 = vmatpush2.msra.mxu0 %v2311_v60  ;;  %v2644_v2 = vpop.f32.mrf.mxu0  ;;  %4356 = vmatprep.subr.mxu1 %v4137_v58  ;;  %v4230_v48 = vld [vmem:[#allocation7 + $0xe0] sm:$0xff]   ;;  %v4094_v0 = vunpack.c.h.bf16 %v4238_v57  ;;  %v4125_v58 = vunpack.c.l.bf16 %v4246_v20  ;;  %v4093_v14 = vunpack.c.l.bf16 %v4238_v57  ;;  %v4221_v15 = vld [vmem:[#allocation7 + $0x98] sm:$0xff]   ;;  %v4077_v57 = vunpack.c.l.bf16 %v4234_v40 }
 0x3bd   : > { %3163 = vmatmul.mubr.f32.vlgmr.msra.gmra.mxu0 %v5032_v53  ;;  %v2645_v47 = vadd.f32 %v2644_v2, %v2556_v30  ;;  %3551 = vmatprep.mubr.f32.mxu1 %v3196_v31  ;;  %v3203_v29 = vmax.f32 %v2643_v18, 0.0  ;;  %v4041_v53 = vunpack.c.l.bf16 %v4225_v10  ;;  %v4222_v60 = vld [vmem:[#allocation7 + $0xa0] sm:$0xff]   ;;  %v4062_v45 = vunpack.c.h.bf16 %v4230_v48  ;;  %v4236_v18 = vld [vmem:[#allocation7 + $0x110] sm:$0xff]  }
 0x3be   : > { %3168 = vmatprep.mubr.f32.mxu0 %v5039_v16  ;;  %v2648_v52 = vpop.f32.mrf.mxu0  ;;  %3552 = vmatmul.mubr.f32.gmra.mxu1 %v3195_v32  ;;  %v4030_v10 = vunpack.c.h.bf16 %v4222_v60  ;;  %v4122_v30 = vunpack.c.h.bf16 %v4245_v9  ;;  %v4029_v31 = vunpack.c.l.bf16 %v4222_v60  ;;  %v4121_v32 = vunpack.c.l.bf16 %v4245_v9  ;;  %v2719_v60 = vpop.f32.mrf.mxu1 }
 0x3bf   : > { %v3204_v6 = vmax.f32 %v2645_v47, 0.0  ;;  %4310 = vmatprep.subr.mxu0 %v4074_v28  ;;  %4357 = vmatpush3.msra.mxu1 %v4105_v3  ;;  %v2649_v23 = vadd.f32 %v2648_v52, %v2560_v19  ;;  %v4090_v28 = vunpack.c.h.bf16 %v4237_v38  ;;  %v4244_v3 = vld [vmem:[#allocation7 + $0x150] sm:$0xff]   ;;  %v4026_v2 = vunpack.c.h.bf16 %v4221_v15 }
 0x3c0   : > { %v2650_v49 = vpop.f32.mrf.mxu0  ;;  %4311 = vmatpush3.msra.mxu0 %v4042_v43  ;;  %4358 = vmatprep.subr.mxu1 %v4134_v44  ;;  %v4228_v43 = vld [vmem:[#allocation7 + $0xd0] sm:$0xff]   ;;  %v4089_v44 = vunpack.c.l.bf16 %v4237_v38  ;;  %v4118_v19 = vunpack.c.h.bf16 %v4244_v3  ;;  %v4025_v52 = vunpack.c.l.bf16 %v4221_v15  ;;  %v5138_v9 = vrot.slane %v5105_v12, %v4817_v63 }
 0x3c1   : > { %3169 = vmatmul.mubr.f32.gmra.mxu0 %v5043_v37  ;;  %v2651_v16 = vadd.f32 %v2650_v49, %v2562_v55  ;;  %3556 = vmatprep.mubr.f32.mxu1 %v3204_v6  ;;  %v3211_v46 = vmax.f32 %v2649_v23, 0.0  ;;  %v4069_v37 = vunpack.c.l.bf16 %v4232_v34  ;;  %v4220_v47 = vld [vmem:[#allocation7 + $0x90] sm:$0xff]   ;;  %v4086_v55 = vunpack.c.h.bf16 %v4236_v18  ;;  %v4243_v6 = vld [vmem:[#allocation7 + $0x148] sm:$0xff]  }
 0x3c2   : > { %3174 = vmatprep.mubr.f32.mxu0 %v5049_v26  ;;  %3557 = vmatmul.mubr.f32.gmra.mxu1 %v3203_v29  ;;  %v4037_v26 = vunpack.c.l.bf16 %v4224_v24  ;;  %v4235_v29 = vld [vmem:[#allocation7 + $0x108] sm:$0xff]   ;;  %v4022_v23 = vunpack.c.h.bf16 %v4220_v47  ;;  %v4053_v34 = vunpack.c.l.bf16 %v4228_v43  ;;  %v4021_v24 = vunpack.c.l.bf16 %v4220_v47 }
 0x3c3   : > { %v3212_v51 = vmax.f32 %v2651_v16, 0.0  ;;  %4312 = vmatprep.subr.mxu0 %v4073_v7  ;;  %4359 = vmatpush3.msra.mxu1 %v4102_v33  ;;  %v4054_v7 = vunpack.c.h.bf16 %v4228_v43  ;;  %v4117_v33 = vunpack.c.l.bf16 %v4244_v3  ;;  %v4227_v49 = vld [vmem:[#allocation7 + $0xc8] sm:$0xff]   ;;  %v4114_v16 = vunpack.c.h.bf16 %v4243_v6 }
 0x3c4   : > { %4313 = vmatpush3.msra.mxu0 %v4041_v53  ;;  %4360 = vmatprep.subr.mxu1 %v4133_v4  ;;  %v4085_v53 = vunpack.c.l.bf16 %v4236_v18  ;;  %v4219_v4 = vld [vmem:[#allocation7 + $0x88] sm:$0xff]   ;;  %v4082_v25 = vunpack.c.h.bf16 %v4235_v29  ;;  %v4256_v18 = vld [vmem:[#allocation7 + $0x1b0] sm:$0xff]  }
 0x3c5   : > { %3175 = vmatmul.mubr.f32.gmra.mxu0 %v5053_v27  ;;  %3561 = vmatprep.mubr.f32.mxu1 %v3212_v51  ;;  %v4065_v27 = vunpack.c.l.bf16 %v4231_v5  ;;  %v4242_v51 = vld [vmem:[#allocation7 + $0x140] sm:$0xff]   ;;  %v4081_v5 = vunpack.c.l.bf16 %v4235_v29 }
 0x3c6   : > { %3180 = vmatprep.mubr.f32.mxu0 %v5057_v21  ;;  %3562 = vmatmul.mubr.f32.gmra.mxu1 %v3211_v46  ;;  %v4126_v21 = vunpack.c.h.bf16 %v4246_v20  ;;  %v4018_v46 = vunpack.c.h.bf16 %v4219_v4  ;;  %v4110_v41 = vunpack.c.h.bf16 %v4242_v51 }
 0x3c7   : > { %4314 = vmatprep.subr.mxu0 %v4070_v56  ;;  %4361 = vmatpush3.msra.mxu1 %v4101_v39  ;;  %v4050_v56 = vunpack.c.h.bf16 %v4227_v49  ;;  %v4113_v39 = vunpack.c.l.bf16 %v4243_v6  ;;  %v4263_v6 = vld [vmem:[#allocation7 + $0x1e8] sm:$0xff]  }
 0x3c8   : > { %4315 = vmatpush3.msra.mxu0 %v4038_v54  ;;  %4362 = vmatprep.subr.mxu1 %v4130_v8  ;;  %v4226_v54 = vld [vmem:[#allocation7 + $0xc0] sm:$0xff]   ;;  %v4049_v8 = vunpack.c.l.bf16 %v4227_v49 }
 0x3c9   : > { %3181 = vmatmul.mubr.f32.gmra.mxu0 %v5059_v1  ;;  %4316 = vmatprep.subr.mxu0 %v4069_v37  ;;  %v4061_v1 = vunpack.c.l.bf16 %v4230_v48  ;;  %v4218_v37 = vld [vmem:[#allocation7 + $0x80] sm:$0xff]   ;;  %v4046_v20 = vunpack.c.h.bf16 %v4226_v54  ;;  %v4045_v48 = vunpack.c.l.bf16 %v4226_v54 }
 0x3ca   : > { %4317 = vmatpush3.msra.mxu0 %v4037_v26  ;;  %4363 = vmatpush3.msra.mxu1 %v4098_v17  ;;  %v4017_v26 = vunpack.c.l.bf16 %v4219_v4  ;;  %v4078_v17 = vunpack.c.h.bf16 %v4234_v40  ;;  %v4193_v40 = vunpack.c.l.bf16 %v4263_v6 }
 0x3cb   : > { %4318 = vmatprep.subr.mxu0 %v4066_v50  ;;  %4364 = vmatprep.subr.mxu1 %v4129_v42  ;;  %v4109_v50 = vunpack.c.l.bf16 %v4242_v51  ;;  %v4014_v42 = vunpack.c.h.bf16 %v4218_v37  ;;  %v4262_v51 = vld [vmem:[#allocation7 + $0x1e0] sm:$0xff]  }
 0x3cc   : > { %4319 = vmatpush3.msra.mxu0 %v4034_v35  ;;  %4365 = vmatpush3.msra.mxu1 %v4097_v59  ;;  %v4265_v35 = vld [vmem:[#allocation7 + $0x1f8] sm:$0xff]   ;;  %v4013_v59 = vunpack.c.l.bf16 %v4218_v37  ;;  %v4190_v37 = vunpack.c.h.bf16 %v4262_v51 }
 0x3cd   : > { %4320 = vmatprep.subr.mxu0 %v4065_v27  ;;  %4366 = vmatprep.subr.mxu1 %v4126_v21  ;;  %v4202_v27 = vunpack.c.h.bf16 %v4265_v35  ;;  %v2721_v21 = vpop.f32.mrf.mxu1  ;;  %v4201_v63 = vunpack.c.l.bf16 %v4265_v35  ;;  %v4253_v35 = vld [vmem:[#allocation7 + $0x198] sm:$0xff]  }
 0x3ce   : > { %4321 = vmatpush3.msra.mxu0 %v4033_v62  ;;  %4367 = vmatpush3.msra.mxu1 %v4094_v0  ;;  %v5134_v62 = vrot.slane %v5105_v12, %v4811_v61  ;;  %v4264_v61 = vld [vmem:[#allocation7 + $0x1f0] sm:$0xff]  }
 0x3cf   : > { %4322 = vmatprep.subr.mxu0 %v4062_v45  ;;  %4368 = vmatprep.subr.mxu1 %v4125_v58  ;;  %v2725_v0 = vpop.f32.mrf.mxu1 }
 0x3d0   : > { %4323 = vmatpush3.msra.mxu0 %v4030_v10  ;;  %4369 = vmatpush3.msra.mxu1 %v4093_v14  ;;  %v2720_v45 = vadd.f32 %v2719_v60, %v5134_v62  ;;  %v2722_v10 = vadd.f32 %v2721_v21, %v5138_v9  ;;  %v2726_v3 = vadd.f32 %v2725_v0, %v5134_v62 }
 0x3d1   : > { %4324 = vmatprep.subr.mxu0 %v4061_v1  ;;  %4370 = vmatprep.subr.mxu1 %v4122_v30  ;;  %v2727_v58 = vpop.f32.mrf.mxu1  ;;  %v4257_v1 = vld [vmem:[#allocation7 + $0x1b8] sm:$0xff]  }
 0x3d2   : > { %4325 = vmatpush3.msra.mxu0 %v4029_v31  ;;  %4371 = vmatpush3.msra.mxu1 %v4090_v28  ;;  %v4170_v28 = vunpack.c.h.bf16 %v4257_v1  ;;  %v4169_v43 = vunpack.c.l.bf16 %v4257_v1 }
 0x3d3   : > { %4326 = vmatprep.subr.mxu0 %v4058_v36  ;;  %4372 = vmatprep.subr.mxu1 %v4121_v32  ;;  %v2731_v30 = vpop.f32.mrf.mxu1 }
 0x3d4   : > { %4327 = vmatpush3.msra.mxu0 %v4026_v2  ;;  %4373 = vmatpush3.msra.mxu1 %v4089_v44  ;;  %v2728_v2 = vadd.f32 %v2727_v58, %v5138_v9  ;;  %v2732_v49 = vadd.f32 %v2731_v30, %v5134_v62  ;;  %v4260_v58 = vld [vmem:[#allocation7 + $0x1d0] sm:$0xff]  }
 0x3d5   : > { %4328 = vmatprep.subr.mxu0 %v4057_v13  ;;  %4374 = vmatprep.subr.mxu1 %v4118_v19  ;;  %v2733_v44 = vpop.f32.mrf.mxu1  ;;  %v4198_v19 = vunpack.c.h.bf16 %v4264_v61  ;;  %v4181_v30 = vunpack.c.l.bf16 %v4260_v58 }
 0x3d6   : > { %4329 = vmatpush3.msra.mxu0 %v4025_v52  ;;  %4375 = vmatpush3.msra.mxu1 %v4086_v55  ;;  %v4166_v55 = vunpack.c.h.bf16 %v4256_v18 }
 0x3d7   : > { %4330 = vmatprep.subr.mxu0 %v4054_v7  ;;  %4376 = vmatprep.subr.mxu1 %v4117_v33  ;;  %v4197_v7 = vunpack.c.l.bf16 %v4264_v61  ;;  %v4255_v33 = vld [vmem:[#allocation7 + $0x1a8] sm:$0xff]  }
 0x3d8   : > { %4331 = vmatpush3.msra.mxu0 %v4022_v23  ;;  %4377 = vmatpush3.msra.mxu1 %v4085_v53  ;;  %v4165_v23 = vunpack.c.l.bf16 %v4256_v18  ;;  %v2737_v53 = vpop.f32.mrf.mxu1 }
 0x3d9   : > { %4332 = vmatprep.subr.mxu0 %v4053_v34  ;;  %4378 = vmatprep.subr.mxu1 %v4114_v16  ;;  %v4194_v16 = vunpack.c.h.bf16 %v4263_v6  ;;  %v2457_v6 = vsub.s32 5, %v4797_v22 }
 0x3da   : > { %4333 = vmatpush3.msra.mxu0 %v4021_v24  ;;  %4379 = vmatpush3.msra.mxu1 %v4082_v25  ;;  %v2734_v24 = vadd.f32 %v2733_v44, %v5138_v9  ;;  %v4162_v25 = vunpack.c.h.bf16 %v4255_v33 }
 0x3db   : > { %4334 = vmatprep.subr.mxu0 %v4050_v56  ;;  %4380 = vmatprep.subr.mxu1 %v4113_v39 }
 0x3dc   : > { %4335 = vmatpush3.msra.mxu0 %v4018_v46  ;;  %4381 = vmatpush3.msra.mxu1 %v4081_v5  ;;  %v4254_v46 = vld [vmem:[#allocation7 + $0x1a0] sm:$0xff]   ;;  %v4161_v5 = vunpack.c.l.bf16 %v4255_v33 }
 0x3dd   : > { %4336 = vmatprep.subr.mxu0 %v4049_v8  ;;  %4382 = vmatprep.subr.mxu1 %v4110_v41  ;;  %v2739_v8 = vpop.f32.mrf.mxu1 }
 0x3de   : > { %4337 = vmatpush3.msra.mxu0 %v4017_v26  ;;  %4383 = vmatpush3.msra.mxu1 %v4078_v17  ;;  %v4158_v26 = vunpack.c.h.bf16 %v4254_v46  ;;  %v4261_v17 = vld [vmem:[#allocation7 + $0x1d8] sm:$0xff]  }
 0x3df   : > { %4338 = vmatprep.subr.mxu0 %v4046_v20  ;;  %4384 = vmatprep.subr.mxu1 %v4109_v50  ;;  %v2738_v20 = vadd.f32 %v2737_v53, %v5134_v62  ;;  %v4186_v21 = vunpack.c.h.bf16 %v4261_v17  ;;  %v4185_v62 = vunpack.c.l.bf16 %v4261_v17 }
 0x3e0   : > { %4339 = vmatpush3.msra.mxu0 %v4014_v42  ;;  %4385 = vmatpush3.msra.mxu1 %v4077_v57  ;;  %v4189_v57 = vunpack.c.l.bf16 %v4262_v51 }
 0x3e1   : > { %4340 = vmatprep.subr.mxu0 %v4045_v48  ;;  %v2740_v48 = vadd.f32 %v2739_v8, %v5138_v9  ;;  %v4182_v9 = vunpack.c.h.bf16 %v4260_v58 }
 0x3e2   : > { %4341 = vmatpush3.msra.mxu0 %v4013_v59  ;;  %v4157_v59 = vunpack.c.l.bf16 %v4254_v46 }
 0x3e3   : > { %4398 = vmatprep.subr.mxu0 %v4202_v27 }
 0x3f3   : > { %v2808_v38 = vpop.f32.mrf.mxu0 }
 0x3f4   : > { %v2809_v11 = vadd.f32 %v2808_v38, %v2720_v45  ;;  %v4154_v45 = vunpack.c.h.bf16 %v4253_v35  ;;  %v4252_v38 = vld [vmem:[#allocation7 + $0x190] sm:$0xff]  }
 0x3f5   : > { %v2810_v14 = vpop.f32.mrf.mxu0  ;;  %v4150_v1 = vunpack.c.h.bf16 %v4252_v38 }
 0x3f6   : > { %v2811_v15 = vadd.f32 %v2810_v14, %v2722_v10  ;;  %v3189_v36 = vmax.f32 %v2809_v11, 0.0  ;;  %v4153_v11 = vunpack.c.l.bf16 %v4253_v35 }
 0x3f8   : > { %v3190_v31 = vmax.f32 %v2811_v15, 0.0  ;;  %v4259_v15 = vld [vmem:[#allocation7 + $0x1c8] sm:$0xff]  }
 0x3f9   : > { %v2814_v32 = vpop.f32.mrf.mxu0  ;;  %v4178_v61 = vunpack.c.h.bf16 %v4259_v15 }
 0x3fa   : > { %3631 = vmatprep.mubr.f32.mxu0 %v3190_v31  ;;  %v2815_v13 = vadd.f32 %v2814_v32, %v2726_v3  ;;  %v4251_v31 = vld [vmem:[#allocation7 + $0x188] sm:$0xff]   ;;  %v4177_v32 = vunpack.c.l.bf16 %v4259_v15  ;;  %v2465_v15 = vsub.s32 7, %v4797_v22 }
 0x3fb   : > { %v2816_v47 = vpop.f32.mrf.mxu0  ;;  %3632 = vmatmul.mubr.f32.vlgmr.msra.gmra.mxu0 %v3189_v36  ;;  %v4146_v3 = vunpack.c.h.bf16 %v4251_v31  ;;  %v4258_v36 = vld [vmem:[#allocation7 + $0x1c0] sm:$0xff]   ;;  %v4145_v18 = vunpack.c.l.bf16 %v4251_v31 }
 0x3fc   : > { %v2817_v52 = vadd.f32 %v2816_v47, %v2728_v2  ;;  %4399 = vmatpush3.msra.mxu0 %v4170_v28  ;;  %v3197_v34 = vmax.f32 %v2815_v13, 0.0  ;;  %v4149_v28 = vunpack.c.l.bf16 %v4252_v38  ;;  %v4174_v2 = vunpack.c.h.bf16 %v4258_v36  ;;  %v2897_v47 = vpop.f32.mrf.mxu1 }
 0x3fd   : > { %4400 = vmatprep.subr.mxu0 %v4201_v63  ;;  %v4250_v63 = vld [vmem:[#allocation7 + $0x180] sm:$0xff]   ;;  %v4173_v44 = vunpack.c.l.bf16 %v4258_v36 }
 0x3fe   : > { %v3198_v29 = vmax.f32 %v2817_v52, 0.0  ;;  %4401 = vmatpush3.msra.mxu0 %v4169_v43  ;;  %v4142_v43 = vunpack.c.h.bf16 %v4250_v63  ;;  %v4141_v13 = vunpack.c.l.bf16 %v4250_v63 }
 0x3ff   : > { %v2820_v4 = vpop.f32.mrf.mxu0  ;;  %4402 = vmatprep.subr.mxu0 %v4198_v19  ;;  %v2899_v19 = vpop.f32.mrf.mxu1 }
 0x400   : > { %3636 = vmatprep.mubr.f32.mxu0 %v3198_v29  ;;  %4403 = vmatpush3.msra.mxu0 %v4166_v55  ;;  %v2821_v56 = vadd.f32 %v2820_v4, %v2732_v49  ;;  %v2453_v55 = vsub.s32 4, %v4797_v22  ;;  %v2458_v29 = vrot.slane %v5105_v12, %v2457_v6 }
 0x401   : > { %v2822_v39 = vpop.f32.mrf.mxu0  ;;  %3637 = vmatmul.mubr.f32.gmra.mxu0 %v3197_v34  ;;  %4404 = vmatprep.subr.mxu0 %v4197_v7  ;;  %v2903_v52 = vpop.f32.mrf.mxu1 }
 0x402   : > { %v2823_v54 = vadd.f32 %v2822_v39, %v2734_v24  ;;  %4405 = vmatpush3.msra.mxu0 %v4165_v23  ;;  %v3205_v50 = vmax.f32 %v2821_v56, 0.0  ;;  %v2454_v33 = vrot.slane %v5105_v12, %v2453_v55  ;;  %v2900_v34 = vadd.f32 %v2899_v19, %v2458_v29 }
 0x403   : > { %4406 = vmatprep.subr.mxu0 %v4194_v16  ;;  %v2905_v7 = vpop.f32.mrf.mxu1 }
 0x404   : > { %v3206_v41 = vmax.f32 %v2823_v54, 0.0  ;;  %4407 = vmatpush3.msra.mxu0 %v4162_v25  ;;  %v2898_v49 = vadd.f32 %v2897_v47, %v2454_v33  ;;  %v2904_v51 = vadd.f32 %v2903_v52, %v2454_v33  ;;  %v2906_v39 = vadd.f32 %v2905_v7, %v2458_v29 }
 0x405   : > { %v2826_v42 = vpop.f32.mrf.mxu0  ;;  %4408 = vmatprep.subr.mxu0 %v4193_v40  ;;  %v2909_v23 = vpop.f32.mrf.mxu1 }
 0x406   : > { %3641 = vmatprep.mubr.f32.mxu0 %v3206_v41  ;;  %4409 = vmatpush3.msra.mxu0 %v4161_v5  ;;  %v2827_v27 = vadd.f32 %v2826_v42, %v2738_v20  ;;  %v2910_v41 = vadd.f32 %v2909_v23, %v2454_v33 }
 0x407   : > { %v2828_v60 = vpop.f32.mrf.mxu0  ;;  %3642 = vmatmul.mubr.f32.gmra.mxu0 %v3205_v50  ;;  %4410 = vmatprep.subr.mxu0 %v4190_v37  ;;  %v2911_v4 = vpop.f32.mrf.mxu1 }
 0x408   : > { %v2829_v0 = vadd.f32 %v2828_v60, %v2740_v48  ;;  %4411 = vmatpush3.msra.mxu0 %v4158_v26  ;;  %v3213_v14 = vmax.f32 %v2827_v27, 0.0  ;;  %v2912_v17 = vadd.f32 %v2911_v4, %v2458_v29 }
 0x409   : > { %4412 = vmatprep.subr.mxu0 %v4189_v57  ;;  %v2915_v46 = vpop.f32.mrf.mxu1 }
 0x40a   : > { %v3214_v10 = vmax.f32 %v2829_v0, 0.0  ;;  %4413 = vmatpush3.msra.mxu0 %v4157_v59  ;;  %v2916_v59 = vadd.f32 %v2915_v46, %v2454_v33 }
 0x40b   : > { %4414 = vmatprep.subr.mxu0 %v4186_v21  ;;  %v2917_v50 = vpop.f32.mrf.mxu1 }
 0x40c   : > { %3646 = vmatprep.mubr.f32.mxu0 %v3214_v10  ;;  %4415 = vmatpush3.msra.mxu0 %v4154_v45  ;;  %v2918_v60 = vadd.f32 %v2917_v50, %v2458_v29 }
 0x40d   : > { %3647 = vmatmul.mubr.f32.gmra.mxu0 %v3213_v14  ;;  %4416 = vmatprep.subr.mxu0 %v4185_v62 }
 0x40e   : > { %4417 = vmatpush3.msra.mxu0 %v4153_v11 }
 0x40f   : > { %4418 = vmatprep.subr.mxu0 %v4182_v9 }
 0x410   : > { %4419 = vmatpush3.msra.mxu0 %v4150_v1  ;;  %v2461_v1 = vsub.s32 6, %v4797_v22 }
 0x411   : > { %4420 = vmatprep.subr.mxu0 %v4181_v30 }
 0x412   : > { %4421 = vmatpush3.msra.mxu0 %v4149_v28  ;;  %v2462_v31 = vrot.slane %v5105_v12, %v2461_v1  ;;  %v2466_v28 = vrot.slane %v5105_v12, %v2465_v15 }
 0x413   : > { %4422 = vmatprep.subr.mxu0 %v4178_v61 }
 0x414   : > { %4423 = vmatpush3.msra.mxu0 %v4146_v3 }
 0x415   : > { %4424 = vmatprep.subr.mxu0 %v4177_v32 }
 0x416   : > { %4425 = vmatpush3.msra.mxu0 %v4145_v18 }
 0x417   : > { %4426 = vmatprep.subr.mxu0 %v4174_v2 }
 0x418   : > { %4427 = vmatpush3.msra.mxu0 %v4142_v43 }
 0x419   : > { %4428 = vmatprep.subr.mxu0 %v4173_v44 }
 0x41a   : > { %4429 = vmatpush3.msra.mxu0 %v4141_v13 }
 0x43b   : > { %v2986_v53 = vpop.f32.mrf.mxu0 }
 0x43c   : > { %v2987_v16 = vadd.f32 %v2986_v53, %v2898_v49 }
 0x43d   : > { %v2988_v24 = vpop.f32.mrf.mxu0  ;;  %v3075_v11 = vpop.f32.mrf.mxu1 }
 0x43e   : > { %v2989_v25 = vadd.f32 %v2988_v24, %v2900_v34  ;;  %v3191_v54 = vmax.f32 %v2987_v16, 0.0  ;;  %v3076_v3 = vadd.f32 %v3075_v11, %v2462_v31  ;;  %v3944_v11 = vld [vmem:[%s5174_s1 + $0x12] ss:$0 sm:$0xff] }
 0x43f   : > { %v2992_v56 = vpop.f32.mrf.mxu0  ;;  %v3077_v14 = vpop.f32.mrf.mxu1 }
 0x440   : > { %v3192_v40 = vmax.f32 %v2989_v25, 0.0  ;;  %v2993_v5 = vadd.f32 %v2992_v56, %v2904_v51  ;;  %v3078_v32 = vadd.f32 %v3077_v14, %v2466_v28 }
 0x441   : > { %v2994_v8 = vpop.f32.mrf.mxu0  ;;  %v3081_v9 = vpop.f32.mrf.mxu1 }
 0x442   : > { %v2995_v37 = vadd.f32 %v2994_v8, %v2906_v39  ;;  %3716 = vmatprep.mubr.f32.mxu1 %v3192_v40  ;;  %v3199_v42 = vmax.f32 %v2993_v5, 0.0  ;;  %v3082_v44 = vadd.f32 %v3081_v9, %v2462_v31 }
 0x443   : > { %v2998_v26 = vpop.f32.mrf.mxu0  ;;  %3717 = vmatmul.mubr.f32.vlgmr.msra.gmra.mxu1 %v3191_v54  ;;  %v3083_v30 = vpop.f32.mrf.mxu1 }
 0x444   : > { %v3200_v20 = vmax.f32 %v2995_v37, 0.0  ;;  %v2999_v57 = vadd.f32 %v2998_v26, %v2910_v41  ;;  %v3084_v47 = vadd.f32 %v3083_v30, %v2466_v28 }
 0x445   : > { %v3000_v35 = vpop.f32.mrf.mxu0  ;;  %v3087_v61 = vpop.f32.mrf.mxu1 }
 0x446   : > { %v3001_v48 = vadd.f32 %v3000_v35, %v2912_v17  ;;  %3721 = vmatprep.mubr.f32.mxu1 %v3200_v20  ;;  %v3207_v0 = vmax.f32 %v2999_v57, 0.0  ;;  %v3088_v33 = vadd.f32 %v3087_v61, %v2462_v31 }
 0x447   : > { %v3004_v27 = vpop.f32.mrf.mxu0  ;;  %3722 = vmatmul.mubr.f32.gmra.mxu1 %v3199_v42  ;;  %v3089_v63 = vpop.f32.mrf.mxu1 }
 0x448   : > { %v3208_v21 = vmax.f32 %v3001_v48, 0.0  ;;  %v3005_v45 = vadd.f32 %v3004_v27, %v2916_v59  ;;  %v3090_v29 = vadd.f32 %v3089_v63, %v2466_v28 }
 0x449   : > { %v3006_v58 = vpop.f32.mrf.mxu0  ;;  %v3093_v52 = vpop.f32.mrf.mxu1 }
 0x44a   : > { %v3007_v62 = vadd.f32 %v3006_v58, %v2918_v60  ;;  %3726 = vmatprep.mubr.f32.mxu1 %v3208_v21  ;;  %v3215_v10 = vmax.f32 %v3005_v45, 0.0  ;;  %v3094_v24 = vadd.f32 %v3093_v52, %v2462_v31 }
 0x44b   : > { %3727 = vmatmul.mubr.f32.gmra.mxu1 %v3207_v0  ;;  %v3095_v49 = vpop.f32.mrf.mxu1 }
 0x44c   : > { %v3216_v38 = vmax.f32 %v3007_v62, 0.0  ;;  %v3096_v51 = vadd.f32 %v3095_v49, %v2466_v28 }
 0x44e   : > { %3731 = vmatprep.mubr.f32.mxu1 %v3216_v38 }
 0x44f   : > { %3732 = vmatmul.mubr.f32.gmra.mxu1 %v3215_v10 }
 0x47a   : > { %v4298_v37 = vpop.f32.mrf.mxu1 }
 0x47c   : > { %v4299_v41 = vpop.f32.mrf.mxu1 }
 0x47d   : > { %v3164_v36 = vpop.f32.mrf.mxu0  ;;  %v4300_v10 = vadd.f32 %v4299_v41, %v4298_v37 }
 0x47e   : > { %v3165_v18 = vadd.f32 %v3164_v36, %v3076_v3  ;;  %v4301_v26 = vpop.f32.mrf.mxu1 }
 0x47f   : > { %v3166_v2 = vpop.f32.mrf.mxu0  ;;  %v3549_v15 = vadd.f32 %v4300_v10, %v3944_v11 }
 0x480   : > { %v3167_v43 = vadd.f32 %v3166_v2, %v3078_v32  ;;  %v3193_v55 = vmax.f32 %v3165_v18, 0.0  ;;  %v4302_v17 = vpop.f32.mrf.mxu1 }
 0x481   : > { %v3170_v13 = vpop.f32.mrf.mxu0  ;;  %v4303_v30 = vadd.f32 %v4302_v17, %v4301_v26 }
 0x482   : > { %v3194_v19 = vmax.f32 %v3167_v43, 0.0  ;;  %v3171_v22 = vadd.f32 %v3170_v13, %v3082_v44  ;;  %v4304_v20 = vpop.f32.mrf.mxu1 }
 0x483   : > { %v3172_v6 = vpop.f32.mrf.mxu0  ;;  %v3554_v18 = vadd.f32 %v4303_v30, %v3944_v11 }
 0x484   : > { %v3173_v7 = vadd.f32 %v3172_v6, %v3084_v47  ;;  %3801 = vmatprep.mubr.f32.mxu0 %v3194_v19  ;;  %v3201_v53 = vmax.f32 %v3171_v22, 0.0  ;;  %v4305_v50 = vpop.f32.mrf.mxu1 }
 0x485   : > { %v3176_v12 = vpop.f32.mrf.mxu0  ;;  %3802 = vmatmul.mubr.f32.vlgmr.msra.gmra.mxu0 %v3193_v55  ;;  %v4306_v32 = vadd.f32 %v4305_v50, %v4304_v20 }
 0x486   : > { %v3202_v23 = vmax.f32 %v3173_v7, 0.0  ;;  %v3177_v34 = vadd.f32 %v3176_v12, %v3088_v33  ;;  %v4307_v57 = vpop.f32.mrf.mxu1 }
 0x487   : > { %v3178_v4 = vpop.f32.mrf.mxu0  ;;  %v3559_v22 = vadd.f32 %v4306_v32, %v3944_v11 }
 0x488   : > { %v3179_v16 = vadd.f32 %v3178_v4, %v3090_v29  ;;  %3806 = vmatprep.mubr.f32.mxu0 %v3202_v23  ;;  %v3209_v39 = vmax.f32 %v3177_v34, 0.0  ;;  %v4308_v48 = vpop.f32.mrf.mxu1 }
 0x489   : > { %v3182_v25 = vpop.f32.mrf.mxu0  ;;  %3807 = vmatmul.mubr.f32.gmra.mxu0 %v3201_v53  ;;  %v4309_v7 = vadd.f32 %v4308_v48, %v4307_v57 }
 0x48a   : > { %v3210_v56 = vmax.f32 %v3179_v16, 0.0  ;;  %v3183_v40 = vadd.f32 %v3182_v25, %v3094_v24 }
 0x48b   : > { %v3184_v46 = vpop.f32.mrf.mxu0  ;;  %v3564_v24 = vadd.f32 %v4309_v7, %v3944_v11 }
 0x48c   : > { %v3185_v54 = vadd.f32 %v3184_v46, %v3096_v51  ;;  %3811 = vmatprep.mubr.f32.mxu0 %v3210_v56  ;;  %v3217_v8 = vmax.f32 %v3183_v40, 0.0 }
 0x48d   : > { %3812 = vmatmul.mubr.f32.gmra.mxu0 %v3209_v39 }
 0x48e   : > { %v3218_v5 = vmax.f32 %v3185_v54, 0.0 }
 0x490   : > { %3816 = vmatprep.mubr.f32.mxu0 %v3218_v5 }
 0x491   : > { %3817 = vmatmul.mubr.f32.gmra.mxu0 %v3217_v8 }
 0x4bb   : > { %v4342_v42 = vpop.f32.mrf.mxu0 }
 0x4bd   : > { %v4343_v35 = vpop.f32.mrf.mxu0 }
 0x4be   : > { %v4344_v9 = vadd.f32 %v4343_v35, %v4342_v42 }
 0x4c0   : > { %v3634_v3 = vadd.f32 %v4344_v9, %v3549_v15 }
 0x4c1   : > { %v4345_v59 = vpop.f32.mrf.mxu0 }
 0x4c3   : > { %v4346_v60 = vpop.f32.mrf.mxu0 }
 0x4c4   : > { %v4347_v36 = vadd.f32 %v4346_v60, %v4345_v59 }
 0x4c6   : > { %v3639_v19 = vadd.f32 %v4347_v36, %v3554_v18 }
 0x4c7   : > { %v4348_v0 = vpop.f32.mrf.mxu0 }
 0x4c9   : > { %v4349_v58 = vpop.f32.mrf.mxu0 }
 0x4ca   : > { %v4350_v52 = vadd.f32 %v4349_v58, %v4348_v0 }
 0x4cc   : > { %v3644_v53 = vadd.f32 %v4350_v52, %v3559_v22 }
 0x4cd   : > { %v4351_v38 = vpop.f32.mrf.mxu0 }
 0x4cf   : > { %v4352_v1 = vpop.f32.mrf.mxu0 }
 0x4d0   : > { %v4353_v34 = vadd.f32 %v4352_v1, %v4351_v38 }
 0x4d2   : > { %v3649_v40 = vadd.f32 %v4353_v34, %v3564_v24 }
 0x503   : > { %v4386_v27 = vpop.f32.mrf.mxu1 }
 0x505   : > { %v4387_v21 = vpop.f32.mrf.mxu1 }
 0x506   : > { %v4388_v31 = vadd.f32 %v4387_v21, %v4386_v27 }
 0x507   : > { %v4389_v45 = vpop.f32.mrf.mxu1 }
 0x508   : > { %v3719_v2 = vadd.f32 %v4388_v31, %v3634_v3 }
 0x509   : > { %v4390_v62 = vpop.f32.mrf.mxu1 }
 0x50a   : > { %v4391_v43 = vadd.f32 %v4390_v62, %v4389_v45 }
 0x50b   : > { %v4392_v14 = vpop.f32.mrf.mxu1 }
 0x50c   : > { %v3724_v33 = vadd.f32 %v4391_v43, %v3639_v19 }
 0x50d   : > { %v4393_v28 = vpop.f32.mrf.mxu1 }
 0x50e   : > { %v4394_v12 = vadd.f32 %v4393_v28, %v4392_v14 }
 0x50f   : > { %v4395_v13 = vpop.f32.mrf.mxu1 }
 0x510   : > { %v3729_v25 = vadd.f32 %v4394_v12, %v3644_v53 }
 0x511   : > { %v4396_v23 = vpop.f32.mrf.mxu1 }
 0x512   : > { %v4397_v51 = vadd.f32 %v4396_v23, %v4395_v13 }
 0x514   : > { %v3734_v5 = vadd.f32 %v4397_v51, %v3649_v40 }
 0x545   : > { %v4430_v61 = vpop.f32.mrf.mxu0 }
 0x547   : > { %v4431_v63 = vpop.f32.mrf.mxu0 }
 0x548   : > { %v4432_v44 = vadd.f32 %v4431_v63, %v4430_v61 }
 0x549   : > { %v4433_v47 = vpop.f32.mrf.mxu0 }
 0x54a   : > { %v3804_v55 = vadd.f32 %v4432_v44, %v3719_v2 }
 0x54b   : > { %v4434_v6 = vpop.f32.mrf.mxu0 }
 0x54c   : > { %3822 = vst [vmem:[%s5164_s16] sm:$0xff] %v3804_v55  ;;  %v4435_v29 = vadd.f32 %v4434_v6, %v4433_v47 }
 0x54d   : > { %v4436_v49 = vpop.f32.mrf.mxu0 }
 0x54e   : > { %v3809_v4 = vadd.f32 %v4435_v29, %v3724_v33 }
 0x54f   : > { %v4437_v16 = vpop.f32.mrf.mxu0 }
 0x550   : > { %3823 = vst [vmem:[%s5164_s16 + $0x8] sm:$0xff] %v3809_v4  ;;  %v4438_v56 = vadd.f32 %v4437_v16, %v4436_v49 }
 0x551   : > { %v4439_v39 = vpop.f32.mrf.mxu0 }
 0x552   : > { %v3814_v46 = vadd.f32 %v4438_v56, %v3729_v25 }
 0x553   : > { %v4440_v54 = vpop.f32.mrf.mxu0 }
 0x554   : > { %3824 = vst [vmem:[%s5164_s16 + $0x10] sm:$0xff] %v3814_v46  ;;  %v4441_v8 = vadd.f32 %v4440_v54, %v4439_v39 }
 0x556   : > { %v3819_v37 = vadd.f32 %v4441_v8, %v3734_v5 }
 0x558   : > { %3825 = vst [vmem:[%s5164_s16 + $0x18] sm:$0xff] %v3819_v37 }
 0x559 PF: > { %s20_s24 = sadd.s32 1, %s4620_s24  }
 0x55a   : > { %p17_p2 = scmp.ge.s32.totalorder %s20_s24, 4  }
 0x55c   :  { %19 = sbr.rel (!%p17_p2) target bundleno = 3 (0x3), region = 95 }
 0x561   :  { %3848 = vsyncpa [#allocation3], 1 }
 0x562   :  { %3850 = vsyncpa [#allocation3 + $0x1], 1 }
 0x563   :  { %3851 = vsyncpa [#allocation5], 1 }
 0x564   :  { %3852 = vsyncpa [#allocation8], 1 }

</bundles_post_ra>
